<compile_context>
chip_gen: v7x
topology: tpu7x:2x2x1
jax: 0.10.0
libtpu: 0.0.40
codegen_flags: <defaults>
</compile_context>

<pallas_src>
import functools
import math

import jax
import jax.numpy as jnp
from jax.experimental import pallas as pl
from jax.experimental.pallas import tpu as pltpu

# ----------------------------- hyper-parameters ------------------------------
BATCH = 4
SEQ_LEN = 64              # original: 1000 (scaled down; architecture preserved)
INPUT_DIM = 20
FILTERS = 128
FC_DIM = 512
KERNEL_HEIGHTS = (16, 24, 32)
BN_EPS = 1e-5
BN_SCALE = 1.0 / math.sqrt(1.0 + BN_EPS)   # eval-mode BN with default stats/affine


def _round_up(x, m):
    return (x + m - 1) // m * m


OH_LIST = tuple(SEQ_LEN - kh + 1 for kh in KERNEL_HEIGHTS)   # (49, 41, 33)
OH_MAX = max(OH_LIST)                                        # windows of kh=16 branch
OH_PAD = _round_up(OH_MAX, 8)                                # 56 (sublane aligned)
K_MAX = max(KERNEL_HEIGHTS) * INPUT_DIM                      # 640
KP = _round_up(K_MAX, 128)                                   # 640 (lane aligned)


# ---------------------------- the fused TPU kernel ---------------------------
def _pssm_kernel(p_ref, cw_ref, cb_ref, bs_ref, bt_ref,
                 w1_ref, s1_ref, t1_ref, w2_ref, s2_ref, t2_ref,
                 o_ref, *, batch, oh_pad, oh_list):
    """conv x3 (+bias+ReLU) -> global max-pool -> bn1 -> concat -> fc1 -> fc2."""
    patches = p_ref[...]                      # (batch*oh_pad, KP)   bf16
    conv_b = cb_ref[...]                      # (3, FILTERS)         f32
    bn_s = bs_ref[...]                        # (1, FILTERS)         f32
    bn_t = bt_ref[...]                        # (1, FILTERS)         f32

    feats = []
    for br, oh in enumerate(oh_list):
        # Full-width conv == matmul on im2col patches.  bf16 operands, f32 acc.
        y = jnp.dot(patches, cw_ref[br], preferred_element_type=jnp.float32)
        # Global max-pool over the valid output positions of each batch row.
        # (bias + ReLU are per-channel & monotone, so they commute with the max
        #  and are applied to the tiny (batch, FILTERS) result instead.)
        ms = [jnp.max(y[b * oh_pad: b * oh_pad + oh], axis=0, keepdims=True)
              for b in range(batch)]
        m = jnp.concatenate(ms, axis=0)                       # (batch, FILTERS)
        f = jnp.maximum(m + conv_b[br:br + 1, :], 0.0)        # conv bias + ReLU
        feats.append(f * bn_s + bn_t)                         # shared bn1 (eval)

    h = jnp.concatenate(feats, axis=1).astype(jnp.bfloat16)   # (batch, 3*FILTERS)
    # fc: Linear + BN + ReLU, twice (scale/shift fold the bias and eval-mode BN).
    h = jnp.dot(h, w1_ref[...], preferred_element_type=jnp.float32)
    h = jnp.maximum(h * s1_ref[...] + t1_ref[...], 0.0).astype(jnp.bfloat16)
    h = jnp.dot(h, w2_ref[...], preferred_element_type=jnp.float32)
    o_ref[...] = jnp.maximum(h * s2_ref[...] + t2_ref[...], 0.0)


def _full_spec(shape):
    shape = tuple(shape)

    def idx(i):
        return (0,) * len(shape)

    return pl.BlockSpec(shape, idx)


# ------------------------------ forward wrapper ------------------------------
def pssm_net_forward(params, x_flat):
    """x_flat: (B, SEQ_LEN*INPUT_DIM) float32 -> (B, FC_DIM) float32."""
    batch = x_flat.shape[0]
    x = x_flat.reshape(batch, SEQ_LEN, INPUT_DIM).astype(jnp.bfloat16)

    # One shared im2col with the largest kernel height (32).  Smaller-kernel
    # branches see zero weight rows in the trailing patch columns, so a single
    # patch tensor serves all three convs (input duplicated once, not 3x).
    kh = max(KERNEL_HEIGHTS)
    oh = OH_MAX
    xp = jnp.pad(x, ((0, 0), (0, (oh - 1 + kh) - SEQ_LEN), (0, 0)))
    cols = [xp[:, i:i + oh, :] for i in range(kh)]            # (kh, kw) patch order
    patches = jnp.stack(cols, axis=2).reshape(batch, oh, kh * INPUT_DIM)
    patches = jnp.pad(patches, ((0, 0), (0, OH_PAD - oh), (0, KP - kh * INPUT_DIM)))
    patches = patches.reshape(batch * OH_PAD, KP)             # bf16, lane/sublane aligned

    kernel = functools.partial(_pssm_kernel, batch=batch,
                               oh_pad=OH_PAD, oh_list=OH_LIST)
    args = (patches,
            params['conv_w'], params['conv_b'],
            params['bn1_scale'], params['bn1_shift'],
            params['fc1_w'], params['fc1_scale'], params['fc1_shift'],
            params['fc2_w'], params['fc2_scale'], params['fc2_shift'])

    return pl.pallas_call(
        kernel,
        out_shape=jax.ShapeDtypeStruct((batch, FC_DIM), jnp.float32),
        grid=(1,),
        in_specs=[_full_spec(a.shape) for a in args],
        out_specs=_full_spec((batch, FC_DIM)),
        compiler_params=pltpu.CompilerParams(dimension_semantics=("arbitrary",)),
    )(*args)


# ------------------------- deterministic initialization ----------------------
def init_params(key):
    keys = iter(jax.random.split(key, 10))

    def uni(shape, bound):
        return jax.random.uniform(next(keys), shape, jnp.float32, -bound, bound)

    conv_w, conv_b = [], []
    for kh in KERNEL_HEIGHTS:
        fan = kh * INPUT_DIM
        bnd = 1.0 / math.sqrt(fan)
        # Weight stored flat in (kh, kw) patch order; loading real PyTorch Conv2d
        # weights (cout, 1, kh, kw) would require w.reshape(cout, -1).T.
        w = uni((fan, FILTERS), bnd)
        conv_w.append(jnp.pad(w, ((0, KP - fan), (0, 0))))    # zero-pad K once, at init
        conv_b.append(uni((FILTERS,), bnd))

    p = {
        'conv_w': jnp.stack(conv_w).astype(jnp.bfloat16),     # (3, KP, FILTERS)
        'conv_b': jnp.stack(conv_b),                          # (3, FILTERS) f32
        # TODO(synk): BatchNorm1d is implemented in eval mode (running stats
        # mean=0, var=1, affine=identity); training-mode batch statistics are
        # not reproduced.
        'bn1_scale': jnp.full((1, FILTERS), BN_SCALE, jnp.float32),
        'bn1_shift': jnp.zeros((1, FILTERS), jnp.float32),
    }
    for name, cin, cout in (('fc1', 3 * FILTERS, FC_DIM), ('fc2', FC_DIM, FC_DIM)):
        bnd = 1.0 / math.sqrt(cin)
        w = uni((cin, cout), bnd)
        b = uni((cout,), bnd)
        p[name + '_w'] = w.astype(jnp.bfloat16)               # bf16 MXU operands
        p[name + '_scale'] = jnp.full((1, cout), BN_SCALE, jnp.float32)
        p[name + '_shift'] = (b * BN_SCALE).reshape(1, cout)  # bias folded through BN
    return p


# --------------------------- pure-JAX f32 reference --------------------------
def reference_forward(params, x_flat):
    batch = x_flat.shape[0]
    x = x_flat.reshape(batch, SEQ_LEN, INPUT_DIM)
    feats = []
    for br, kh in enumerate(KERNEL_HEIGHTS):
        oh = SEQ_LEN - kh + 1
        w = params['conv_w'][br][:kh * INPUT_DIM].astype(jnp.float32)
        b = params['conv_b'][br]
        cols = jnp.stack([x[:, i:i + oh, :] for i in range(kh)], axis=2)
        cols = cols.reshape(batch, oh, kh * INPUT_DIM)
        y = jnp.maximum(jnp.einsum('bok,kf->bof', cols, w) + b, 0.0)
        m = jnp.max(y, axis=1)
        feats.append(m * params['bn1_scale'] + params['bn1_shift'])
    h = jnp.concatenate(feats, axis=1)
    h = jnp.maximum(h @ params['fc1_w'].astype(jnp.float32) * params['fc1_scale']
                    + params['fc1_shift'], 0.0)
    h = jnp.maximum(h @ params['fc2_w'].astype(jnp.float32) * params['fc2_scale']
                    + params['fc2_shift'], 0.0)
    return h


# ----------------------------------- main ------------------------------------
if __name__ == "__main__":
    key = jax.random.PRNGKey(0)
    kp, kx = jax.random.split(key)
    params = init_params(kp)
    x = jax.random.normal(kx, (BATCH, SEQ_LEN * INPUT_DIM), jnp.float32)

    fwd = jax.jit(pssm_net_forward)
    out = fwd(params, x)
    jax.block_until_ready(out)

    assert out.shape == (BATCH, FC_DIM)
    assert bool(jnp.all(jnp.isfinite(out)))

    ref = reference_forward(params, x)
    assert bool(jnp.allclose(out, ref, rtol=5e-2, atol=5e-2)), \
        "Pallas output does not match f32 reference"

    print("KERNEL_OK")
</pallas_src>

<mosaic_0001>
module attributes {stable_mosaic.version = 11 : i64} {
  func.func @_pssm_kernel(%arg0: i32, %arg1: memref<224x640xbf16, #tpu.memory_space<vmem>>, %arg2: memref<3x640x128xbf16, #tpu.memory_space<vmem>>, %arg3: memref<3x128xf32, #tpu.memory_space<vmem>>, %arg4: memref<1x128xf32, #tpu.memory_space<vmem>>, %arg5: memref<1x128xf32, #tpu.memory_space<vmem>>, %arg6: memref<384x512xbf16, #tpu.memory_space<vmem>>, %arg7: memref<1x512xf32, #tpu.memory_space<vmem>>, %arg8: memref<1x512xf32, #tpu.memory_space<vmem>>, %arg9: memref<512x512xbf16, #tpu.memory_space<vmem>>, %arg10: memref<1x512xf32, #tpu.memory_space<vmem>>, %arg11: memref<1x512xf32, #tpu.memory_space<vmem>>, %arg12: memref<4x512xf32, #tpu.memory_space<vmem>>) attributes {dimension_semantics = [#tpu.dimension_semantics<arbitrary>], iteration_bounds = array<i64: 1>, scalar_prefetch = 0 : i64, scratch_operands = 0 : i64, tpu.core_type = #tpu.core_type<tc>, window_params = [{pipeline_mode = #tpu.pipeline_mode<synchronous>, transform_indices = @transform_0, window_bounds = array<i64: 224, 640>}, {pipeline_mode = #tpu.pipeline_mode<synchronous>, transform_indices = @transform_1, window_bounds = array<i64: 3, 640, 128>}, {pipeline_mode = #tpu.pipeline_mode<synchronous>, transform_indices = @transform_2, window_bounds = array<i64: 3, 128>}, {pipeline_mode = #tpu.pipeline_mode<synchronous>, transform_indices = @transform_3, window_bounds = array<i64: 1, 128>}, {pipeline_mode = #tpu.pipeline_mode<synchronous>, transform_indices = @transform_4, window_bounds = array<i64: 1, 128>}, {pipeline_mode = #tpu.pipeline_mode<synchronous>, transform_indices = @transform_5, window_bounds = array<i64: 384, 512>}, {pipeline_mode = #tpu.pipeline_mode<synchronous>, transform_indices = @transform_6, window_bounds = array<i64: 1, 512>}, {pipeline_mode = #tpu.pipeline_mode<synchronous>, transform_indices = @transform_7, window_bounds = array<i64: 1, 512>}, {pipeline_mode = #tpu.pipeline_mode<synchronous>, transform_indices = @transform_8, window_bounds = array<i64: 512, 512>}, {pipeline_mode = #tpu.pipeline_mode<synchronous>, transform_indices = @transform_9, window_bounds = array<i64: 1, 512>}, {pipeline_mode = #tpu.pipeline_mode<synchronous>, transform_indices = @transform_10, window_bounds = array<i64: 1, 512>}, {pipeline_mode = #tpu.pipeline_mode<synchronous>, transform_indices = @transform_11, window_bounds = array<i64: 4, 512>}]} {
    %c0 = arith.constant 0 : index
    %c0_0 = arith.constant 0 : index
    %0 = vector.load %arg1[%c0, %c0_0] : memref<224x640xbf16, #tpu.memory_space<vmem>>, vector<224x640xbf16>
    %c0_1 = arith.constant 0 : index
    %c0_2 = arith.constant 0 : index
    %1 = vector.load %arg3[%c0_1, %c0_2] : memref<3x128xf32, #tpu.memory_space<vmem>>, vector<3x128xf32>
    %c0_3 = arith.constant 0 : index
    %c0_4 = arith.constant 0 : index
    %2 = vector.load %arg4[%c0_3, %c0_4] : memref<1x128xf32, #tpu.memory_space<vmem>>, vector<1x128xf32>
    %c0_5 = arith.constant 0 : index
    %c0_6 = arith.constant 0 : index
    %3 = vector.load %arg5[%c0_5, %c0_6] : memref<1x128xf32, #tpu.memory_space<vmem>>, vector<1x128xf32>
    %c0_7 = arith.constant 0 : index
    %c0_8 = arith.constant 0 : index
    %c0_9 = arith.constant 0 : index
    %4 = vector.load %arg2[%c0_7, %c0_8, %c0_9] : memref<3x640x128xbf16, #tpu.memory_space<vmem>>, vector<1x640x128xbf16>
    %5 = vector.shape_cast %4 : vector<1x640x128xbf16> to vector<640x128xbf16>
    %cst = arith.constant dense<0.000000e+00> : vector<224x128xf32>
    %6 = tpu.matmul %0, %5, %cst {dimension_numbers = #tpu.dot_dimension_numbers<[1], [0], [0], [1], [0, 0, 1, 1], [], []>} : vector<224x640xbf16>, vector<640x128xbf16>, vector<224x128xf32> -> vector<224x128xf32>
    %7 = vector.extract_strided_slice %6 {offsets = [0, 0], sizes = [49, 128], strides = [1, 1]} : vector<224x128xf32> to vector<49x128xf32>
    %cst_10 = arith.constant dense<0xFF800000> : vector<128xf32>
    %8 = vector.multi_reduction <maximumf>, %7, %cst_10 [0] : vector<49x128xf32> to vector<128xf32>
    %9 = vector.shape_cast %8 : vector<128xf32> to vector<1x128xf32>
    %10 = vector.extract_strided_slice %6 {offsets = [56, 0], sizes = [49, 128], strides = [1, 1]} : vector<224x128xf32> to vector<49x128xf32>
    %cst_11 = arith.constant dense<0xFF800000> : vector<128xf32>
    %11 = vector.multi_reduction <maximumf>, %10, %cst_11 [0] : vector<49x128xf32> to vector<128xf32>
    %12 = vector.shape_cast %11 : vector<128xf32> to vector<1x128xf32>
    %13 = vector.extract_strided_slice %6 {offsets = [112, 0], sizes = [49, 128], strides = [1, 1]} : vector<224x128xf32> to vector<49x128xf32>
    %cst_12 = arith.constant dense<0xFF800000> : vector<128xf32>
    %14 = vector.multi_reduction <maximumf>, %13, %cst_12 [0] : vector<49x128xf32> to vector<128xf32>
    %15 = vector.shape_cast %14 : vector<128xf32> to vector<1x128xf32>
    %16 = vector.extract_strided_slice %6 {offsets = [168, 0], sizes = [49, 128], strides = [1, 1]} : vector<224x128xf32> to vector<49x128xf32>
    %cst_13 = arith.constant dense<0xFF800000> : vector<128xf32>
    %17 = vector.multi_reduction <maximumf>, %16, %cst_13 [0] : vector<49x128xf32> to vector<128xf32>
    %18 = vector.shape_cast %17 : vector<128xf32> to vector<1x128xf32>
    %19 = tpu.concatenate %9, %12, %15, %18 in 0 : vector<1x128xf32>, vector<1x128xf32>, vector<1x128xf32>, vector<1x128xf32> -> vector<4x128xf32>
    %20 = vector.extract_strided_slice %1 {offsets = [0, 0], sizes = [1, 128], strides = [1, 1]} : vector<3x128xf32> to vector<1x128xf32>
    %21 = vector.broadcast %20 : vector<1x128xf32> to vector<4x128xf32>
    %22 = arith.addf %19, %21 : vector<4x128xf32>
    %cst_14 = arith.constant 0.000000e+00 : f32
    %23 = vector.broadcast %cst_14 : f32 to vector<4x128xf32>
    %24 = arith.maximumf %22, %23 : vector<4x128xf32>
    %25 = vector.broadcast %2 : vector<1x128xf32> to vector<4x128xf32>
    %26 = arith.mulf %24, %25 : vector<4x128xf32>
    %27 = vector.broadcast %3 : vector<1x128xf32> to vector<4x128xf32>
    %28 = arith.addf %26, %27 : vector<4x128xf32>
    %c1 = arith.constant 1 : index
    %c0_15 = arith.constant 0 : index
    %c0_16 = arith.constant 0 : index
    %29 = vector.load %arg2[%c1, %c0_15, %c0_16] : memref<3x640x128xbf16, #tpu.memory_space<vmem>>, vector<1x640x128xbf16>
    %30 = vector.shape_cast %29 : vector<1x640x128xbf16> to vector<640x128xbf16>
    %cst_17 = arith.constant dense<0.000000e+00> : vector<224x128xf32>
    %31 = tpu.matmul %0, %30, %cst_17 {dimension_numbers = #tpu.dot_dimension_numbers<[1], [0], [0], [1], [0, 0, 1, 1], [], []>} : vector<224x640xbf16>, vector<640x128xbf16>, vector<224x128xf32> -> vector<224x128xf32>
    %32 = vector.extract_strided_slice %31 {offsets = [0, 0], sizes = [41, 128], strides = [1, 1]} : vector<224x128xf32> to vector<41x128xf32>
    %cst_18 = arith.constant dense<0xFF800000> : vector<128xf32>
    %33 = vector.multi_reduction <maximumf>, %32, %cst_18 [0] : vector<41x128xf32> to vector<128xf32>
    %34 = vector.shape_cast %33 : vector<128xf32> to vector<1x128xf32>
    %35 = vector.extract_strided_slice %31 {offsets = [56, 0], sizes = [41, 128], strides = [1, 1]} : vector<224x128xf32> to vector<41x128xf32>
    %cst_19 = arith.constant dense<0xFF800000> : vector<128xf32>
    %36 = vector.multi_reduction <maximumf>, %35, %cst_19 [0] : vector<41x128xf32> to vector<128xf32>
    %37 = vector.shape_cast %36 : vector<128xf32> to vector<1x128xf32>
    %38 = vector.extract_strided_slice %31 {offsets = [112, 0], sizes = [41, 128], strides = [1, 1]} : vector<224x128xf32> to vector<41x128xf32>
    %cst_20 = arith.constant dense<0xFF800000> : vector<128xf32>
    %39 = vector.multi_reduction <maximumf>, %38, %cst_20 [0] : vector<41x128xf32> to vector<128xf32>
    %40 = vector.shape_cast %39 : vector<128xf32> to vector<1x128xf32>
    %41 = vector.extract_strided_slice %31 {offsets = [168, 0], sizes = [41, 128], strides = [1, 1]} : vector<224x128xf32> to vector<41x128xf32>
    %cst_21 = arith.constant dense<0xFF800000> : vector<128xf32>
    %42 = vector.multi_reduction <maximumf>, %41, %cst_21 [0] : vector<41x128xf32> to vector<128xf32>
    %43 = vector.shape_cast %42 : vector<128xf32> to vector<1x128xf32>
    %44 = tpu.concatenate %34, %37, %40, %43 in 0 : vector<1x128xf32>, vector<1x128xf32>, vector<1x128xf32>, vector<1x128xf32> -> vector<4x128xf32>
    %45 = vector.extract_strided_slice %1 {offsets = [1, 0], sizes = [1, 128], strides = [1, 1]} : vector<3x128xf32> to vector<1x128xf32>
    %46 = vector.broadcast %45 : vector<1x128xf32> to vector<4x128xf32>
    %47 = arith.addf %44, %46 : vector<4x128xf32>
    %cst_22 = arith.constant 0.000000e+00 : f32
    %48 = vector.broadcast %cst_22 : f32 to vector<4x128xf32>
    %49 = arith.maximumf %47, %48 : vector<4x128xf32>
    %50 = vector.broadcast %2 : vector<1x128xf32> to vector<4x128xf32>
    %51 = arith.mulf %49, %50 : vector<4x128xf32>
    %52 = vector.broadcast %3 : vector<1x128xf32> to vector<4x128xf32>
    %53 = arith.addf %51, %52 : vector<4x128xf32>
    %c2 = arith.constant 2 : index
    %c0_23 = arith.constant 0 : index
    %c0_24 = arith.constant 0 : index
    %54 = vector.load %arg2[%c2, %c0_23, %c0_24] : memref<3x640x128xbf16, #tpu.memory_space<vmem>>, vector<1x640x128xbf16>
    %55 = vector.shape_cast %54 : vector<1x640x128xbf16> to vector<640x128xbf16>
    %cst_25 = arith.constant dense<0.000000e+00> : vector<224x128xf32>
    %56 = tpu.matmul %0, %55, %cst_25 {dimension_numbers = #tpu.dot_dimension_numbers<[1], [0], [0], [1], [0, 0, 1, 1], [], []>} : vector<224x640xbf16>, vector<640x128xbf16>, vector<224x128xf32> -> vector<224x128xf32>
    %57 = vector.extract_strided_slice %56 {offsets = [0, 0], sizes = [33, 128], strides = [1, 1]} : vector<224x128xf32> to vector<33x128xf32>
    %cst_26 = arith.constant dense<0xFF800000> : vector<128xf32>
    %58 = vector.multi_reduction <maximumf>, %57, %cst_26 [0] : vector<33x128xf32> to vector<128xf32>
    %59 = vector.shape_cast %58 : vector<128xf32> to vector<1x128xf32>
    %60 = vector.extract_strided_slice %56 {offsets = [56, 0], sizes = [33, 128], strides = [1, 1]} : vector<224x128xf32> to vector<33x128xf32>
    %cst_27 = arith.constant dense<0xFF800000> : vector<128xf32>
    %61 = vector.multi_reduction <maximumf>, %60, %cst_27 [0] : vector<33x128xf32> to vector<128xf32>
    %62 = vector.shape_cast %61 : vector<128xf32> to vector<1x128xf32>
    %63 = vector.extract_strided_slice %56 {offsets = [112, 0], sizes = [33, 128], strides = [1, 1]} : vector<224x128xf32> to vector<33x128xf32>
    %cst_28 = arith.constant dense<0xFF800000> : vector<128xf32>
    %64 = vector.multi_reduction <maximumf>, %63, %cst_28 [0] : vector<33x128xf32> to vector<128xf32>
    %65 = vector.shape_cast %64 : vector<128xf32> to vector<1x128xf32>
    %66 = vector.extract_strided_slice %56 {offsets = [168, 0], sizes = [33, 128], strides = [1, 1]} : vector<224x128xf32> to vector<33x128xf32>
    %cst_29 = arith.constant dense<0xFF800000> : vector<128xf32>
    %67 = vector.multi_reduction <maximumf>, %66, %cst_29 [0] : vector<33x128xf32> to vector<128xf32>
    %68 = vector.shape_cast %67 : vector<128xf32> to vector<1x128xf32>
    %69 = tpu.concatenate %59, %62, %65, %68 in 0 : vector<1x128xf32>, vector<1x128xf32>, vector<1x128xf32>, vector<1x128xf32> -> vector<4x128xf32>
    %70 = vector.extract_strided_slice %1 {offsets = [2, 0], sizes = [1, 128], strides = [1, 1]} : vector<3x128xf32> to vector<1x128xf32>
    %71 = vector.broadcast %70 : vector<1x128xf32> to vector<4x128xf32>
    %72 = arith.addf %69, %71 : vector<4x128xf32>
    %cst_30 = arith.constant 0.000000e+00 : f32
    %73 = vector.broadcast %cst_30 : f32 to vector<4x128xf32>
    %74 = arith.maximumf %72, %73 : vector<4x128xf32>
    %75 = vector.broadcast %2 : vector<1x128xf32> to vector<4x128xf32>
    %76 = arith.mulf %74, %75 : vector<4x128xf32>
    %77 = vector.broadcast %3 : vector<1x128xf32> to vector<4x128xf32>
    %78 = arith.addf %76, %77 : vector<4x128xf32>
    %79 = tpu.concatenate %28, %53, %78 in 1 : vector<4x128xf32>, vector<4x128xf32>, vector<4x128xf32> -> vector<4x384xf32>
    %80 = arith.truncf %79 : vector<4x384xf32> to vector<4x384xbf16>
    %c0_31 = arith.constant 0 : index
    %c0_32 = arith.constant 0 : index
    %81 = vector.load %arg6[%c0_31, %c0_32] : memref<384x512xbf16, #tpu.memory_space<vmem>>, vector<384x512xbf16>
    %cst_33 = arith.constant dense<0.000000e+00> : vector<4x512xf32>
    %82 = tpu.matmul %80, %81, %cst_33 {dimension_numbers = #tpu.dot_dimension_numbers<[1], [0], [0], [1], [0, 0, 1, 1], [], []>} : vector<4x384xbf16>, vector<384x512xbf16>, vector<4x512xf32> -> vector<4x512xf32>
    %c0_34 = arith.constant 0 : index
    %c0_35 = arith.constant 0 : index
    %83 = vector.load %arg7[%c0_34, %c0_35] : memref<1x512xf32, #tpu.memory_space<vmem>>, vector<1x512xf32>
    %84 = vector.broadcast %83 : vector<1x512xf32> to vector<4x512xf32>
    %85 = arith.mulf %82, %84 : vector<4x512xf32>
    %c0_36 = arith.constant 0 : index
    %c0_37 = arith.constant 0 : index
    %86 = vector.load %arg8[%c0_36, %c0_37] : memref<1x512xf32, #tpu.memory_space<vmem>>, vector<1x512xf32>
    %87 = vector.broadcast %86 : vector<1x512xf32> to vector<4x512xf32>
    %88 = arith.addf %85, %87 : vector<4x512xf32>
    %cst_38 = arith.constant 0.000000e+00 : f32
    %89 = vector.broadcast %cst_38 : f32 to vector<4x512xf32>
    %90 = arith.maximumf %88, %89 : vector<4x512xf32>
    %91 = arith.truncf %90 : vector<4x512xf32> to vector<4x512xbf16>
    %c0_39 = arith.constant 0 : index
    %c0_40 = arith.constant 0 : index
    %92 = vector.load %arg9[%c0_39, %c0_40] : memref<512x512xbf16, #tpu.memory_space<vmem>>, vector<512x512xbf16>
    %cst_41 = arith.constant dense<0.000000e+00> : vector<4x512xf32>
    %93 = tpu.matmul %91, %92, %cst_41 {dimension_numbers = #tpu.dot_dimension_numbers<[1], [0], [0], [1], [0, 0, 1, 1], [], []>} : vector<4x512xbf16>, vector<512x512xbf16>, vector<4x512xf32> -> vector<4x512xf32>
    %c0_42 = arith.constant 0 : index
    %c0_43 = arith.constant 0 : index
    %94 = vector.load %arg10[%c0_42, %c0_43] : memref<1x512xf32, #tpu.memory_space<vmem>>, vector<1x512xf32>
    %95 = vector.broadcast %94 : vector<1x512xf32> to vector<4x512xf32>
    %96 = arith.mulf %93, %95 : vector<4x512xf32>
    %c0_44 = arith.constant 0 : index
    %c0_45 = arith.constant 0 : index
    %97 = vector.load %arg11[%c0_44, %c0_45] : memref<1x512xf32, #tpu.memory_space<vmem>>, vector<1x512xf32>
    %98 = vector.broadcast %97 : vector<1x512xf32> to vector<4x512xf32>
    %99 = arith.addf %96, %98 : vector<4x512xf32>
    %cst_46 = arith.constant 0.000000e+00 : f32
    %100 = vector.broadcast %cst_46 : f32 to vector<4x512xf32>
    %101 = arith.maximumf %99, %100 : vector<4x512xf32>
    %c0_47 = arith.constant 0 : index
    %c0_48 = arith.constant 0 : index
    %102 = vector.load %arg12[%c0_47, %c0_48] : memref<4x512xf32, #tpu.memory_space<vmem>>, vector<4x512xf32>
    tpu.vector_store %arg12[%c0_47, %c0_48], %101 {strides = array<i32>} : memref<4x512xf32, #tpu.memory_space<vmem>>, vector<4x512xf32>,
    return
  }
  func.func @transform_0(%arg0: i32) -> (i32, i32) {
    %c0_i32 = arith.constant 0 : i32
    %c0_i32_0 = arith.constant 0 : i32
    %c0_i32_1 = arith.constant 0 : i32
    return %c0_i32, %c0_i32_0 : i32, i32
  }
  func.func @transform_1(%arg0: i32) -> (i32, i32, i32) {
    %c0_i32 = arith.constant 0 : i32
    %c0_i32_0 = arith.constant 0 : i32
    %c0_i32_1 = arith.constant 0 : i32
    %c0_i32_2 = arith.constant 0 : i32
    return %c0_i32, %c0_i32_0, %c0_i32_1 : i32, i32, i32
  }
  func.func @transform_2(%arg0: i32) -> (i32, i32) {
    %c0_i32 = arith.constant 0 : i32
    %c0_i32_0 = arith.constant 0 : i32
    %c0_i32_1 = arith.constant 0 : i32
    return %c0_i32, %c0_i32_0 : i32, i32
  }
  func.func @transform_3(%arg0: i32) -> (i32, i32) {
    %c0_i32 = arith.constant 0 : i32
    %c0_i32_0 = arith.constant 0 : i32
    %c0_i32_1 = arith.constant 0 : i32
    return %c0_i32, %c0_i32_0 : i32, i32
  }
  func.func @transform_4(%arg0: i32) -> (i32, i32) {
    %c0_i32 = arith.constant 0 : i32
    %c0_i32_0 = arith.constant 0 : i32
    %c0_i32_1 = arith.constant 0 : i32
    return %c0_i32, %c0_i32_0 : i32, i32
  }
  func.func @transform_5(%arg0: i32) -> (i32, i32) {
    %c0_i32 = arith.constant 0 : i32
    %c0_i32_0 = arith.constant 0 : i32
    %c0_i32_1 = arith.constant 0 : i32
    return %c0_i32, %c0_i32_0 : i32, i32
  }
  func.func @transform_6(%arg0: i32) -> (i32, i32) {
    %c0_i32 = arith.constant 0 : i32
    %c0_i32_0 = arith.constant 0 : i32
    %c0_i32_1 = arith.constant 0 : i32
    return %c0_i32, %c0_i32_0 : i32, i32
  }
  func.func @transform_7(%arg0: i32) -> (i32, i32) {
    %c0_i32 = arith.constant 0 : i32
    %c0_i32_0 = arith.constant 0 : i32
    %c0_i32_1 = arith.constant 0 : i32
    return %c0_i32, %c0_i32_0 : i32, i32
  }
  func.func @transform_8(%arg0: i32) -> (i32, i32) {
    %c0_i32 = arith.constant 0 : i32
    %c0_i32_0 = arith.constant 0 : i32
    %c0_i32_1 = arith.constant 0 : i32
    return %c0_i32, %c0_i32_0 : i32, i32
  }
  func.func @transform_9(%arg0: i32) -> (i32, i32) {
    %c0_i32 = arith.constant 0 : i32
    %c0_i32_0 = arith.constant 0 : i32
    %c0_i32_1 = arith.constant 0 : i32
    return %c0_i32, %c0_i32_0 : i32, i32
  }
  func.func @transform_10(%arg0: i32) -> (i32, i32) {
    %c0_i32 = arith.constant 0 : i32
    %c0_i32_0 = arith.constant 0 : i32
    %c0_i32_1 = arith.constant 0 : i32
    return %c0_i32, %c0_i32_0 : i32, i32
  }
  func.func @transform_11(%arg0: i32) -> (i32, i32) {
    %c0_i32 = arith.constant 0 : i32
    %c0_i32_0 = arith.constant 0 : i32
    %c0_i32_1 = arith.constant 0 : i32
    return %c0_i32, %c0_i32_0 : i32, i32
  }
}

</mosaic_0001>

<bundles_post_ra>
// kernel: pssm_net_forward.1
= control target key start
LH: loop header
LB: loop body
LE: loop exit
PB: predicated region body
PF: predicated region fallthrough
CT: control target
= control target key end

     0   :  { %s8992_s0 = inlined_call_operand.vmem [shape: bf16[224,640], index: 0, kind: input, shape index: {}]   ;;  %s8993_s1 = inlined_call_operand.vmem [shape: bf16[3,640,128], index: 1, kind: input, shape index: {}]   ;;  %s8994_s2 = inlined_call_operand.vmem [shape: f32[3,128], index: 2, kind: input, shape index: {}]   ;;  %s8995_s3 = inlined_call_operand.vmem [shape: f32[1,128], index: 3, kind: input, shape index: {}]   ;;  %s8996_s4 = inlined_call_operand.vmem [shape: f32[1,128], index: 4, kind: input, shape index: {}]   ;;  %s8997_s5 = inlined_call_operand.vmem [shape: bf16[384,512], index: 5, kind: input, shape index: {}]   ;;  %s8998_s6 = inlined_call_operand.vmem [shape: f32[1,512], index: 6, kind: input, shape index: {}]   ;;  %s8999_s7 = inlined_call_operand.vmem [shape: f32[1,512], index: 7, kind: input, shape index: {}]   ;;  %s9000_s8 = inlined_call_operand.vmem [shape: bf16[512,512], index: 8, kind: input, shape index: {}]   ;;  %s9001_s9 = inlined_call_operand.vmem [shape: f32[1,512], index: 9, kind: input, shape index: {}]   ;;  %s9002_s10 = inlined_call_operand.vmem [shape: f32[1,512], index: 10, kind: input, shape index: {}]   ;;  %s9003_s11 = inlined_call_operand.hbm [shape: f32[4,512], index: 11, kind: output, shape index: {}]  }
   0x1   :  { %v6137_v0 = vld [vmem:[%s8993_s1 + $0x40] sm:$0xff]   ;;  %v6139_v2 = vld [vmem:[%s8993_s1 + $0x48] sm:$0xff]   ;;  %v6141_v4 = vld [vmem:[%s8993_s1 + $0x50] sm:$0xff]  }
   0x2   :  { %v6138_v1 = vld [vmem:[%s8993_s1] sm:$0xff]   ;;  %5305 = vmatprep.subr.bf16.mxu0 %v6137_v0  ;;  %6103 = vmatprep.subr.bf16.mxu1 %v6137_v0  ;;  %v6140_v3 = vld [vmem:[%s8993_s1 + $0x8] sm:$0xff]   ;;  %v6142_v5 = vld [vmem:[%s8993_s1 + $0x10] sm:$0xff]  }
   0x3   :  { %5306 = vmatpush3.bf16.msra.mxu0 %v6138_v1  ;;  %6111 = vmatpush3.bf16.msra.mxu1 %v6138_v1  ;;  %v6143_v6 = vld [vmem:[%s8993_s1 + $0x58] sm:$0xff]   ;;  %v6145_v8 = vld [vmem:[%s8993_s1 + $0x60] sm:$0xff]   ;;  %v6147_v10 = vld [vmem:[%s8993_s1 + $0x68] sm:$0xff]  }
   0x4   :  { %5307 = vmatprep.subr.bf16.mxu0 %v6139_v2  ;;  %6104 = vmatprep.subr.bf16.mxu1 %v6139_v2  ;;  %v6144_v7 = vld [vmem:[%s8993_s1 + $0x18] sm:$0xff]   ;;  %v6146_v9 = vld [vmem:[%s8993_s1 + $0x20] sm:$0xff]   ;;  %v6155_v12 = vld [vmem:[%s8992_s0 + $0x194] ss:$20 sps:$4 sm:$0xff]  }
   0x5   :  { %v6153_v11 = vld [vmem:[%s8992_s0 + $0x4] ss:$20 sps:$4 sm:$0xff]   ;;  %v6148_v13 = vld [vmem:[%s8993_s1 + $0x28] sm:$0xff]   ;;  %v6149_v14 = vld [vmem:[%s8993_s1 + $0x70] sm:$0xff]   ;;  %923 = vmatprep.mubr.bf16.mxu1 %v6155_v12 }
   0x6   :  { %843 = vmatprep.mubr.bf16.mxu0 %v6153_v11  ;;  %v6150_v15 = vld [vmem:[%s8993_s1 + $0x30] sm:$0xff]   ;;  %v6151_v16 = vld [vmem:[%s8993_s1 + $0x78] sm:$0xff]   ;;  %v6159_v18 = vld [vmem:[%s8993_s1 + $0xc0] sm:$0xff]  }
   0x7   :  { %5308 = vmatpush3.bf16.msra.mxu0 %v6140_v3  ;;  %6112 = vmatpush3.bf16.msra.mxu1 %v6140_v3  ;;  %v6152_v17 = vld [vmem:[%s8993_s1 + $0x38] sm:$0xff]   ;;  %v6157_v19 = vld [vmem:[%s8992_s0] ss:$20 sps:$4 sm:$0xff]   ;;  %v6158_v21 = vld [vmem:[%s8992_s0 + $0x190] ss:$20 sps:$4 sm:$0xff]  }
   0x8   :  { %5309 = vmatprep.subr.bf16.mxu0 %v6141_v4  ;;  %6105 = vmatprep.subr.bf16.mxu1 %v6141_v4  ;;  %v6162_v20 = vld [vmem:[%s8993_s1 + $0x100] sm:$0xff]   ;;  %v6161_v23 = vld [vmem:[%s8993_s1 + $0xc8] sm:$0xff]   ;;  %v6166_v25 = vld [vmem:[%s8992_s0 + $0x1bc] ss:$20 sps:$4 sm:$0xff]  }
   0x9   :  { %v6160_v22 = vld [vmem:[%s8993_s1 + $0x80] sm:$0xff]   ;;  %v6174_v26 = vld [vmem:[%s8993_s1 + $0x108] sm:$0xff]   ;;  %v6170_v29 = vld [vmem:[%s8993_s1 + $0xd0] sm:$0xff]  }
   0xa   :  { %v6164_v24 = vld [vmem:[%s8992_s0 + $0x2c] ss:$20 sps:$4 sm:$0xff]   ;;  %v6168_v28 = vld [vmem:[%s8992_s0 + $0x28] ss:$20 sps:$4 sm:$0xff]   ;;  %v6171_v31 = vld [vmem:[%s8993_s1 + $0x90] sm:$0xff]  }
   0xb   :  { %5310 = vmatpush3.bf16.msra.mxu0 %v6142_v5  ;;  %6113 = vmatpush3.bf16.msra.mxu1 %v6142_v5  ;;  %v6163_v27 = vld [vmem:[%s8993_s1 + $0x88] sm:$0xff]   ;;  %v6172_v33 = vld [vmem:[%s8993_s1 + $0xd8] sm:$0xff]   ;;  %v6192_v35 = vld [vmem:[%s8993_s1 + $0x110] sm:$0xff]  }
   0xc   :  { %5311 = vmatprep.subr.bf16.mxu0 %v6143_v6  ;;  %6106 = vmatprep.subr.bf16.mxu1 %v6143_v6  ;;  %v6169_v30 = vld [vmem:[%s8992_s0 + $0x1b8] ss:$20 sps:$4 sm:$0xff]   ;;  %v6175_v32 = vld [vmem:[%s8992_s0 + $0x54] ss:$20 sps:$4 sm:$0xff]   ;;  %v6179_v37 = vld [vmem:[%s8992_s0 + $0x50] ss:$20 sps:$4 sm:$0xff]  }
   0xd   :  { %v6177_v34 = vld [vmem:[%s8992_s0 + $0x1e4] ss:$20 sps:$4 sm:$0xff]   ;;  %v6180_v39 = vld [vmem:[%s8992_s0 + $0x1e0] ss:$20 sps:$4 sm:$0xff]   ;;  %v6183_v41 = vld [vmem:[%s8993_s1 + $0xe8] sm:$0xff]  }
   0xe   :  { %v6173_v36 = vld [vmem:[%s8993_s1 + $0x98] sm:$0xff]   ;;  %v6181_v38 = vld [vmem:[%s8993_s1 + $0xe0] sm:$0xff]   ;;  %v6184_v44 = vld [vmem:[%s8993_s1 + $0xa8] sm:$0xff]  }
   0xf   :  { %5312 = vmatpush3.bf16.msra.mxu0 %v6144_v7  ;;  %6114 = vmatpush3.bf16.msra.mxu1 %v6144_v7  ;;  %v6182_v40 = vld [vmem:[%s8993_s1 + $0xa0] sm:$0xff]   ;;  %v6185_v42 = vld [vmem:[%s8992_s0 + $0x7c] ss:$20 sps:$4 sm:$0xff]   ;;  %v6189_v47 = vld [vmem:[%s8992_s0 + $0x78] ss:$20 sps:$4 sm:$0xff]  }
  0x10   :  { %5313 = vmatprep.subr.bf16.mxu0 %v6145_v8  ;;  %6107 = vmatprep.subr.bf16.mxu1 %v6145_v8  ;;  %v6187_v43 = vld [vmem:[%s8992_s0 + $0x20c] ss:$20 sps:$4 sm:$0xff]   ;;  %v6204_v45 = vld [vmem:[%s8993_s1 + $0x118] sm:$0xff]   ;;  %v6191_v46 = vld [vmem:[%s8993_s1 + $0xf0] sm:$0xff]  }
  0x11   :  { %v6190_v48 = vld [vmem:[%s8992_s0 + $0x208] ss:$20 sps:$4 sm:$0xff]   ;;  %v6193_v49 = vld [vmem:[%s8993_s1 + $0xb0] sm:$0xff]   ;;  %v6211_v51 = vld [vmem:[%s8993_s1 + $0x120] sm:$0xff]  }
  0x12   :  { %v6194_v50 = vld [vmem:[%s8993_s1 + $0xf8] sm:$0xff]   ;;  %v7009_v53 = vld [vmem:[%s8992_s0 + $0xc] ss:$20 sps:$4 sm:$0xff]   ;;  %v7038_v61 = vld [vmem:[%s8992_s0 + $0x34] ss:$20 sps:$4 sm:$0xff]  }
  0x13   :  { %5314 = vmatpush3.bf16.msra.mxu0 %v6146_v9  ;;  %6115 = vmatpush3.bf16.msra.mxu1 %v6146_v9  ;;  %v6196_v52 = vld [vmem:[%s8992_s0 + $0xa4] ss:$20 sps:$4 sm:$0xff]   ;;  %v7020_v56 = vld [vmem:[%s8992_s0 + $0x8] ss:$20 sps:$4 sm:$0xff]   ;;  %v6201_v58 = vld [vmem:[%s8992_s0 + $0xa0] ss:$20 sps:$4 sm:$0xff]  }
  0x14   :  { %5315 = vmatprep.subr.bf16.mxu0 %v6147_v10  ;;  %6108 = vmatprep.subr.bf16.mxu1 %v6147_v10  ;;  %v6195_v54 = vld [vmem:[%s8993_s1 + $0xb8] sm:$0xff]   ;;  %v6202_v55 = vld [vmem:[%s8993_s1 + $0x180] sm:$0xff]   ;;  %v6220_v57 = vld [vmem:[%s8993_s1 + $0x128] sm:$0xff]  }
  0x15   :  { %v6203_v59 = vld [vmem:[%s8993_s1 + $0x140] sm:$0xff]   ;;  %v6212_v62 = vld [vmem:[%s8993_s1 + $0x188] sm:$0xff]   ;;  %v6227_v0 = vld [vmem:[%s8993_s1 + $0x190] sm:$0xff]  }
  0x16   :  { %v6205_v60 = vld [vmem:[%s8992_s0 + $0xcc] ss:$20 sps:$4 sm:$0xff]   ;;  %v6209_v1 = vld [vmem:[%s8992_s0 + $0xc8] ss:$20 sps:$4 sm:$0xff]   ;;  %v6235_v2 = vld [vmem:[%s8993_s1 + $0x130] sm:$0xff]  }
  0x17   :  { %5316 = vmatpush3.bf16.msra.mxu0 %v6148_v13  ;;  %6116 = vmatpush3.bf16.msra.mxu1 %v6148_v13  ;;  %v6217_v63 = vld [vmem:[%s8993_s1 + $0x148] sm:$0xff]   ;;  %v7060_v3 = vld [vmem:[%s8992_s0 + $0x30] ss:$20 sps:$4 sm:$0xff]   ;;  %v6242_v7 = vld [vmem:[%s8993_s1 + $0x138] sm:$0xff]  }
  0x18   :  { %5317 = vmatprep.subr.bf16.mxu0 %v6149_v14  ;;  %6109 = vmatprep.subr.bf16.mxu1 %v6149_v14  ;;  %v6213_v4 = vld [vmem:[%s8992_s0 + $0xf4] ss:$20 sps:$4 sm:$0xff]   ;;  %v7068_v5 = vld [vmem:[%s8992_s0 + $0x5c] ss:$20 sps:$4 sm:$0xff]   ;;  %v7087_v10 = vld [vmem:[%s8992_s0 + $0x58] ss:$20 sps:$4 sm:$0xff]  }
  0x19   :  { %v6228_v6 = vld [vmem:[%s8993_s1 + $0x150] sm:$0xff]   ;;  %v6243_v8 = vld [vmem:[%s8993_s1 + $0x198] sm:$0xff]   ;;  %v6250_v13 = vld [vmem:[%s8993_s1 + $0x200] sm:$0xff]  }
  0x1a   :  { %v6218_v9 = vld [vmem:[%s8992_s0 + $0xf0] ss:$20 sps:$4 sm:$0xff]   ;;  %v6244_v11 = vld [vmem:[%s8993_s1 + $0x158] sm:$0xff]  }
  0x1b   :  { %5318 = vmatpush3.bf16.msra.mxu0 %v6150_v15  ;;  %6117 = vmatpush3.bf16.msra.mxu1 %v6150_v15  ;;  %v6221_v12 = vld [vmem:[%s8992_s0 + $0x11c] ss:$20 sps:$4 sm:$0xff]   ;;  %v7101_v14 = vld [vmem:[%s8992_s0 + $0x84] ss:$20 sps:$4 sm:$0xff]  }
  0x1c   :  { %5319 = vmatprep.subr.bf16.mxu0 %v6151_v16  ;;  %6110 = vmatprep.subr.bf16.mxu1 %v6151_v16  ;;  %v6225_v15 = vld [vmem:[%s8992_s0 + $0x118] ss:$20 sps:$4 sm:$0xff]   ;;  %v7111_v16 = vld [vmem:[%s8992_s0 + $0x80] ss:$20 sps:$4 sm:$0xff]  }
  0x1f   :  { %5320 = vmatpush3.bf16.msra.mxu0 %v6152_v17  ;;  %6118 = vmatpush3.bf16.msra.mxu1 %v6152_v17  ;;  %v6257_v17 = vld [vmem:[%s8993_s1 + $0x1a0] sm:$0xff]  }
  0x20   :  { %5405 = vmatprep.subr.bf16.mxu1 %v6159_v18  ;;  %5971 = vmatprep.subr.bf16.mxu0 %v6162_v20  ;;  %v6258_v18 = vld [vmem:[%s8993_s1 + $0x160] sm:$0xff]  }
  0x22   :  { %844 = vmatmul.mubr.bf16.vlgmr.msra.gmra.mrb[0].mxu0 %v6157_v19  ;;  %924 = vmatmul.mubr.bf16.vlgmr.msra.gmra.mrb[0].mxu1 %v6158_v21  ;;  %v6229_v19 = vld [vmem:[%s8992_s0 + $0x144] ss:$20 sps:$4 sm:$0xff]   ;;  %v6233_v21 = vld [vmem:[%s8992_s0 + $0x140] ss:$20 sps:$4 sm:$0xff]  }
  0x23   :  { %5406 = vmatpush3.bf16.msra.mxu1 %v6160_v22  ;;  %5972 = vmatpush3.bf16.msra.mxu0 %v6162_v20  ;;  %v7125_v20 = vld [vmem:[%s8992_s0 + $0xac] ss:$20 sps:$4 sm:$0xff]   ;;  %v7135_v22 = vld [vmem:[%s8992_s0 + $0xa8] ss:$20 sps:$4 sm:$0xff]  }
  0x24   :  { %5407 = vmatprep.subr.bf16.mxu1 %v6161_v23  ;;  %851 = vmatprep.mubr.bf16.mxu0 %v6164_v24  ;;  %v6268_v23 = vld [vmem:[%s8993_s1 + $0x1a8] sm:$0xff]  }
  0x25   :  { %931 = vmatprep.mubr.bf16.mxu1 %v6166_v25  ;;  %5973 = vmatprep.subr.bf16.mxu0 %v6174_v26  ;;  %v6236_v24 = vld [vmem:[%s8992_s0 + $0x16c] ss:$20 sps:$4 sm:$0xff]   ;;  %v7146_v25 = vld [vmem:[%s8992_s0 + $0xd4] ss:$20 sps:$4 sm:$0xff]  }
  0x27   :  { %5408 = vmatpush3.bf16.msra.mxu1 %v6163_v27  ;;  %5974 = vmatpush3.bf16.msra.mxu0 %v6174_v26  ;;  %v6272_v26 = vld [vmem:[%s8993_s1 + $0x168] sm:$0xff]  }
  0x28   :  { %5409 = vmatprep.subr.bf16.mxu1 %v6170_v29  ;;  %5975 = vmatprep.subr.bf16.mxu0 %v6192_v35  ;;  %v6240_v27 = vld [vmem:[%s8992_s0 + $0x168] ss:$20 sps:$4 sm:$0xff]  }
  0x29   :  { %v7164_v29 = vld [vmem:[%s8992_s0 + $0xfc] ss:$20 sps:$4 sm:$0xff]  }
  0x2a   :  { %852 = vmatmul.mubr.bf16.gmra.mrb[4].mxu0 %v6168_v28  ;;  %932 = vmatmul.mubr.bf16.gmra.mrb[4].mxu1 %v6169_v30  ;;  %v7159_v28 = vld [vmem:[%s8992_s0 + $0xd0] ss:$20 sps:$4 sm:$0xff]  }
  0x2b   :  { %5410 = vmatpush3.bf16.msra.mxu1 %v6171_v31  ;;  %859 = vmatprep.mubr.bf16.mxu0 %v6175_v32  ;;  %v6247_v30 = vld [vmem:[%s8992_s0 + $0x10] ss:$20 sps:$4 sm:$0xff]  }
  0x2c   :  { %5411 = vmatprep.subr.bf16.mxu1 %v6172_v33  ;;  %939 = vmatprep.mubr.bf16.mxu1 %v6177_v34  ;;  %v6284_v31 = vld [vmem:[%s8993_s1 + $0x1b0] sm:$0xff]   ;;  %v7180_v33 = vld [vmem:[%s8992_s0 + $0xf8] ss:$20 sps:$4 sm:$0xff]  }
  0x2d   :  { %5976 = vmatpush3.bf16.msra.mxu0 %v6192_v35  ;;  %v6285_v32 = vld [vmem:[%s8993_s1 + $0x170] sm:$0xff]   ;;  %v6249_v34 = vld [vmem:[%s8992_s0 + $0x38] ss:$20 sps:$4 sm:$0xff]   ;;  %v6251_v35 = vld [vmem:[%s8993_s1 + $0x1c0] sm:$0xff]  }
  0x2e   :  { %5977 = vmatprep.subr.bf16.mxu0 %v6204_v45 }
  0x2f   :  { %5412 = vmatpush3.bf16.msra.mxu1 %v6173_v36  ;;  %v7191_v36 = vld [vmem:[%s8992_s0 + $0x124] ss:$20 sps:$4 sm:$0xff]  }
  0x30   :  { %5413 = vmatprep.subr.bf16.mxu1 %v6181_v38  ;;  %v6259_v38 = vld [vmem:[%s8993_s1 + $0x208] sm:$0xff]  }
  0x31   :  { %5978 = vmatpush3.bf16.msra.mxu0 %v6204_v45  ;;  %v6300_v45 = vld [vmem:[%s8993_s1 + $0x1b8] sm:$0xff]  }
  0x32   :  { %860 = vmatmul.mubr.bf16.gmra.mrb[8].mxu0 %v6179_v37  ;;  %940 = vmatmul.mubr.bf16.gmra.mrb[8].mxu1 %v6180_v39  ;;  %v6254_v37 = vld [vmem:[%s8992_s0 + $0x60] ss:$20 sps:$4 sm:$0xff]   ;;  %v6260_v39 = vld [vmem:[%s8993_s1 + $0x1c8] sm:$0xff]  }
  0x33   :  { %5414 = vmatpush3.bf16.msra.mxu1 %v6182_v40  ;;  %867 = vmatprep.mubr.bf16.mxu0 %v6185_v42  ;;  %v7207_v40 = vld [vmem:[%s8992_s0 + $0x120] ss:$20 sps:$4 sm:$0xff]  }
  0x34   :  { %5415 = vmatprep.subr.bf16.mxu1 %v6183_v41  ;;  %947 = vmatprep.mubr.bf16.mxu1 %v6187_v43  ;;  %v6256_v41 = vld [vmem:[%s8992_s0 + $0x88] ss:$20 sps:$4 sm:$0xff]   ;;  %v6266_v42 = vld [vmem:[%s8993_s1 + $0x210] sm:$0xff]   ;;  %v7218_v43 = vld [vmem:[%s8992_s0 + $0x14c] ss:$20 sps:$4 sm:$0xff]  }
  0x35   :  { %5979 = vmatprep.subr.bf16.mxu0 %v6211_v51 }
  0x36   :  { %5980 = vmatpush3.bf16.msra.mxu0 %v6211_v51  ;;  %v6276_v51 = vld [vmem:[%s8993_s1 + $0x1d8] sm:$0xff]  }
  0x37   :  { %5416 = vmatpush3.bf16.msra.mxu1 %v6184_v44  ;;  %5981 = vmatprep.subr.bf16.mxu0 %v6220_v57  ;;  %v6263_v44 = vld [vmem:[%s8992_s0 + $0xb0] ss:$20 sps:$4 sm:$0xff]  }
  0x38   :  { %5417 = vmatprep.subr.bf16.mxu1 %v6191_v46  ;;  %v6301_v46 = vld [vmem:[%s8993_s1 + $0x178] sm:$0xff]  }
  0x3a   :  { %868 = vmatmul.mubr.bf16.gmra.mrb[12].mxu0 %v6189_v47  ;;  %948 = vmatmul.mubr.bf16.gmra.mrb[12].mxu1 %v6190_v48  ;;  %v6267_v47 = vld [vmem:[%s8993_s1 + $0x1d0] sm:$0xff]   ;;  %v6275_v48 = vld [vmem:[%s8993_s1 + $0x218] sm:$0xff]  }
  0x3b   :  { %5418 = vmatpush3.bf16.msra.mxu1 %v6193_v49  ;;  %875 = vmatprep.mubr.bf16.mxu0 %v6196_v52  ;;  %v7240_v49 = vld [vmem:[%s8992_s0 + $0x148] ss:$20 sps:$4 sm:$0xff]  }
  0x3c   :  { %5419 = vmatprep.subr.bf16.mxu1 %v6194_v50  ;;  %988 = vmatprep.mubr.bf16.mxu1 %v7009_v53  ;;  %v6265_v50 = vld [vmem:[%s8992_s0 + $0xd8] ss:$20 sps:$4 sm:$0xff]   ;;  %v7251_v52 = vld [vmem:[%s8992_s0 + $0x174] ss:$20 sps:$4 sm:$0xff]  }
  0x3d   :  { %5982 = vmatpush3.bf16.msra.mxu0 %v6220_v57  ;;  %v6271_v57 = vld [vmem:[%s8992_s0 + $0x100] ss:$20 sps:$4 sm:$0xff]  }
  0x3e   :  { %5983 = vmatprep.subr.bf16.mxu0 %v6235_v2 }
  0x3f   :  { %5420 = vmatpush3.bf16.msra.mxu1 %v6195_v54  ;;  %v6282_v54 = vld [vmem:[%s8993_s1 + $0x220] sm:$0xff]  }
  0x40   :  { %5527 = vmatprep.subr.bf16.mxu1 %v6202_v55  ;;  %v7259_v55 = vld [vmem:[%s8993_s1 + $0x240] sm:$0xff]  }
  0x41   :  { %5984 = vmatpush3.bf16.msra.mxu0 %v6235_v2  ;;  %v6279_v2 = vld [vmem:[%s8992_s0 + $0x150] ss:$20 sps:$4 sm:$0xff]  }
  0x42   :  { %876 = vmatmul.mubr.bf16.gmra.mrb[16].mxu0 %v6201_v58  ;;  %989 = vmatmul.mubr.bf16.vlgmr.msra.gmra.mrb[16].mxu1 %v7020_v56  ;;  %v6283_v58 = vld [vmem:[%s8993_s1 + $0x1e0] sm:$0xff]  }
  0x43   :  { %5528 = vmatpush3.bf16.msra.mxu1 %v6203_v59  ;;  %883 = vmatprep.mubr.bf16.mxu0 %v6205_v60  ;;  %v6289_v59 = vld [vmem:[%s8993_s1 + $0x228] sm:$0xff]   ;;  %v7276_v60 = vld [vmem:[%s8992_s0 + $0x170] ss:$20 sps:$4 sm:$0xff]  }
  0x44   :  { %996 = vmatprep.mubr.bf16.mxu1 %v7038_v61  ;;  %5529 = vmatprep.subr.bf16.mxu1 %v6212_v62  ;;  %v6274_v62 = vld [vmem:[%s8992_s0 + $0x128] ss:$20 sps:$4 sm:$0xff]  }
  0x45   :  { %5985 = vmatprep.subr.bf16.mxu0 %v6242_v7 }
  0x46   :  { %5986 = vmatpush3.bf16.msra.mxu0 %v6242_v7  ;;  %v7306_v7 = vld [vmem:[%s8992_s0 + $0x198] ss:$20 sps:$4 sm:$0xff]  }
  0x47   :  { %5530 = vmatpush3.bf16.msra.mxu1 %v6217_v63  ;;  %5627 = vmatprep.subr.bf16.mxu0 %v6250_v13  ;;  %v6292_v63 = vld [vmem:[%s8993_s1 + $0x1e8] sm:$0xff]   ;;  %v6288_v13 = vld [vmem:[%s8992_s0 + $0x1a0] ss:$20 sps:$4 sm:$0xff]  }
  0x48   :  { %5531 = vmatprep.subr.bf16.mxu1 %v6227_v0  ;;  %v6293_v0 = vld [vmem:[%s8993_s1 + $0x230] sm:$0xff]  }
  0x4a   :  { %884 = vmatmul.mubr.bf16.gmra.mrb[20].mxu0 %v6209_v1  ;;  %997 = vmatmul.mubr.bf16.gmra.mrb[20].mxu1 %v7060_v3  ;;  %v7290_v1 = vld [vmem:[%s8992_s0 + $0x19c] ss:$20 sps:$4 sm:$0xff]  }
  0x4b   :  { %891 = vmatprep.mubr.bf16.mxu0 %v6213_v4  ;;  %1004 = vmatprep.mubr.bf16.mxu1 %v7068_v5  ;;  %v6297_v4 = vld [vmem:[%s8993_s1 + $0x1f0] sm:$0xff]  }
  0x4c   :  { %5532 = vmatpush3.bf16.msra.mxu1 %v6228_v6  ;;  %v6302_v6 = vld [vmem:[%s8993_s1 + $0x238] sm:$0xff]  }
  0x4d   :  { %5533 = vmatprep.subr.bf16.mxu1 %v6243_v8  ;;  %v6281_v8 = vld [vmem:[%s8992_s0 + $0x178] ss:$20 sps:$4 sm:$0xff]  }
  0x50   :  { %5534 = vmatpush3.bf16.msra.mxu1 %v6244_v11  ;;  %v6307_v11 = vld [vmem:[%s8993_s1 + $0x2c0] sm:$0xff]  }
  0x51   :  { %5535 = vmatprep.subr.bf16.mxu1 %v6257_v17  ;;  %v6291_v17 = vld [vmem:[%s8992_s0 + $0x1c8] ss:$20 sps:$4 sm:$0xff]  }
  0x52   :  { %892 = vmatmul.mubr.bf16.gmra.mrb[24].mxu0 %v6218_v9  ;;  %1005 = vmatmul.mubr.bf16.gmra.mrb[24].mxu1 %v7087_v10  ;;  %v6303_v9 = vld [vmem:[%s8993_s1 + $0x1f8] sm:$0xff]  }
  0x53   :  { %899 = vmatprep.mubr.bf16.mxu0 %v6221_v12  ;;  %1012 = vmatprep.mubr.bf16.mxu1 %v7101_v14  ;;  %v7320_v12 = vld [vmem:[%s8992_s0 + $0x1c4] ss:$20 sps:$4 sm:$0xff]  }
  0x54   :  { %5536 = vmatpush3.bf16.msra.mxu1 %v6258_v18  ;;  %v7338_v18 = vld [vmem:[%s8992_s0 + $0x1ec] ss:$20 sps:$4 sm:$0xff]  }
  0x55   :  { %5537 = vmatprep.subr.bf16.mxu1 %v6268_v23  ;;  %v6299_v23 = vld [vmem:[%s8992_s0 + $0x218] ss:$20 sps:$4 sm:$0xff]  }
  0x58   :  { %5538 = vmatpush3.bf16.msra.mxu1 %v6272_v26  ;;  %v7364_v26 = vld [vmem:[%s8992_s0 + $0x210] ss:$20 sps:$4 sm:$0xff]  }
  0x59   :  { %5539 = vmatprep.subr.bf16.mxu1 %v6284_v31  ;;  %v6313_v31 = vld [vmem:[%s8993_s1 + $0x2d0] sm:$0xff]  }
  0x5a   :  { %900 = vmatmul.mubr.bf16.gmra.mrb[28].mxu0 %v6225_v15  ;;  %1013 = vmatmul.mubr.bf16.gmra.mrb[28].mxu1 %v7111_v16  ;;  %v7330_v15 = vld [vmem:[%s8992_s0 + $0x1c0] ss:$20 sps:$4 sm:$0xff]  }
  0x5b   :  { %907 = vmatprep.mubr.bf16.mxu0 %v6229_v19  ;;  %1020 = vmatprep.mubr.bf16.mxu1 %v7125_v20  ;;  %v6296_v19 = vld [vmem:[%s8992_s0 + $0x1f0] ss:$20 sps:$4 sm:$0xff]  }
  0x5c   :  { %5540 = vmatpush3.bf16.msra.mxu1 %v6285_v32  ;;  %v7383_v32 = vld [vmem:[%s8992_s0 + $0x4] ss:$20 sps:$4 sm:$0xff]  }
  0x5d   :  { %5541 = vmatprep.subr.bf16.mxu1 %v6300_v45  ;;  %v7439_v45 = vld [vmem:[%s8992_s0 + $0x54] ss:$20 sps:$4 sm:$0xff]  }
  0x60   :  { %5542 = vmatpush3.bf16.msra.mxu1 %v6301_v46  ;;  %v6321_v46 = vld [vmem:[%s8993_s1 + $0x260] sm:$0xff]  }
  0x61   :  { %6015 = vmatprep.subr.bf16.mxu1 %v7259_v55 }
  0x62   :  { %908 = vmatmul.mubr.bf16.gmra.mrb[32].mxu0 %v6233_v21  ;;  %1021 = vmatmul.mubr.bf16.gmra.mrb[32].mxu1 %v7135_v22  ;;  %v7348_v21 = vld [vmem:[%s8992_s0 + $0x1e8] ss:$20 sps:$4 sm:$0xff]  }
  0x63   :  { %915 = vmatprep.mubr.bf16.mxu0 %v6236_v24  ;;  %1028 = vmatprep.mubr.bf16.mxu1 %v7146_v25  ;;  %v7356_v24 = vld [vmem:[%s8992_s0 + $0x214] ss:$20 sps:$4 sm:$0xff]  }
  0x6a   :  { %916 = vmatmul.mubr.bf16.gmra.mrb[36].mxu0 %v6240_v27  ;;  %1029 = vmatmul.mubr.bf16.gmra.mrb[36].mxu1 %v7159_v28  ;;  %v6308_v27 = vld [vmem:[%s8993_s1 + $0x280] sm:$0xff]  }
  0x6b   :  { %1036 = vmatprep.mubr.bf16.mxu1 %v7164_v29  ;;  %5987 = vmatprep.mubr.bf16.mxu0 %v6247_v30  ;;  %v6310_v30 = vld [vmem:[%s8993_s1 + $0x2c8] sm:$0xff]  }
  0x72   :  { %1037 = vmatmul.mubr.bf16.gmra.mrb[40].mxu1 %v7180_v33  ;;  %5988 = vmatmul.mubr.bf16.vlgmr.msra.gmra.mrb[40].mxu0 %v6249_v34  ;;  %v6314_v34 = vld [vmem:[%s8993_s1 + $0x290] sm:$0xff]  }
  0x73   :  { %5628 = vmatpush3.bf16.msra.mxu0 %v6251_v35  ;;  %1044 = vmatprep.mubr.bf16.mxu1 %v7191_v36  ;;  %v6316_v35 = vld [vmem:[%s8993_s1 + $0x2d8] sm:$0xff]  }
  0x74   :  { %5991 = vmatprep.mubr.bf16.mxu0 %v6254_v37  ;;  %5629 = vmatprep.subr.bf16.mxu0 %v6259_v38  ;;  %v7399_v37 = vld [vmem:[%s8992_s0] ss:$20 sps:$4 sm:$0xff]  }
  0x75   :  { %v7410_v38 = vld [vmem:[%s8992_s0 + $0x2c] ss:$20 sps:$4 sm:$0xff]  }
  0x77   :  { %5630 = vmatpush3.bf16.msra.mxu0 %v6260_v39  ;;  %v6317_v39 = vld [vmem:[%s8993_s1 + $0x298] sm:$0xff]  }
  0x78   :  { %5631 = vmatprep.subr.bf16.mxu0 %v6266_v42  ;;  %v6320_v42 = vld [vmem:[%s8993_s1 + $0x2a0] sm:$0xff]  }
  0x7a   :  { %1045 = vmatmul.mubr.bf16.gmra.mrb[44].mxu1 %v7207_v40  ;;  %5992 = vmatmul.mubr.bf16.gmra.mrb[44].mxu0 %v6256_v41  ;;  %v6319_v41 = vld [vmem:[%s8993_s1 + $0x2e0] sm:$0xff]  }
  0x7b   :  { %1052 = vmatprep.mubr.bf16.mxu1 %v7218_v43  ;;  %5995 = vmatprep.mubr.bf16.mxu0 %v6263_v44  ;;  %v6322_v44 = vld [vmem:[%s8993_s1 + $0x2e8] sm:$0xff]  }
  0x7c   :  { %5632 = vmatpush3.bf16.msra.mxu0 %v6267_v47  ;;  %v6324_v47 = vld [vmem:[%s8993_s1 + $0x268] sm:$0xff]  }
  0x7d   :  { %5633 = vmatprep.subr.bf16.mxu0 %v6275_v48  ;;  %v6326_v48 = vld [vmem:[%s8993_s1 + $0x2b0] sm:$0xff]  }
  0x80   :  { %5634 = vmatpush3.bf16.msra.mxu0 %v6276_v51  ;;  %v7464_v51 = vld [vmem:[%s8992_s0 + $0x50] ss:$20 sps:$4 sm:$0xff]  }
  0x81   :  { %5635 = vmatprep.subr.bf16.mxu0 %v6282_v54  ;;  %v7471_v54 = vld [vmem:[%s8992_s0 + $0x7c] ss:$20 sps:$4 sm:$0xff]  }
  0x82   :  { %1053 = vmatmul.mubr.bf16.gmra.mrb[48].mxu1 %v7240_v49  ;;  %5996 = vmatmul.mubr.bf16.gmra.mrb[48].mxu0 %v6265_v50  ;;  %v6328_v50 = vld [vmem:[%s8993_s1 + $0x2f8] sm:$0xff]  }
  0x83   :  { %1060 = vmatprep.mubr.bf16.mxu1 %v7251_v52  ;;  %5999 = vmatprep.mubr.bf16.mxu0 %v6271_v57  ;;  %v6329_v57 = vld [vmem:[%s8993_s1 + $0x2b8] sm:$0xff]  }
  0x84   :  { %5636 = vmatpush3.bf16.msra.mxu0 %v6283_v58  ;;  %v7492_v58 = vld [vmem:[%s8992_s0 + $0x78] ss:$20 sps:$4 sm:$0xff]  }
  0x85   :  { %5637 = vmatprep.subr.bf16.mxu0 %v6289_v59  ;;  %v7499_v59 = vld [vmem:[%s8992_s0 + $0xa4] ss:$20 sps:$4 sm:$0xff]  }
  0x88   :  { %5638 = vmatpush3.bf16.msra.mxu0 %v6292_v63  ;;  %v7524_v63 = vld [vmem:[%s8992_s0 + $0xc8] ss:$20 sps:$4 sm:$0xff]  }
  0x89   :  { %5639 = vmatprep.subr.bf16.mxu0 %v6293_v0 }
  0x8a   :  { %1061 = vmatmul.mubr.bf16.gmra.mrb[52].mxu1 %v7276_v60  ;;  %6000 = vmatmul.mubr.bf16.gmra.mrb[52].mxu0 %v6274_v62  ;;  %v6332_v62 = vld [vmem:[%s8993_s1 + $0x340] sm:$0xff]  }
  0x8b   :  { %1068 = vmatprep.mubr.bf16.mxu1 %v7290_v1  ;;  %6003 = vmatprep.mubr.bf16.mxu0 %v6279_v2 }
  0x8c   :  { %5640 = vmatpush3.bf16.msra.mxu0 %v6297_v4 }
  0x8d   :  { %5641 = vmatprep.subr.bf16.mxu0 %v6302_v6 }
  0x90   :  { %5642 = vmatpush3.bf16.msra.mxu0 %v6303_v9 }
  0x91   :  { %5749 = vmatprep.subr.bf16.mxu0 %v6307_v11 }
  0x92   :  { %1069 = vmatmul.mubr.bf16.gmra.mrb[56].mxu1 %v7306_v7  ;;  %6004 = vmatmul.mubr.bf16.gmra.mrb[56].mxu0 %v6281_v8 }
  0x93   :  { %1076 = vmatprep.mubr.bf16.mxu1 %v7320_v12  ;;  %6007 = vmatprep.mubr.bf16.mxu0 %v6288_v13 }
  0x9a   :  { %1077 = vmatmul.mubr.bf16.gmra.mrb[60].mxu1 %v7330_v15  ;;  %6008 = vmatmul.mubr.bf16.gmra.mrb[60].mxu0 %v6291_v17 }
  0x9b   :  { %1084 = vmatprep.mubr.bf16.mxu1 %v7338_v18  ;;  %6011 = vmatprep.mubr.bf16.mxu0 %v6296_v19 }
  0xa2   :  { %1085 = vmatmul.mubr.bf16.gmra.mrb[64].mxu1 %v7348_v21  ;;  %6012 = vmatmul.mubr.bf16.gmra.mrb[64].mxu0 %v6299_v23 }
  0xa3   :  { %1092 = vmatprep.mubr.bf16.mxu1 %v7356_v24  ;;  %1818 = vmatprep.mubr.bf16.mxu0 %v7009_v53  ;;  %v6311_v53 = vld [vmem:[%s8993_s1 + $0x288] sm:$0xff]  }
  0xaa   :  { %1093 = vmatmul.mubr.bf16.gmra.mrb[68].mxu1 %v7364_v26  ;;  %1819 = vmatmul.mubr.bf16.vlgmr.msra.gmra.mrb[68].mxu0 %v7020_v56  ;;  %v6312_v56 = vld [vmem:[%s8993_s1 + $0x248] sm:$0xff]  }
  0xab   :  { %5750 = vmatpush3.bf16.msra.mxu0 %v6308_v27  ;;  %1677 = vmatprep.mubr.bf16.mxu1 %v7383_v32 }
  0xac   :  { %1826 = vmatprep.mubr.bf16.mxu0 %v7038_v61  ;;  %5751 = vmatprep.subr.bf16.mxu0 %v6310_v30  ;;  %v6315_v61 = vld [vmem:[%s8993_s1 + $0x250] sm:$0xff]  }
  0xaf   :  { %5752 = vmatpush3.bf16.msra.mxu0 %v6311_v53 }
  0xb0   :  { %5753 = vmatprep.subr.bf16.mxu0 %v6313_v31 }
  0xb2   :  { %1678 = vmatmul.mubr.bf16.vlgmr.msra.gmra.mrb[72].mxu1 %v7399_v37  ;;  %1827 = vmatmul.mubr.bf16.gmra.mrb[72].mxu0 %v7060_v3  ;;  %v6318_v3 = vld [vmem:[%s8993_s1 + $0x258] sm:$0xff]  }
  0xb3   :  { %6016 = vmatpush3.bf16.msra.mxu1 %v7259_v55  ;;  %1685 = vmatprep.mubr.bf16.mxu1 %v7410_v38  ;;  %v6327_v55 = vld [vmem:[%s8993_s1 + $0x270] sm:$0xff]  }
  0xb4   :  { %1834 = vmatprep.mubr.bf16.mxu0 %v7068_v5  ;;  %6017 = vmatprep.subr.bf16.mxu1 %v6312_v56  ;;  %v7429_v5 = vld [vmem:[%s8992_s0 + $0x28] ss:$20 sps:$4 sm:$0xff]  }
  0xb5   :  { %5754 = vmatpush3.bf16.msra.mxu0 %v6314_v34 }
  0xb6   :  { %5755 = vmatprep.subr.bf16.mxu0 %v6316_v35 }
  0xb7   :  { %6018 = vmatpush3.bf16.msra.mxu1 %v6312_v56 }
  0xb8   :  { %6019 = vmatprep.subr.bf16.mxu1 %v6315_v61 }
  0xb9   :  { %5756 = vmatpush3.bf16.msra.mxu0 %v6317_v39 }
  0xba   :  { %1686 = vmatmul.mubr.bf16.gmra.mrb[76].mxu1 %v7429_v5  ;;  %1835 = vmatmul.mubr.bf16.gmra.mrb[76].mxu0 %v7087_v10  ;;  %v6323_v10 = vld [vmem:[%s8993_s1 + $0x2a8] sm:$0xff]  }
  0xbb   :  { %1693 = vmatprep.mubr.bf16.mxu1 %v7439_v45  ;;  %1842 = vmatprep.mubr.bf16.mxu0 %v7101_v14  ;;  %v6325_v14 = vld [vmem:[%s8993_s1 + $0x2f0] sm:$0xff]  }
  0xbc   :  { %6020 = vmatpush3.bf16.msra.mxu1 %v6315_v61  ;;  %5757 = vmatprep.subr.bf16.mxu0 %v6319_v41 }
  0xbd   :  { %6021 = vmatprep.subr.bf16.mxu1 %v6318_v3  ;;  %5758 = vmatpush3.bf16.msra.mxu0 %v6320_v42 }
  0xbe   :  { %5759 = vmatprep.subr.bf16.mxu0 %v6322_v44 }
  0xc0   :  { %6022 = vmatpush3.bf16.msra.mxu1 %v6318_v3 }
  0xc1   :  { %6023 = vmatprep.subr.bf16.mxu1 %v6321_v46  ;;  %5760 = vmatpush3.bf16.msra.mxu0 %v6323_v10 }
  0xc2   :  { %1694 = vmatmul.mubr.bf16.gmra.mrb[80].mxu1 %v7464_v51  ;;  %1843 = vmatmul.mubr.bf16.gmra.mrb[80].mxu0 %v7111_v16  ;;  %v7484_v16 = vld [vmem:[%s8993_s1 + $0x380] sm:$0xff]  }
  0xc3   :  { %1701 = vmatprep.mubr.bf16.mxu1 %v7471_v54  ;;  %1849 = vmatprep.mubr.bf16.mxu0 %v7125_v20  ;;  %v6330_v20 = vld [vmem:[%s8993_s1 + $0x278] sm:$0xff]  }
  0xc4   :  { %6024 = vmatpush3.bf16.msra.mxu1 %v6321_v46  ;;  %5761 = vmatprep.subr.bf16.mxu0 %v6325_v14 }
  0xc5   :  { %6025 = vmatprep.subr.bf16.mxu1 %v6324_v47  ;;  %5762 = vmatpush3.bf16.msra.mxu0 %v6326_v48 }
  0xc6   :  { %5763 = vmatprep.subr.bf16.mxu0 %v6328_v50 }
  0xc8   :  { %6026 = vmatpush3.bf16.msra.mxu1 %v6324_v47 }
  0xc9   :  { %6027 = vmatprep.subr.bf16.mxu1 %v6327_v55  ;;  %5764 = vmatpush3.bf16.msra.mxu0 %v6329_v57 }
  0xca   :  { %1702 = vmatmul.mubr.bf16.gmra.mrb[84].mxu1 %v7492_v58  ;;  %1850 = vmatmul.mubr.bf16.gmra.mrb[84].mxu0 %v7135_v22  ;;  %v7510_v22 = vld [vmem:[%s8992_s0 + $0xa0] ss:$20 sps:$4 sm:$0xff]  }
  0xcb   :  { %1708 = vmatprep.mubr.bf16.mxu1 %v7499_v59  ;;  %1857 = vmatprep.mubr.bf16.mxu0 %v7146_v25  ;;  %v7517_v25 = vld [vmem:[%s8992_s0 + $0xcc] ss:$20 sps:$4 sm:$0xff]  }
  0xcc   :  { %6028 = vmatpush3.bf16.msra.mxu1 %v6327_v55  ;;  %6059 = vmatprep.subr.bf16.mxu0 %v7484_v16 }
  0xcd   :  { %6029 = vmatprep.subr.bf16.mxu1 %v6330_v20 }
  0xd0   :  { %6030 = vmatpush3.bf16.msra.mxu1 %v6330_v20 }
  0xd1   :  { %5849 = vmatprep.subr.bf16.mxu1 %v6332_v62 }
  0xd2   :  { %1709 = vmatmul.mubr.bf16.gmra.mrb[88].mxu1 %v7510_v22  ;;  %1858 = vmatmul.mubr.bf16.gmra.mrb[88].mxu0 %v7159_v28  ;;  %v7531_v28 = vld [vmem:[%s8992_s0 + $0xf4] ss:$20 sps:$4 sm:$0xff]  }
  0xd3   :  { %1716 = vmatprep.mubr.bf16.mxu1 %v7517_v25  ;;  %1865 = vmatprep.mubr.bf16.mxu0 %v7164_v29  ;;  %v7538_v29 = vld [vmem:[%s8992_s0 + $0xf0] ss:$20 sps:$4 sm:$0xff]  }
  0xda   :  { %1717 = vmatmul.mubr.bf16.gmra.mrb[92].mxu1 %v7524_v63  ;;  %1866 = vmatmul.mubr.bf16.gmra.mrb[92].mxu0 %v7180_v33  ;;  %v7545_v33 = vld [vmem:[%s8992_s0 + $0x11c] ss:$20 sps:$4 sm:$0xff]  }
  0xdb   :  { %1724 = vmatprep.mubr.bf16.mxu1 %v7531_v28  ;;  %1872 = vmatprep.mubr.bf16.mxu0 %v7191_v36  ;;  %v7552_v36 = vld [vmem:[%s8992_s0 + $0x118] ss:$20 sps:$4 sm:$0xff]  }
  0xe2   :  { %1725 = vmatmul.mubr.bf16.gmra.mrb[96].mxu1 %v7538_v29  ;;  %1873 = vmatmul.mubr.bf16.gmra.mrb[96].mxu0 %v7207_v40  ;;  %v7559_v40 = vld [vmem:[%s8992_s0 + $0x144] ss:$20 sps:$4 sm:$0xff]  }
  0xe3   :  { %1731 = vmatprep.mubr.bf16.mxu1 %v7545_v33  ;;  %1880 = vmatprep.mubr.bf16.mxu0 %v7218_v43  ;;  %v7566_v43 = vld [vmem:[%s8992_s0 + $0x140] ss:$20 sps:$4 sm:$0xff]  }
  0xea   :  { %1732 = vmatmul.mubr.bf16.gmra.mrb[100].mxu1 %v7552_v36  ;;  %1881 = vmatmul.mubr.bf16.gmra.mrb[100].mxu0 %v7240_v49  ;;  %v7573_v49 = vld [vmem:[%s8992_s0 + $0x16c] ss:$20 sps:$4 sm:$0xff]  }
  0xeb   :  { %1739 = vmatprep.mubr.bf16.mxu1 %v7559_v40  ;;  %1888 = vmatprep.mubr.bf16.mxu0 %v7251_v52 }
  0xf2   :  { %1740 = vmatmul.mubr.bf16.gmra.mrb[104].mxu1 %v7566_v43  ;;  %1889 = vmatmul.mubr.bf16.gmra.mrb[104].mxu0 %v7276_v60 }
  0xf3   :  { %1747 = vmatprep.mubr.bf16.mxu1 %v7573_v49  ;;  %1896 = vmatprep.mubr.bf16.mxu0 %v7290_v1 }
  0xf5   :  { %v5381_v0 = vpop.f32.mrb[0].mxu1  ;;  %v5321_v52 = vpop.f32.mrb[0].mxu0 }
  0xf6   :  { %16 = vsyncpa [#allocation3], 0  ;;  %v5382_v2 = vpop.f32.mrb[1].mxu1  ;;  %v5322_v4 = vpop.f32.mrb[1].mxu0  ;;  %v7588_v1 = vld [vmem:[%s8992_s0 + $0x168] ss:$20 sps:$4 sm:$0xff]  }
  0xf7   :  { %v7577_v6 = vadd.f32 %v5382_v2, %v5381_v0  ;;  %v5384_v8 = vpop.f32.mrb[2].mxu1  ;;  %v7579_v9 = vadd.f32 %v5322_v4, %v5321_v52  ;;  %v5324_v60 = vpop.f32.mrb[2].mxu0  ;;  %v7595_v23 = vld [vmem:[%s8992_s0 + $0x194] ss:$20 sps:$4 sm:$0xff]   ;;  %v7617_v42 = vld [vmem:[%s8992_s0 + $0x1bc] ss:$20 sps:$4 sm:$0xff]  }
  0xf8   :  { %v5385_v11 = vpop.f32.mrb[3].mxu1  ;;  %v5325_v13 = vpop.f32.mrb[3].mxu0  ;;  %v7639_v0 = vld [vmem:[%s8992_s0 + $0x1e4] ss:$20 sps:$4 sm:$0xff]   ;;  %vm1248_vm0 = vcmask 1040384   ;;  %vm1300_vm1 = vcmask 1041408  }
  0xf9   :  { %v7581_v17 = vadd.f32 %v5385_v11, %v5384_v8  ;;  %v7583_v19 = vadd.f32 %v5325_v13, %v5324_v60  ;;  %vm1302_vm2 = vcmask 1042432  }
  0xfa   :  { %1748 = vmatmul.mubr.bf16.gmra.mrb[108].mxu1 %v7588_v1  ;;  %1897 = vmatmul.mubr.bf16.gmra.mrb[108].mxu0 %v7306_v7 }
  0xfb   :  { %1755 = vmatprep.mubr.bf16.mxu1 %v7595_v23  ;;  %1903 = vmatprep.mubr.bf16.mxu0 %v7320_v12  ;;  %v7610_v12 = vld [vmem:[%s8992_s0 + $0x190] ss:$20 sps:$4 sm:$0xff]  }
  0xfd   :  { %v5387_v27 = vpop.f32.mrb[4].mxu1  ;;  %v5327_v30 = vpop.f32.mrb[4].mxu0 }
  0xfe   :  { %v5388_v53 = vpop.f32.mrb[5].mxu1  ;;  %v5328_v31 = vpop.f32.mrb[5].mxu0 }
  0xff   :  { %v7599_v56 = vadd.f32 %v5388_v53, %v5387_v27  ;;  %v5390_v34 = vpop.f32.mrb[6].mxu1  ;;  %v7601_v35 = vadd.f32 %v5328_v31, %v5327_v30  ;;  %v5330_v61 = vpop.f32.mrb[6].mxu0 }
 0x100   :  { %v5391_v7 = vpop.f32.mrb[7].mxu1  ;;  %v5331_v39 = vpop.f32.mrb[7].mxu0 }
 0x101   :  { %v7603_v3 = vadd.f32 %v5391_v7, %v5390_v34  ;;  %v7605_v41 = vadd.f32 %v5331_v39, %v5330_v61  ;;  %v7661_v34 = vld [vmem:[%s8992_s0 + $0x20c] ss:$20 sps:$4 sm:$0xff]  }
 0x102   :  { %1756 = vmatmul.mubr.bf16.gmra.mrb[112].mxu1 %v7610_v12  ;;  %1904 = vmatmul.mubr.bf16.gmra.mrb[112].mxu0 %v7330_v15 }
 0x103   :  { %1762 = vmatprep.mubr.bf16.mxu1 %v7617_v42  ;;  %1911 = vmatprep.mubr.bf16.mxu0 %v7338_v18  ;;  %v7632_v18 = vld [vmem:[%s8992_s0 + $0x1b8] ss:$20 sps:$4 sm:$0xff]  }
 0x105   :  { %v5393_v44 = vpop.f32.mrb[8].mxu1  ;;  %v5333_v46 = vpop.f32.mrb[8].mxu0 }
 0x106   :  { %v5394_v10 = vpop.f32.mrb[9].mxu1  ;;  %v5334_v47 = vpop.f32.mrb[9].mxu0 }
 0x107   :  { %v7621_v14 = vadd.f32 %v5394_v10, %v5393_v44  ;;  %v5396_v48 = vpop.f32.mrb[10].mxu1  ;;  %v7623_v50 = vadd.f32 %v5334_v47, %v5333_v46  ;;  %v5336_v55 = vpop.f32.mrb[10].mxu0 }
 0x108   :  { %v5397_v15 = vpop.f32.mrb[11].mxu1  ;;  %v5337_v57 = vpop.f32.mrb[11].mxu0 }
 0x109   :  { %v7625_v20 = vadd.f32 %v5397_v15, %v5396_v48  ;;  %v7627_v62 = vadd.f32 %v5337_v57, %v5336_v55  ;;  %v6336_v15 = vld [vmem:[%s8993_s1 + $0x388] sm:$0xff]  }
 0x10a   :  { %1763 = vmatmul.mubr.bf16.gmra.mrb[116].mxu1 %v7632_v18  ;;  %1912 = vmatmul.mubr.bf16.gmra.mrb[116].mxu0 %v7348_v21 }
 0x10b   :  { %1770 = vmatprep.mubr.bf16.mxu1 %v7639_v0  ;;  %1919 = vmatprep.mubr.bf16.mxu0 %v7356_v24  ;;  %v7654_v24 = vld [vmem:[%s8992_s0 + $0x1e0] ss:$20 sps:$4 sm:$0xff]  }
 0x10d   :  { %v5399_v52 = vpop.f32.mrb[12].mxu1  ;;  %v5339_v2 = vpop.f32.mrb[12].mxu0 }
 0x10e   :  { %v5400_v4 = vpop.f32.mrb[13].mxu1  ;;  %v5340_v8 = vpop.f32.mrb[13].mxu0 }
 0x10f   :  { %v7643_v60 = vadd.f32 %v5400_v4, %v5399_v52  ;;  %v5402_v11 = vpop.f32.mrb[14].mxu1  ;;  %v7645_v13 = vadd.f32 %v5340_v8, %v5339_v2  ;;  %v5342_v27 = vpop.f32.mrb[14].mxu0  ;;  %v7678_v2 = vld [vmem:[%s8992_s0 + $0x208] ss:$20 sps:$4 sm:$0xff]   ;;  %v7686_v4 = vld [vmem:[%s8992_s0 + $0x10] ss:$20 sps:$4 sm:$0xff]  }
 0x110   :  { %v5403_v21 = vpop.f32.mrb[15].mxu1  ;;  %v5343_v30 = vpop.f32.mrb[15].mxu0  ;;  %v6341_v8 = vld [vmem:[%s8993_s1 + $0x390] sm:$0xff]  }
 0x111   :  { %v7647_v53 = vadd.f32 %v5403_v21, %v5402_v11  ;;  %v7649_v31 = vadd.f32 %v5343_v30, %v5342_v27 }
 0x112   :  { %1771 = vmatmul.mubr.bf16.gmra.mrb[120].mxu1 %v7654_v24  ;;  %1920 = vmatmul.mubr.bf16.gmra.mrb[120].mxu0 %v7364_v26 }
 0x113   :  { %1778 = vmatprep.mubr.bf16.mxu1 %v7661_v34  ;;  %2480 = vmatprep.mubr.bf16.mxu0 %v7383_v32 }
 0x115   :  { %v5421_v61 = vpop.f32.mrb[16].mxu1  ;;  %v5345_v7 = vpop.f32.mrb[16].mxu0 }
 0x116   :  { %v5422_v39 = vpop.f32.mrb[17].mxu1  ;;  %v5346_v44 = vpop.f32.mrb[17].mxu0 }
 0x117   :  { %v5423_v46 = vadd.f32 %v5422_v39, %v5421_v61  ;;  %v5424_v10 = vpop.f32.mrb[18].mxu1  ;;  %v7665_v47 = vadd.f32 %v5346_v44, %v5345_v7  ;;  %v5348_v48 = vpop.f32.mrb[18].mxu0  ;;  %v6334_v44 = vld [vmem:[%s8993_s1 + $0x348] sm:$0xff]  }
 0x118   :  { %v5425_v55 = vpop.f32.mrb[19].mxu1  ;;  %v5349_v26 = vpop.f32.mrb[19].mxu0 }
 0x119   :  { %v5426_v57 = vadd.f32 %v5425_v55, %v5424_v10  ;;  %v7670_v52 = vadd.f32 %v5349_v26, %v5348_v48  ;;  %v7673_v32 = vadd.f32 %v5423_v46, %v7579_v9  ;;  %v7712_v55 = vld [vmem:[%s8992_s0 + $0x38] ss:$20 sps:$4 sm:$0xff]  }
 0x11a   :  { %1779 = vmatmul.mubr.bf16.gmra.mrb[124].mxu1 %v7678_v2  ;;  %2481 = vmatmul.mubr.bf16.vlgmr.msra.gmra.mrb[124].mxu0 %v7399_v37  ;;  %v6346_v26 = vld [vmem:[%s8993_s1 + $0x398] sm:$0xff]  }
 0x11b   :  { %6060 = vmatpush3.bf16.msra.mxu0 %v7484_v16  ;;  %6031 = vmatprep.mubr.bf16.mxu1 %v7686_v4  ;;  %v7690_v9 = vadd.f32 %v5426_v57, %v7583_v19  ;;  %v6333_v19 = vld [vmem:[%s8993_s1 + $0x300] sm:$0xff]  }
 0x11c   :  { %2488 = vmatprep.mubr.bf16.mxu0 %v7410_v38  ;;  %6061 = vmatprep.subr.bf16.mxu0 %v6336_v15 }
 0x11d   :  { %v5427_v37 = vpop.f32.mrb[20].mxu1  ;;  %v5351_v11 = vpop.f32.mrb[20].mxu0 }
 0x11e   :  { %v5428_v16 = vpop.f32.mrb[21].mxu1  ;;  %v5352_v27 = vpop.f32.mrb[21].mxu0 }
 0x11f   :  { %v5429_v21 = vadd.f32 %v5428_v16, %v5427_v37  ;;  %v5430_v30 = vpop.f32.mrb[22].mxu1  ;;  %v7696_v61 = vadd.f32 %v5352_v27, %v5351_v11  ;;  %v5354_v7 = vpop.f32.mrb[22].mxu0  ;;  %6062 = vmatpush3.bf16.msra.mxu0 %v6336_v15  ;;  %v7722_v15 = vld [vmem:[%s8992_s0 + $0x60] ss:$20 sps:$4 sm:$0xff]  }
 0x120   :  { %v5431_v38 = vpop.f32.mrb[23].mxu1  ;;  %v5355_v39 = vpop.f32.mrb[23].mxu0  ;;  %6063 = vmatprep.subr.bf16.mxu0 %v6341_v8 }
 0x121   :  { %v5432_v46 = vadd.f32 %v5431_v38, %v5430_v30  ;;  %v7704_v10 = vadd.f32 %v5355_v39, %v5354_v7  ;;  %v7707_v48 = vadd.f32 %v5429_v21, %v7601_v35  ;;  %v6335_v35 = vld [vmem:[%s8993_s1 + $0x308] sm:$0xff]  }
 0x122   :  { %6032 = vmatmul.mubr.bf16.vlgmr.msra.gmra.mrb[128].mxu1 %v7712_v55  ;;  %2489 = vmatmul.mubr.bf16.gmra.mrb[128].mxu0 %v7429_v5  ;;  %v6337_v5 = vld [vmem:[%s8993_s1 + $0x350] sm:$0xff]  }
 0x123   :  { %5850 = vmatpush3.bf16.msra.mxu1 %v6333_v19  ;;  %6035 = vmatprep.mubr.bf16.mxu1 %v7722_v15  ;;  %v7729_v57 = vadd.f32 %v5432_v46, %v7605_v41  ;;  %v6339_v46 = vld [vmem:[%s8993_s1 + $0x358] sm:$0xff]  }
 0x124   :  { %2496 = vmatprep.mubr.bf16.mxu0 %v7439_v45  ;;  %5851 = vmatprep.subr.bf16.mxu1 %v6334_v44  ;;  %v6338_v45 = vld [vmem:[%s8993_s1 + $0x310] sm:$0xff]  }
 0x125   :  { %v5433_v37 = vpop.f32.mrb[24].mxu1  ;;  %v5357_v11 = vpop.f32.mrb[24].mxu0  ;;  %6064 = vmatpush3.bf16.msra.mxu0 %v6341_v8  ;;  %v6351_v8 = vld [vmem:[%s8993_s1 + $0x3a0] sm:$0xff]  }
 0x126   :  { %v5434_v16 = vpop.f32.mrb[25].mxu1  ;;  %v5358_v27 = vpop.f32.mrb[25].mxu0  ;;  %6065 = vmatprep.subr.bf16.mxu0 %v6346_v26 }
 0x127   :  { %v5435_v21 = vadd.f32 %v5434_v16, %v5433_v37  ;;  %v5436_v30 = vpop.f32.mrb[26].mxu1  ;;  %v7735_v7 = vadd.f32 %v5358_v27, %v5357_v11  ;;  %v5360_v19 = vpop.f32.mrb[26].mxu0  ;;  %5852 = vmatpush3.bf16.msra.mxu1 %v6335_v35  ;;  %v6352_v37 = vld [vmem:[%s8993_s1 + $0x3a8] sm:$0xff]   ;;  %v6342_v27 = vld [vmem:[%s8993_s1 + $0x360] sm:$0xff]  }
 0x128   :  { %v5437_v41 = vpop.f32.mrb[27].mxu1  ;;  %v5361_v38 = vpop.f32.mrb[27].mxu0  ;;  %5853 = vmatprep.subr.bf16.mxu1 %v6337_v5  ;;  %v7754_v5 = vld [vmem:[%s8992_s0 + $0x88] ss:$20 sps:$4 sm:$0xff]  }
 0x129   :  { %v5438_v39 = vadd.f32 %v5437_v41, %v5436_v30  ;;  %v7743_v44 = vadd.f32 %v5361_v38, %v5360_v19  ;;  %6066 = vmatpush3.bf16.msra.mxu0 %v6346_v26  ;;  %v7749_v35 = vadd.f32 %v5435_v21, %v7623_v50  ;;  %v7764_v26 = vld [vmem:[%s8992_s0 + $0xb0] ss:$20 sps:$4 sm:$0xff]  }
 0x12a   :  { %6036 = vmatmul.mubr.bf16.gmra.mrb[132].mxu1 %v7754_v5  ;;  %2497 = vmatmul.mubr.bf16.gmra.mrb[132].mxu0 %v7464_v51  ;;  %9011 = vst [vmem:[#allocation5_spill] sm:$0xff] %v7764_v26  ;;  %v6340_v51 = vld [vmem:[%s8993_s1 + $0x318] sm:$0xff]  }
 0x12b   :  { %6039 = vmatprep.mubr.bf16.mxu1 %v7764_v26  ;;  %2503 = vmatprep.mubr.bf16.mxu0 %v7471_v54  ;;  %v7769_v50 = vadd.f32 %v5438_v39, %v7627_v62  ;;  %v6343_v39 = vld [vmem:[%s8993_s1 + $0x320] sm:$0xff]  }
 0x12c   :  { %5854 = vmatpush3.bf16.msra.mxu1 %v6338_v45  ;;  %6067 = vmatprep.subr.bf16.mxu0 %v6351_v8 }
 0x12d   :  { %v5439_v11 = vpop.f32.mrb[28].mxu1  ;;  %v5363_v16 = vpop.f32.mrb[28].mxu0  ;;  %5855 = vmatprep.subr.bf16.mxu1 %v6339_v46  ;;  %6068 = vmatpush3.bf16.msra.mxu0 %v6351_v8  ;;  %v6353_v46 = vld [vmem:[%s8993_s1 + $0x3b0] sm:$0xff]  }
 0x12e   :  { %v5440_v21 = vpop.f32.mrb[29].mxu1  ;;  %v5364_v30 = vpop.f32.mrb[29].mxu0  ;;  %6069 = vmatprep.subr.bf16.mxu0 %v6352_v37 }
 0x12f   :  { %v5441_v54 = vadd.f32 %v5440_v21, %v5439_v11  ;;  %v5442_v62 = vpop.f32.mrb[30].mxu1  ;;  %v7777_v19 = vadd.f32 %v5364_v30, %v5363_v16  ;;  %v5366_v41 = vpop.f32.mrb[30].mxu0  ;;  %v6344_v11 = vld [vmem:[%s8993_s1 + $0x368] sm:$0xff]   ;;  %v7806_v21 = vld [vmem:[%s8992_s0 + $0x100] ss:$20 sps:$4 sm:$0xff]  }
 0x130   :  { %v5443_v38 = vpop.f32.mrb[31].mxu1  ;;  %v5367_v45 = vpop.f32.mrb[31].mxu0  ;;  %5856 = vmatpush3.bf16.msra.mxu1 %v6340_v51  ;;  %v7796_v51 = vld [vmem:[%s8992_s0 + $0xd8] ss:$20 sps:$4 sm:$0xff]   ;;  %9013 = vst [vmem:[#allocation7_spill] sm:$0xff] %v7806_v21 }
 0x131   :  { %v5444_v8 = vadd.f32 %v5443_v38, %v5442_v62  ;;  %v7785_v26 = vadd.f32 %v5367_v45, %v5366_v41  ;;  %5857 = vmatprep.subr.bf16.mxu1 %v6342_v27  ;;  %v7791_v16 = vadd.f32 %v5441_v54, %v7645_v13  ;;  %6070 = vmatpush3.bf16.msra.mxu0 %v6352_v37  ;;  %v6354_v27 = vld [vmem:[%s8993_s1 + $0x3b8] sm:$0xff]   ;;  %v6347_v54 = vld [vmem:[%s8993_s1 + $0x370] sm:$0xff]  }
 0x132   :  { %9012 = vst [vmem:[#allocation6_spill] sm:$0xff] %v7796_v51  ;;  %6040 = vmatmul.mubr.bf16.gmra.mrb[136].mxu1 %v7796_v51  ;;  %2504 = vmatmul.mubr.bf16.gmra.mrb[136].mxu0 %v7492_v58  ;;  %v6345_v58 = vld [vmem:[%s8993_s1 + $0x328] sm:$0xff]  }
 0x133   :  { %6043 = vmatprep.mubr.bf16.mxu1 %v7806_v21  ;;  %2510 = vmatprep.mubr.bf16.mxu0 %v7499_v59  ;;  %v7811_v13 = vadd.f32 %v5444_v8, %v7649_v31 }
 0x134   :  { %5858 = vmatpush3.bf16.msra.mxu1 %v6343_v39  ;;  %6071 = vmatprep.subr.bf16.mxu0 %v6353_v46 }
 0x135   :  { %v5445_v37 = vpop.f32.mrb[32].mxu1  ;;  %v5369_v30 = vpop.f32.mrb[32].mxu0  ;;  %5859 = vmatprep.subr.bf16.mxu1 %v6344_v11  ;;  %6072 = vmatpush3.bf16.msra.mxu0 %v6353_v46  ;;  %v6348_v11 = vld [vmem:[%s8993_s1 + $0x330] sm:$0xff]   ;;  %v6349_v46 = vld [vmem:[%s8993_s1 + $0x378] sm:$0xff]  }
 0x136   :  { %v5446_v62 = vpop.f32.mrb[33].mxu1  ;;  %v5370_v41 = vpop.f32.mrb[33].mxu0  ;;  %6073 = vmatprep.subr.bf16.mxu0 %v6354_v27 }
 0x137   :  { %v5447_v59 = vadd.f32 %v5446_v62, %v5445_v37  ;;  %v5448_v31 = vpop.f32.mrb[34].mxu1  ;;  %v7819_v38 = vadd.f32 %v5370_v41, %v5369_v30  ;;  %v5372_v45 = vpop.f32.mrb[34].mxu0  ;;  %v7842_v30 = vld [vmem:[%s8992_s0 + $0x150] ss:$20 sps:$4 sm:$0xff]  }
 0x138   :  { %v5449_v39 = vpop.f32.mrb[35].mxu1  ;;  %v5373_v8 = vpop.f32.mrb[35].mxu0  ;;  %5860 = vmatpush3.bf16.msra.mxu1 %v6345_v58  ;;  %v7835_v58 = vld [vmem:[%s8992_s0 + $0x128] ss:$20 sps:$4 sm:$0xff]   ;;  %9014 = vst [vmem:[#allocation8_spill] sm:$0xff] %v7842_v30 }
 0x139   :  { %v5450_v21 = vadd.f32 %v5449_v39, %v5448_v31  ;;  %v7824_v51 = vadd.f32 %v5373_v8, %v5372_v45  ;;  %5861 = vmatprep.subr.bf16.mxu1 %v6347_v54  ;;  %v7830_v37 = vadd.f32 %v5447_v59, %v7665_v47  ;;  %6074 = vmatpush3.bf16.msra.mxu0 %v6354_v27  ;;  %v6350_v27 = vld [vmem:[%s8993_s1 + $0x338] sm:$0xff]  }
 0x13a   :  { %6044 = vmatmul.mubr.bf16.gmra.mrb[140].mxu1 %v7835_v58  ;;  %2511 = vmatmul.mubr.bf16.gmra.mrb[140].mxu0 %v7510_v22 }
 0x13b   :  { %6047 = vmatprep.mubr.bf16.mxu1 %v7842_v30  ;;  %2518 = vmatprep.mubr.bf16.mxu0 %v7517_v25  ;;  %v7847_v47 = vadd.f32 %v5450_v21, %v7670_v52  ;;  %v7860_v30 = vld [vmem:[%s8992_s0 + $0x178] ss:$20 sps:$4 sm:$0xff]  }
 0x13c   :  { %5862 = vmatpush3.bf16.msra.mxu1 %v6348_v11  ;;  %9015 = vst [vmem:[#allocation9_spill] sm:$0xff] %v7860_v30 }
 0x13d   :  { %v5451_v54 = vpop.f32.mrb[36].mxu1  ;;  %v5375_v62 = vpop.f32.mrb[36].mxu0  ;;  %5863 = vmatprep.subr.bf16.mxu1 %v6349_v46  ;;  %v7867_v46 = vld [vmem:[%s8992_s0 + $0x1a0] ss:$20 sps:$4 sm:$0xff]  }
 0x13e   :  { %v5452_v22 = vpop.f32.mrb[37].mxu1  ;;  %v5376_v41 = vpop.f32.mrb[37].mxu0  ;;  %9016 = vst [vmem:[#allocation10_spill] sm:$0xff] %v7867_v46 }
 0x13f   :  { %v5453_v59 = vadd.f32 %v5452_v22, %v5451_v54  ;;  %v5454_v31 = vpop.f32.mrb[38].mxu1  ;;  %v7852_v45 = vadd.f32 %v5376_v41, %v5375_v62  ;;  %v5378_v39 = vpop.f32.mrb[38].mxu0 }
 0x140   :  { %v5455_v8 = vpop.f32.mrb[39].mxu1  ;;  %v5379_v25 = vpop.f32.mrb[39].mxu0  ;;  %5864 = vmatpush3.bf16.msra.mxu1 %v6350_v27 }
 0x141   :  { %v5456_v52 = vadd.f32 %v5455_v8, %v5454_v31  ;;  %v7854_v21 = vadd.f32 %v5379_v25, %v5378_v39  ;;  %v1031_v11 = vadd.f32 %v5453_v59, %v7696_v61 }
 0x142   :  { %6048 = vmatmul.mubr.bf16.gmra.mrb[144].mxu1 %v7860_v30  ;;  %2519 = vmatmul.mubr.bf16.gmra.mrb[144].mxu0 %v7524_v63 }
 0x143   :  { %6051 = vmatprep.mubr.bf16.mxu1 %v7867_v46  ;;  %2526 = vmatprep.mubr.bf16.mxu0 %v7531_v28  ;;  %v1034_v61 = vadd.f32 %v5456_v52, %v7704_v10 }
 0x145   :  { %v5457_v27 = vpop.f32.mrb[40].mxu1  ;;  %v5989_v54 = vpop.f32.mrb[40].mxu0 }
 0x146   :  { %v1144_v62 = vadd.f32 %v5989_v54, %v7707_v48  ;;  %v5458_v22 = vpop.f32.mrb[41].mxu1  ;;  %v1135_v41 = vpop.f32.mrb[41].mxu0  ;;  %v7882_v48 = vld [vmem:[%s8992_s0 + $0x1c8] ss:$20 sps:$4 sm:$0xff]  }
 0x147   :  { %v5459_v59 = vadd.f32 %v5458_v22, %v5457_v27  ;;  %v1136_v63 = vadd.f32 %v1135_v41, %v7673_v32  ;;  %v5460_v31 = vpop.f32.mrb[42].mxu1  ;;  %v5990_v39 = vpop.f32.mrb[42].mxu0  ;;  %v7889_v32 = vld [vmem:[%s8992_s0 + $0x1f0] ss:$20 sps:$4 sm:$0xff]  }
 0x148   :  { %v1147_v8 = vadd.f32 %v5990_v39, %v7729_v57  ;;  %v5461_v25 = vpop.f32.mrb[43].mxu1  ;;  %v1138_v30 = vpop.f32.mrb[43].mxu0  ;;  %9017 = vst [vmem:[#allocation11_spill] sm:$0xff] %v7889_v32 }
 0x149   :  { %v5462_v46 = vadd.f32 %v5461_v25, %v5460_v31  ;;  %v1139_v28 = vadd.f32 %v1138_v30, %v7690_v9  ;;  %v7877_v10 = vadd.f32 %v5459_v59, %v7735_v7 }
 0x14a   :  { %6052 = vmatmul.mubr.bf16.gmra.mrb[148].mxu1 %v7882_v48  ;;  %2527 = vmatmul.mubr.bf16.gmra.mrb[148].mxu0 %v7538_v29 }
 0x14b   :  { %6055 = vmatprep.mubr.bf16.mxu1 %v7889_v32  ;;  %2532 = vmatprep.mubr.bf16.mxu0 %v7545_v33  ;;  %v7894_v9 = vadd.f32 %v5462_v46, %v7743_v44 }
 0x14d   :  { %v5463_v57 = vpop.f32.mrb[44].mxu1  ;;  %v5993_v7 = vpop.f32.mrb[44].mxu0 }
 0x14e   :  { %v1160_v30 = vadd.f32 %v5993_v7, %v7791_v16  ;;  %v5464_v52 = vpop.f32.mrb[45].mxu1  ;;  %v1151_v27 = vpop.f32.mrb[45].mxu0  ;;  %v7906_v16 = vld [vmem:[%s8992_s0 + $0x218] ss:$20 sps:$4 sm:$0xff]  }
 0x14f   :  { %v5465_v29 = vadd.f32 %v5464_v52, %v5463_v57  ;;  %v1152_v54 = vadd.f32 %v1151_v27, %v7749_v35  ;;  %v5466_v22 = vpop.f32.mrb[46].mxu1  ;;  %v5994_v41 = vpop.f32.mrb[46].mxu0 }
 0x150   :  { %v1249_v59 = vsel %vm1248_vm0, %v1160_v30, -inf  ;;  %v7900_v31 = vadd.f32 %v5994_v41, %v7811_v13  ;;  %v5467_v33 = vpop.f32.mrb[47].mxu1  ;;  %v1154_v44 = vpop.f32.mrb[47].mxu0 }
 0x151   :  { %v1250_v46 = vmax.f32 %v1144_v62, %v1249_v59  ;;  %v1246_v39 = vmax.f32 %v1136_v63, %v1152_v54  ;;  %v5468_v25 = vadd.f32 %v5467_v33, %v5466_v22  ;;  %v1155_v32 = vadd.f32 %v1154_v44, %v7769_v50  ;;  %v6733_v62 = vld [vmem:[%s8992_s0 + $0xc] ss:$20 sps:$4 sm:$0xff]  }
 0x152   :  { %6056 = vmatmul.mubr.bf16.gmra.mrb[152].mxu1 %v7906_v16  ;;  %2533 = vmatmul.mubr.bf16.gmra.mrb[152].mxu0 %v7552_v36  ;;  %v1047_v35 = vadd.f32 %v5465_v29, %v7777_v19 }
 0x153   :  { %v1252_v13 = vmax.f32 %v1250_v46, %v1147_v8  ;;  %v1247_v57 = vmax.f32 %v1139_v28, %v1155_v32  ;;  %2540 = vmatprep.mubr.bf16.mxu0 %v7559_v40  ;;  %2617 = vmatprep.mubr.bf16.mxu1 %v6733_v62  ;;  %v1050_v50 = vadd.f32 %v5468_v25, %v7785_v26 }
 0x155   :  { %v1251_v63 = vmax.f32 %v1246_v39, %v1247_v57  ;;  %v5469_v7 = vpop.f32.mrb[48].mxu1  ;;  %v5997_v30 = vpop.f32.mrb[48].mxu0 }
 0x156   :  { %v1176_v52 = vadd.f32 %v5997_v30, %v1031_v11  ;;  %v5470_v27 = vpop.f32.mrb[49].mxu1  ;;  %v1167_v54 = vpop.f32.mrb[49].mxu0  ;;  %v6734_v11 = vld [vmem:[%s8992_s0 + $0x8] ss:$20 sps:$4 sm:$0xff]  }
 0x157   :  { %v1253_v36 = vmax.f32 %v1251_v63, %v1252_v13  ;;  %v5471_v22 = vadd.f32 %v5470_v27, %v5469_v7  ;;  %v1168_v19 = vadd.f32 %v1167_v54, %v7830_v37  ;;  %v5472_v8 = vpop.f32.mrb[50].mxu1  ;;  %v5998_v28 = vpop.f32.mrb[50].mxu0  ;;  %v6735_v37 = vld [vmem:[%s8992_s0 + $0x34] ss:$20 sps:$4 sm:$0xff]  }
 0x158   :  { %v1179_v40 = vadd.f32 %v5998_v28, %v1034_v61  ;;  %v5473_v32 = vpop.f32.mrb[51].mxu1  ;;  %v1170_v29 = vpop.f32.mrb[51].mxu0 }
 0x159   :  { %v5474_v41 = vadd.f32 %v5473_v32, %v5472_v8  ;;  %v1171_v59 = vadd.f32 %v1170_v29, %v7847_v47  ;;  %v1055_v26 = vadd.f32 %v5471_v22, %v7819_v38  ;;  %v1254_v57 = vrot.slane %v1253_v36, 4 }
 0x15a   :  { %v1260_v33 = vmax.f32 %v7900_v31, %v1179_v40  ;;  %2541 = vmatmul.mubr.bf16.gmra.mrb[156].mxu0 %v7566_v43  ;;  %2618 = vmatmul.mubr.bf16.vlgmr.msra.gmra.mrb[156].mxu1 %v6734_v11 }
 0x15b   :  { %2548 = vmatprep.mubr.bf16.mxu0 %v7573_v49  ;;  %2625 = vmatprep.mubr.bf16.mxu1 %v6735_v37  ;;  %v1058_v47 = vadd.f32 %v5474_v41, %v7824_v51  ;;  %v6736_v51 = vld [vmem:[%s8992_s0 + $0x30] ss:$20 sps:$4 sm:$0xff]  }
 0x15d   :  { %v5475_v61 = vpop.f32.mrb[52].mxu1  ;;  %v6001_v38 = vpop.f32.mrb[52].mxu0 }
 0x15e   :  { %v1192_v44 = vadd.f32 %v6001_v38, %v1047_v35  ;;  %v5476_v31 = vpop.f32.mrb[53].mxu1  ;;  %v1183_v46 = vpop.f32.mrb[53].mxu0 }
 0x15f   :  { %v5477_v43 = vadd.f32 %v5476_v31, %v5475_v61  ;;  %v1184_v39 = vadd.f32 %v1183_v46, %v7877_v10  ;;  %v5478_v25 = vpop.f32.mrb[54].mxu1  ;;  %v6002_v13 = vpop.f32.mrb[54].mxu0 }
 0x160   :  { %v1195_v62 = vadd.f32 %v6002_v13, %v1050_v50  ;;  %v5479_v49 = vpop.f32.mrb[55].mxu1  ;;  %v1186_v63 = vpop.f32.mrb[55].mxu0 }
 0x161   :  { %v1261_v7 = vmax.f32 %v1168_v19, %v1184_v39  ;;  %v5480_v30 = vadd.f32 %v5479_v49, %v5478_v25  ;;  %v1187_v27 = vadd.f32 %v1186_v63, %v7894_v9  ;;  %v1063_v35 = vadd.f32 %v5477_v43, %v7852_v45  ;;  %v6737_v9 = vld [vmem:[%s8992_s0 + $0x5c] ss:$20 sps:$4 sm:$0xff]  }
 0x162   :  { %2549 = vmatmul.mubr.bf16.gmra.mrb[160].mxu0 %v7588_v1  ;;  %2626 = vmatmul.mubr.bf16.gmra.mrb[160].mxu1 %v6736_v51  ;;  %v1255_v1 = vmax.f32 %v1253_v36, %v1254_v57 }
 0x163   :  { %v1264_v10 = vmax.f32 %v1260_v33, %v1261_v7  ;;  %v1262_v54 = vsel %vm1248_vm0, %v1187_v27, -inf  ;;  %v1066_v50 = vadd.f32 %v5480_v30, %v7854_v21  ;;  %2555 = vmatprep.mubr.bf16.mxu0 %v7595_v23  ;;  %2633 = vmatprep.mubr.bf16.mxu1 %v6737_v9 }
 0x164   :  { %v1263_v22 = vmax.f32 %v1171_v59, %v1262_v54  ;;  %v1256_v21 = vrot.slane %v1255_v1, 2 }
 0x165   :  { %v5481_v19 = vpop.f32.mrb[56].mxu1  ;;  %v6005_v8 = vpop.f32.mrb[56].mxu0 }
 0x166   :  { %v1265_v28 = vmax.f32 %v1263_v22, %v1176_v52  ;;  %v1208_v40 = vadd.f32 %v6005_v8, %v1063_v35  ;;  %v5482_v32 = vpop.f32.mrb[57].mxu1  ;;  %v1199_v45 = vpop.f32.mrb[57].mxu0  ;;  %v6738_v52 = vld [vmem:[%s8992_s0 + $0x58] ss:$20 sps:$4 sm:$0xff]  }
 0x167   :  { %v5483_v29 = vadd.f32 %v5482_v32, %v5481_v19  ;;  %v1200_v41 = vadd.f32 %v1199_v45, %v1055_v26  ;;  %v5484_v33 = vpop.f32.mrb[58].mxu1  ;;  %v6006_v11 = vpop.f32.mrb[58].mxu0  ;;  %v6740_v19 = vld [vmem:[%s8992_s0 + $0x80] ss:$20 sps:$4 sm:$0xff]  }
 0x168   :  { %v1266_v37 = vmax.f32 %v1264_v10, %v1265_v28  ;;  %v1273_v23 = vmax.f32 %v1192_v44, %v1208_v40  ;;  %v1211_v61 = vadd.f32 %v6006_v11, %v1066_v50  ;;  %v5485_v38 = vpop.f32.mrb[59].mxu1  ;;  %v1202_v31 = vpop.f32.mrb[59].mxu0  ;;  %v6739_v44 = vld [vmem:[%s8992_s0 + $0x84] ss:$20 sps:$4 sm:$0xff]  }
 0x169   :  { %v5486_v46 = vadd.f32 %v5485_v38, %v5484_v33  ;;  %v1203_v43 = vadd.f32 %v1202_v31, %v1058_v47  ;;  %v1071_v36 = vadd.f32 %v5483_v29, %v7577_v6  ;;  %v1257_v47 = vmax.f32 %v1255_v1, %v1256_v21 }
 0x16a   :  { %v1267_v59 = vrot.slane %v1266_v37, 4  ;;  %v1274_v39 = vmax.f32 %v1195_v62, %v1211_v61  ;;  %2556 = vmatmul.mubr.bf16.gmra.mrb[164].mxu0 %v7610_v12  ;;  %2634 = vmatmul.mubr.bf16.gmra.mrb[164].mxu1 %v6738_v52 }
 0x16b   :  { %v1074_v26 = vadd.f32 %v5486_v46, %v7581_v17  ;;  %2562 = vmatprep.mubr.bf16.mxu0 %v7617_v42  ;;  %2640 = vmatprep.mubr.bf16.mxu1 %v6739_v44  ;;  %v1258_v17 = vrot.slane %v1257_v47, 1 }
 0x16c   :  { %v1268_v6 = vmax.f32 %v1266_v37, %v1267_v59  ;;  %v1277_v25 = vmax.f32 %v1273_v23, %v1274_v39 }
 0x16d   :  { %v5487_v13 = vpop.f32.mrb[60].mxu1  ;;  %v6009_v57 = vpop.f32.mrb[60].mxu0  ;;  %v1259_v40 = vmax.f32 %v1257_v47, %v1258_v17 }
 0x16e   :  { %v1269_v12 = vrot.slane %v1268_v6, 2  ;;  %v5488_v62 = vpop.f32.mrb[61].mxu1  ;;  %v1215_v49 = vpop.f32.mrb[61].mxu0 }
 0x16f   :  { %v5489_v63 = vadd.f32 %v5488_v62, %v5487_v13  ;;  %v1216_v7 = vadd.f32 %v1215_v49, %v1071_v36  ;;  %v5490_v30 = vpop.f32.mrb[62].mxu1  ;;  %v6010_v27 = vpop.f32.mrb[62].mxu0 }
 0x170   :  { %v1270_v51 = vmax.f32 %v1268_v6, %v1269_v12  ;;  %v5491_v42 = vpop.f32.mrb[63].mxu1  ;;  %v1218_v35 = vpop.f32.mrb[63].mxu0 }
 0x171   :  { %v1079_v10 = vadd.f32 %v5489_v63, %v7599_v56  ;;  %v1275_v54 = vsel %vm1248_vm0, %v1216_v7, -inf  ;;  %v5492_v50 = vadd.f32 %v5491_v42, %v5490_v30  ;;  %v7954_v9 = vadd.f32 %v1218_v35, %v1074_v26  ;;  %v6741_v56 = vld [vmem:[%s8992_s0 + $0xac] ss:$20 sps:$4 sm:$0xff]   ;;  %v6743_v26 = vld [vmem:[%s8992_s0 + $0xd4] ss:$20 sps:$4 sm:$0xff]  }
 0x172   :  { %v1271_v1 = vrot.slane %v1270_v51, 1  ;;  %v1276_v22 = vmax.f32 %v1200_v41, %v1275_v54  ;;  %2563 = vmatmul.mubr.bf16.gmra.mrb[168].mxu0 %v7632_v18  ;;  %2641 = vmatmul.mubr.bf16.gmra.mrb[168].mxu1 %v6740_v19  ;;  %v6744_v42 = vld [vmem:[%s8992_s0 + $0xd0] ss:$20 sps:$4 sm:$0xff]  }
 0x173   :  { %v7960_v8 = vadd.f32 %v6009_v57, %v1079_v10  ;;  %v1082_v28 = vadd.f32 %v5492_v50, %v7603_v3  ;;  %2570 = vmatprep.mubr.bf16.mxu0 %v7639_v0  ;;  %2647 = vmatprep.mubr.bf16.mxu1 %v6741_v56  ;;  %v6745_v54 = vld [vmem:[%s8992_s0 + $0xfc] ss:$20 sps:$4 sm:$0xff]  }
 0x174   :  { %v1272_v32 = vmax.f32 %v1270_v51, %v1271_v1  ;;  %v1278_v45 = vmax.f32 %v1276_v22, %v1203_v43  ;;  %v6742_v43 = vld [vmem:[%s8992_s0 + $0xa8] ss:$20 sps:$4 sm:$0xff]  }
 0x175   :  { %v7967_v18 = vadd.f32 %v6010_v27, %v1082_v28  ;;  %v5493_v29 = vpop.f32.mrb[64].mxu1  ;;  %v6013_v41 = vpop.f32.mrb[64].mxu0 }
 0x176   :  { %v1299_v33 = vsel %vm1248_vm0, %v1259_v40, %v1272_v32  ;;  %v1279_v11 = vmax.f32 %v1277_v25, %v1278_v45  ;;  %v5494_v21 = vpop.f32.mrb[65].mxu1  ;;  %v1231_v37 = vpop.f32.mrb[65].mxu0 }
 0x177   :  { %v5495_v3 = vadd.f32 %v5494_v21, %v5493_v29  ;;  %v5496_v23 = vpop.f32.mrb[66].mxu1  ;;  %v6014_v0 = vpop.f32.mrb[66].mxu0 }
 0x178   :  { %v1280_v61 = vrot.slane %v1279_v11, 4  ;;  %v5497_v38 = vpop.f32.mrb[67].mxu1  ;;  %v1234_v31 = vpop.f32.mrb[67].mxu0 }
 0x179   :  { %v5498_v46 = vadd.f32 %v5497_v38, %v5496_v23  ;;  %v1087_v36 = vadd.f32 %v5495_v3, %v7621_v14  ;;  %v6355_v3 = vld [vmem:[%s8997_s5] ss:$16 sps:$4 sm:$0xff]  }
 0x17a   :  { %v1281_v59 = vmax.f32 %v1279_v11, %v1280_v61  ;;  %2571 = vmatmul.mubr.bf16.gmra.mrb[172].mxu0 %v7654_v24  ;;  %2648 = vmatmul.mubr.bf16.gmra.mrb[172].mxu1 %v6742_v43  ;;  %v6747_v61 = vld [vmem:[%s8992_s0 + $0x124] ss:$20 sps:$4 sm:$0xff]  }
 0x17b   :  { %v1232_v39 = vadd.f32 %v1231_v37, %v1087_v36  ;;  %v1090_v52 = vadd.f32 %v5498_v46, %v7625_v20  ;;  %2578 = vmatprep.mubr.bf16.mxu0 %v7661_v34  ;;  %2655 = vmatprep.mubr.bf16.mxu1 %v6743_v26  ;;  %v6363_v46 = vld [vmem:[%s8997_s5 + $0x24] ss:$16 sps:$4 sm:$0xff]   ;;  %v6364_v43 = vld [vmem:[%s8997_s5 + $0x28] ss:$16 sps:$4 sm:$0xff]  }
 0x17c   :  { %v1282_v44 = vrot.slane %v1281_v59, 2 }
 0x17d   :  { %v1235_v14 = vadd.f32 %v1234_v31, %v1090_v52  ;;  %v5499_v47 = vpop.f32.mrb[68].mxu1  ;;  %v5643_v6 = vpop.f32.mrb[68].mxu0 }
 0x17e   :  { %v1283_v24 = vmax.f32 %v1281_v59, %v1282_v44  ;;  %v5500_v25 = vpop.f32.mrb[69].mxu1  ;;  %v5644_v13 = vpop.f32.mrb[69].mxu0 }
 0x17f   :  { %v1286_v57 = vmax.f32 %v7954_v9, %v1235_v14  ;;  %v5501_v12 = vadd.f32 %v5500_v25, %v5499_v47  ;;  %v5502_v62 = vpop.f32.mrb[70].mxu1  ;;  %v5645_v49 = vadd.f32 %v5644_v13, %v5643_v6  ;;  %v5646_v20 = vpop.f32.mrb[70].mxu0 }
 0x180   :  { %v1284_v63 = vrot.slane %v1283_v24, 1  ;;  %v5503_v34 = vpop.f32.mrb[71].mxu1  ;;  %v5647_v7 = vpop.f32.mrb[71].mxu0 }
 0x181   :  { %v1095_v30 = vadd.f32 %v5501_v12, %v7643_v60  ;;  %v5504_v27 = vadd.f32 %v5503_v34, %v5502_v62  ;;  %v5648_v17 = vadd.f32 %v5647_v7, %v5646_v20  ;;  %v6372_v12 = vld [vmem:[%s8997_s5 + $0x4c] ss:$16 sps:$4 sm:$0xff]   ;;  %v6370_v34 = vld [vmem:[%s8997_s5 + $0x48] ss:$16 sps:$4 sm:$0xff]  }
 0x182   :  { %v1285_v51 = vmax.f32 %v1283_v24, %v1284_v63  ;;  %2579 = vmatmul.mubr.bf16.gmra.mrb[176].mxu0 %v7678_v2  ;;  %2656 = vmatmul.mubr.bf16.gmra.mrb[176].mxu1 %v6744_v42  ;;  %v6367_v63 = vld [vmem:[%s8997_s5 + $0x40] ss:$16 sps:$4 sm:$0xff]  }
 0x183   :  { %v1240_v35 = vadd.f32 %v6013_v41, %v1095_v30  ;;  %v1098_v10 = vadd.f32 %v5504_v27, %v7647_v53  ;;  %2663 = vmatprep.mubr.bf16.mxu1 %v6745_v54  ;;  %6075 = vmatprep.mubr.bf16.mxu0 %v7686_v4  ;;  %v6748_v30 = vld [vmem:[%s8992_s0 + $0x120] ss:$20 sps:$4 sm:$0xff]  }
 0x184   :  { %v7992_v60 = vsel %vm1300_vm1, %v1299_v33, %v1285_v51  ;;  %v6360_v33 = vld [vmem:[%s8997_s5 + $0xc] ss:$16 sps:$4 sm:$0xff]  }
 0x185   :  { %v1287_v2 = vmax.f32 %v7960_v8, %v1240_v35  ;;  %v1243_v50 = vadd.f32 %v6014_v0, %v1098_v10  ;;  %v5543_v9 = vpop.f32.mrb[72].mxu1  ;;  %v5649_v1 = vpop.f32.mrb[72].mxu0  ;;  %v6357_v8 = vld [vmem:[%s8997_s5 + $0x4] ss:$16 sps:$4 sm:$0xff]   ;;  %v6746_v0 = vld [vmem:[%s8992_s0 + $0xf8] ss:$20 sps:$4 sm:$0xff]   ;;  %3575 = vmatprep.subr.bf16.mxu0 %v6360_v33 }
 0x186   :  { %v5544_v22 = vpop.f32.mrb[73].mxu1  ;;  %v5650_v19 = vpop.f32.mrb[73].mxu0  ;;  %3493 = vmatprep.subr.bf16.mxu1 %v6357_v8  ;;  %v6749_v27 = vld [vmem:[%s8992_s0 + $0x14c] ss:$20 sps:$4 sm:$0xff]   ;;  %v6375_v35 = vld [vmem:[%s8997_s5 + $0x64] ss:$16 sps:$4 sm:$0xff]  }
 0x187   :  { %v1290_v28 = vmax.f32 %v1286_v57, %v1287_v2  ;;  %v1288_v53 = vsel %vm1248_vm0, %v1243_v50, -inf  ;;  %v5545_v56 = vadd.f32 %v5544_v22, %v5543_v9  ;;  %v5546_v40 = vpop.f32.mrb[74].mxu1  ;;  %v5651_v32 = vadd.f32 %v5650_v19, %v5649_v1  ;;  %v5652_v45 = vpop.f32.mrb[74].mxu0  ;;  %3494 = vmatpush1.bf16.msra.mxu1 %v6355_v3  ;;  %v6369_v57 = vld [vmem:[%s8997_s5 + $0x44] ss:$16 sps:$4 sm:$0xff]   ;;  %v9019_v3 = vld [vmem:[#allocation6_spill] sm:$0xff] }
 0x188   :  { %v1289_v29 = vmax.f32 %v7967_v18, %v1288_v53  ;;  %v5547_v4 = vpop.f32.mrb[75].mxu1  ;;  %v5653_v41 = vpop.f32.mrb[75].mxu0  ;;  %v6358_v18 = vld [vmem:[%s8997_s5 + $0x8] ss:$16 sps:$4 sm:$0xff]   ;;  %3495 = vmatprep.subr.bf16.mxu1 %v6363_v46  ;;  %v6373_v2 = vld [vmem:[%s8997_s5 + $0x60] ss:$16 sps:$4 sm:$0xff]  }
 0x189   :  { %v5548_v11 = vadd.f32 %v5547_v4, %v5546_v40  ;;  %v5654_v21 = vadd.f32 %v5653_v41, %v5652_v45  ;;  %v8003_v37 = vadd.f32 %v5645_v49, %v5545_v56  ;;  %v6376_v50 = vld [vmem:[%s8997_s5 + $0x68] ss:$16 sps:$4 sm:$0xff]   ;;  %v6381_v45 = vld [vmem:[%s8997_s5 + $0x84] ss:$16 sps:$4 sm:$0xff]   ;;  %v6379_v33 = vld [vmem:[%s8997_s5 + $0x80] ss:$16 sps:$4 sm:$0xff]  }
 0x18a   :  { %v1291_v23 = vmax.f32 %v1289_v29, %v1232_v39  ;;  %2664 = vmatmul.mubr.bf16.gmra.mrb[180].mxu1 %v6746_v0  ;;  %6076 = vmatmul.mubr.bf16.vlgmr.msra.gmra.mrb[180].mxu0 %v7712_v55  ;;  %v6366_v55 = vld [vmem:[%s8997_s5 + $0x2c] ss:$16 sps:$4 sm:$0xff]   ;;  %v9020_v0 = vld [vmem:[#allocation7_spill] sm:$0xff] }
 0x18b   :  { %2669 = vmatprep.mubr.bf16.mxu1 %v6747_v61  ;;  %6079 = vmatprep.mubr.bf16.mxu0 %v7722_v15  ;;  %v8019_v38 = vadd.f32 %v5648_v17, %v5548_v11  ;;  %v6361_v15 = vld [vmem:[%s8997_s5 + $0x20] ss:$16 sps:$4 sm:$0xff]   ;;  %v6384_v29 = vld [vmem:[%s8997_s5 + $0x8c] ss:$16 sps:$4 sm:$0xff]   ;;  %v6382_v11 = vld [vmem:[%s8997_s5 + $0x88] ss:$16 sps:$4 sm:$0xff]  }
 0x18c   :  { %v1292_v31 = vmax.f32 %v1290_v28, %v1291_v23  ;;  %3576 = vmatpush1.bf16.msra.mxu0 %v6358_v18  ;;  %3496 = vmatpush1.bf16.msra.mxu1 %v6361_v15  ;;  %v9018_v17 = vld [vmem:[#allocation5_spill] sm:$0xff] }
 0x18d   :  { %v5549_v36 = vpop.f32.mrb[76].mxu1  ;;  %v5655_v59 = vpop.f32.mrb[76].mxu0  ;;  %3577 = vmatprep.subr.bf16.mxu0 %v6366_v55  ;;  %3497 = vmatprep.subr.bf16.mxu1 %v6369_v57  ;;  %v6751_v23 = vld [vmem:[%s8992_s0 + $0x174] ss:$20 sps:$4 sm:$0xff]  }
 0x18e   :  { %v1293_v39 = vrot.slane %v1292_v31, 4  ;;  %v5550_v52 = vpop.f32.mrb[77].mxu1  ;;  %v5656_v26 = vpop.f32.mrb[77].mxu0  ;;  %v6394_v57 = vld [vmem:[%s8997_s5 + $0xc8] ss:$16 sps:$4 sm:$0xff]  }
 0x18f   :  { %v5551_v44 = vadd.f32 %v5550_v52, %v5549_v36  ;;  %v5552_v14 = vpop.f32.mrb[78].mxu1  ;;  %v5657_v47 = vadd.f32 %v5656_v26, %v5655_v59  ;;  %v5658_v6 = vpop.f32.mrb[78].mxu0  ;;  %v6385_v36 = vld [vmem:[%s8997_s5 + $0xa0] ss:$16 sps:$4 sm:$0xff]   ;;  %v6388_v59 = vld [vmem:[%s8997_s5 + $0xa8] ss:$16 sps:$4 sm:$0xff]  }
 0x190   :  { %v1294_v24 = vmax.f32 %v1292_v31, %v1293_v39  ;;  %v5553_v25 = vpop.f32.mrb[79].mxu1  ;;  %v5659_v13 = vpop.f32.mrb[79].mxu0  ;;  %3578 = vmatpush1.bf16.msra.mxu0 %v6364_v43  ;;  %3498 = vmatpush1.bf16.msra.mxu1 %v6367_v63  ;;  %v6387_v31 = vld [vmem:[%s8997_s5 + $0xa4] ss:$16 sps:$4 sm:$0xff]  }
 0x191   :  { %v5554_v62 = vadd.f32 %v5553_v25, %v5552_v14  ;;  %v5660_v49 = vadd.f32 %v5659_v13, %v5658_v6  ;;  %v8039_v20 = vadd.f32 %v5651_v32, %v5551_v44  ;;  %3579 = vmatprep.subr.bf16.mxu0 %v6372_v12  ;;  %3499 = vmatprep.subr.bf16.mxu1 %v6375_v35  ;;  %v6396_v6 = vld [vmem:[%s8997_s5 + $0xcc] ss:$16 sps:$4 sm:$0xff]   ;;  %v6391_v13 = vld [vmem:[%s8997_s5 + $0xc0] ss:$16 sps:$4 sm:$0xff]  }
 0x192   :  { %v1295_v7 = vrot.slane %v1294_v24, 2  ;;  %2670 = vmatmul.mubr.bf16.gmra.mrb[184].mxu1 %v6748_v30  ;;  %6080 = vmatmul.mubr.bf16.gmra.mrb[184].mxu0 %v7754_v5  ;;  %v6378_v5 = vld [vmem:[%s8997_s5 + $0x6c] ss:$16 sps:$4 sm:$0xff]   ;;  %v6752_v12 = vld [vmem:[%s8992_s0 + $0x170] ss:$20 sps:$4 sm:$0xff]  }
 0x193   :  { %2677 = vmatprep.mubr.bf16.mxu1 %v6749_v27  ;;  %6083 = vmatprep.mubr.bf16.mxu0 %v9018_v17  ;;  %v8055_v51 = vadd.f32 %v5654_v21, %v5554_v62  ;;  %v6750_v21 = vld [vmem:[%s8992_s0 + $0x148] ss:$20 sps:$4 sm:$0xff]   ;;  %v6397_v27 = vld [vmem:[%s8997_s5 + $0xe0] ss:$16 sps:$4 sm:$0xff]  }
 0x194   :  { %v1296_v42 = vmax.f32 %v1294_v24, %v1295_v7  ;;  %3580 = vmatpush1.bf16.msra.mxu0 %v6370_v34  ;;  %3500 = vmatpush1.bf16.msra.mxu1 %v6373_v2  ;;  %v6753_v62 = vld [vmem:[%s8992_s0 + $0x19c] ss:$20 sps:$4 sm:$0xff]   ;;  %v6399_v34 = vld [vmem:[%s8997_s5 + $0xe4] ss:$16 sps:$4 sm:$0xff]   ;;  %v6400_v17 = vld [vmem:[%s8997_s5 + $0xe8] ss:$16 sps:$4 sm:$0xff]  }
 0x195   :  { %v5555_v10 = vpop.f32.mrb[80].mxu1  ;;  %v5661_v54 = vpop.f32.mrb[80].mxu0  ;;  %3581 = vmatprep.subr.bf16.mxu0 %v6378_v5  ;;  %3501 = vmatprep.subr.bf16.mxu1 %v6381_v45  ;;  %v6402_v7 = vld [vmem:[%s8997_s5 + $0xec] ss:$16 sps:$4 sm:$0xff]   ;;  %v9022_v45 = vld [vmem:[#allocation9_spill] sm:$0xff] }
 0x196   :  { %v1297_v9 = vrot.slane %v1296_v42, 1  ;;  %v5556_v1 = vpop.f32.mrb[81].mxu1  ;;  %v5662_v22 = vpop.f32.mrb[81].mxu0 }
 0x197   :  { %v5557_v19 = vadd.f32 %v5556_v1, %v5555_v10  ;;  %v5558_v28 = vpop.f32.mrb[82].mxu1  ;;  %v5664_v53 = vpop.f32.mrb[82].mxu0  ;;  %v6405_v1 = vld [vmem:[%s8997_s5 + $0x104] ss:$16 sps:$4 sm:$0xff]   ;;  %v6408_v22 = vld [vmem:[%s8997_s5 + $0x10c] ss:$16 sps:$4 sm:$0xff]  }
 0x198   :  { %v1298_v56 = vmax.f32 %v1296_v42, %v1297_v9  ;;  %v5559_v40 = vpop.f32.mrb[83].mxu1  ;;  %v5665_v32 = vpop.f32.mrb[83].mxu0  ;;  %3582 = vmatpush1.bf16.msra.mxu0 %v6376_v50  ;;  %3502 = vmatpush1.bf16.msra.mxu1 %v6379_v33  ;;  %v6411_v33 = vld [vmem:[%s8997_s5 + $0x124] ss:$16 sps:$4 sm:$0xff]  }
 0x199   :  { %v5560_v4 = vadd.f32 %v5559_v40, %v5558_v28  ;;  %v5666_v41 = vadd.f32 %v5665_v32, %v5664_v53  ;;  %v8075_v8 = vadd.f32 %v5657_v47, %v5557_v19  ;;  %3583 = vmatprep.subr.bf16.mxu0 %v6384_v29  ;;  %3503 = vmatprep.subr.bf16.mxu1 %v6387_v31  ;;  %v6393_v47 = vld [vmem:[%s8997_s5 + $0xc4] ss:$16 sps:$4 sm:$0xff]   ;;  %v6406_v40 = vld [vmem:[%s8997_s5 + $0x108] ss:$16 sps:$4 sm:$0xff]  }
 0x19a   :  { %2678 = vmatmul.mubr.bf16.gmra.mrb[188].mxu1 %v6750_v21  ;;  %6084 = vmatmul.mubr.bf16.gmra.mrb[188].mxu0 %v9019_v3  ;;  %v8089_v18 = vsel %vm1302_vm2, %v7992_v60, %v1298_v56  ;;  %v6390_v60 = vld [vmem:[%s8997_s5 + $0xac] ss:$16 sps:$4 sm:$0xff]   ;;  %v6403_v56 = vld [vmem:[%s8997_s5 + $0x100] ss:$16 sps:$4 sm:$0xff]   ;;  %v6755_v29 = vld [vmem:[%s8992_s0 + $0x1c4] ss:$20 sps:$4 sm:$0xff]  }
 0x19b   :  { %2685 = vmatprep.mubr.bf16.mxu1 %v6751_v23  ;;  %6087 = vmatprep.mubr.bf16.mxu0 %v9020_v0  ;;  %v8095_v61 = vadd.f32 %v5660_v49, %v5560_v4  ;;  %v9021_v49 = vld [vmem:[#allocation8_spill] sm:$0xff]  ;;  %v9023_v4 = vld [vmem:[#allocation10_spill] sm:$0xff]  ;;  %v6409_v23 = vld [vmem:[%s8997_s5 + $0x120] ss:$16 sps:$4 sm:$0xff]  }
 0x19c   :  { %3584 = vmatpush1.bf16.msra.mxu0 %v6382_v11  ;;  %3504 = vmatpush1.bf16.msra.mxu1 %v6385_v36  ;;  %v6754_v32 = vld [vmem:[%s8992_s0 + $0x198] ss:$20 sps:$4 sm:$0xff]  }
 0x19d   :  { %v5561_v46 = vpop.f32.mrb[84].mxu1  ;;  %v5667_v55 = vpop.f32.mrb[84].mxu0  ;;  %3585 = vmatprep.subr.bf16.mxu0 %v6390_v60  ;;  %3505 = vmatprep.subr.bf16.mxu1 %v6393_v47  ;;  %v6414_v11 = vld [vmem:[%s8997_s5 + $0x12c] ss:$16 sps:$4 sm:$0xff]   ;;  %v6412_v0 = vld [vmem:[%s8997_s5 + $0x128] ss:$16 sps:$4 sm:$0xff]  }
 0x19e   :  { %v5562_v15 = vpop.f32.mrb[85].mxu1  ;;  %v5668_v43 = vpop.f32.mrb[85].mxu0  ;;  %v6418_v47 = vld [vmem:[%s8997_s5 + $0x148] ss:$16 sps:$4 sm:$0xff]  }
 0x19f   :  { %v5564_v39 = vpop.f32.mrb[86].mxu1  ;;  %v5669_v52 = vadd.f32 %v5668_v43, %v5667_v55  ;;  %v5670_v26 = vpop.f32.mrb[86].mxu0 }
 0x1a0   :  { %v5565_v44 = vpop.f32.mrb[87].mxu1  ;;  %v5671_v14 = vpop.f32.mrb[87].mxu0  ;;  %3586 = vmatpush1.bf16.msra.mxu0 %v6388_v59  ;;  %3506 = vmatpush1.bf16.msra.mxu1 %v6391_v13 }
 0x1a1   :  { %v5566_v24 = vadd.f32 %v5565_v44, %v5564_v39  ;;  %v5672_v25 = vadd.f32 %v5671_v14, %v5670_v26  ;;  %3587 = vmatprep.subr.bf16.mxu0 %v6396_v6  ;;  %3507 = vmatprep.subr.bf16.mxu1 %v6399_v34  ;;  %v6417_v39 = vld [vmem:[%s8997_s5 + $0x144] ss:$16 sps:$4 sm:$0xff]   ;;  %v6415_v14 = vld [vmem:[%s8997_s5 + $0x140] ss:$16 sps:$4 sm:$0xff]   ;;  %v6424_v34 = vld [vmem:[%s8997_s5 + $0x168] ss:$16 sps:$4 sm:$0xff]  }
 0x1a2   :  { %2686 = vmatmul.mubr.bf16.gmra.mrb[192].mxu1 %v6752_v12  ;;  %6088 = vmatmul.mubr.bf16.gmra.mrb[192].mxu0 %v7835_v58  ;;  %v6756_v6 = vld [vmem:[%s8992_s0 + $0x1c0] ss:$20 sps:$4 sm:$0xff]   ;;  %v6426_v12 = vld [vmem:[%s8997_s5 + $0x16c] ss:$16 sps:$4 sm:$0xff]  }
 0x1a3   :  { %2692 = vmatprep.mubr.bf16.mxu1 %v6753_v62  ;;  %6091 = vmatprep.mubr.bf16.mxu0 %v9021_v49  ;;  %v8129_v63 = vadd.f32 %v5666_v41, %v5566_v24  ;;  %v6757_v24 = vld [vmem:[%s8992_s0 + $0x1ec] ss:$20 sps:$4 sm:$0xff]  }
 0x1a4   :  { %3588 = vmatpush1.bf16.msra.mxu0 %v6394_v57  ;;  %3508 = vmatpush1.bf16.msra.mxu1 %v6397_v27  ;;  %v6423_v57 = vld [vmem:[%s8997_s5 + $0x164] ss:$16 sps:$4 sm:$0xff]   ;;  %v6421_v49 = vld [vmem:[%s8997_s5 + $0x160] ss:$16 sps:$4 sm:$0xff]  }
 0x1a5   :  { %v5567_v58 = vpop.f32.mrb[88].mxu1  ;;  %v5673_v30 = vpop.f32.mrb[88].mxu0  ;;  %3589 = vmatprep.subr.bf16.mxu0 %v6402_v7  ;;  %3509 = vmatprep.subr.bf16.mxu1 %v6405_v1  ;;  %v6430_v1 = vld [vmem:[%s8997_s5 + $0x188] ss:$16 sps:$4 sm:$0xff]  }
 0x1a6   :  { %v5568_v42 = vpop.f32.mrb[89].mxu1  ;;  %v5674_v35 = vpop.f32.mrb[89].mxu0 }
 0x1a7   :  { %v5569_v5 = vadd.f32 %v5568_v42, %v5567_v58  ;;  %v5570_v10 = vpop.f32.mrb[90].mxu1  ;;  %v5675_v54 = vadd.f32 %v5674_v35, %v5673_v30  ;;  %v5676_v2 = vpop.f32.mrb[90].mxu0 }
 0x1a8   :  { %v5571_v50 = vpop.f32.mrb[91].mxu1  ;;  %v5677_v9 = vpop.f32.mrb[91].mxu0  ;;  %3590 = vmatpush1.bf16.msra.mxu0 %v6400_v17  ;;  %3510 = vmatpush1.bf16.msra.mxu1 %v6403_v56  ;;  %v6759_v56 = vld [vmem:[%s8992_s0 + $0x214] ss:$20 sps:$4 sm:$0xff]  }
 0x1a9   :  { %v5572_v19 = vadd.f32 %v5571_v50, %v5570_v10  ;;  %v5678_v28 = vadd.f32 %v5677_v9, %v5676_v2  ;;  %v8149_v53 = vadd.f32 %v5669_v52, %v5569_v5  ;;  %3591 = vmatprep.subr.bf16.mxu0 %v6408_v22  ;;  %3511 = vmatprep.subr.bf16.mxu1 %v6411_v33  ;;  %v6420_v52 = vld [vmem:[%s8997_s5 + $0x14c] ss:$16 sps:$4 sm:$0xff]   ;;  %v6429_v10 = vld [vmem:[%s8997_s5 + $0x184] ss:$16 sps:$4 sm:$0xff]   ;;  %v6427_v9 = vld [vmem:[%s8997_s5 + $0x180] ss:$16 sps:$4 sm:$0xff]  }
 0x1aa   :  { %2693 = vmatmul.mubr.bf16.gmra.mrb[196].mxu1 %v6754_v32  ;;  %6092 = vmatmul.mubr.bf16.gmra.mrb[196].mxu0 %v9022_v45  ;;  %v6758_v22 = vld [vmem:[%s8992_s0 + $0x1e8] ss:$20 sps:$4 sm:$0xff]  }
 0x1ab   :  { %2699 = vmatprep.mubr.bf16.mxu1 %v6755_v29  ;;  %6095 = vmatprep.mubr.bf16.mxu0 %v9023_v4  ;;  %v8165_v41 = vadd.f32 %v5672_v25, %v5572_v19  ;;  %v9024_v25 = vld [vmem:[#allocation11_spill] sm:$0xff]  ;;  %v6436_v45 = vld [vmem:[%s8997_s5 + $0x1a8] ss:$16 sps:$4 sm:$0xff]  }
 0x1ac   :  { %3592 = vmatpush1.bf16.msra.mxu0 %v6406_v40  ;;  %3512 = vmatpush1.bf16.msra.mxu1 %v6409_v23  ;;  %v6435_v19 = vld [vmem:[%s8997_s5 + $0x1a4] ss:$16 sps:$4 sm:$0xff]  }
 0x1ad   :  { %v5573_v21 = vpop.f32.mrb[92].mxu1  ;;  %v5679_v3 = vpop.f32.mrb[92].mxu0  ;;  %3593 = vmatprep.subr.bf16.mxu0 %v6414_v11  ;;  %3513 = vmatprep.subr.bf16.mxu1 %v6417_v39 }
 0x1ae   :  { %v5574_v31 = vpop.f32.mrb[93].mxu1  ;;  %v5680_v60 = vpop.f32.mrb[93].mxu0 }
 0x1af   :  { %v5575_v46 = vadd.f32 %v5574_v31, %v5573_v21  ;;  %v5576_v55 = vpop.f32.mrb[94].mxu1  ;;  %v5681_v36 = vadd.f32 %v5680_v60, %v5679_v3  ;;  %v5682_v59 = vpop.f32.mrb[94].mxu0  ;;  %v6441_v31 = vld [vmem:[%s8997_s5 + $0x1c4] ss:$16 sps:$4 sm:$0xff]  }
 0x1b0   :  { %v5577_v15 = vpop.f32.mrb[95].mxu1  ;;  %v5683_v43 = vpop.f32.mrb[95].mxu0  ;;  %3594 = vmatpush1.bf16.msra.mxu0 %v6412_v0  ;;  %3514 = vmatpush1.bf16.msra.mxu1 %v6415_v14  ;;  %v6442_v59 = vld [vmem:[%s8997_s5 + $0x1c8] ss:$16 sps:$4 sm:$0xff]  }
 0x1b1   :  { %v5578_v26 = vadd.f32 %v5577_v15, %v5576_v55  ;;  %v8185_v44 = vadd.f32 %v5675_v54, %v5575_v46  ;;  %3595 = vmatprep.subr.bf16.mxu0 %v6420_v52  ;;  %3515 = vmatprep.subr.bf16.mxu1 %v6423_v57  ;;  %v6432_v54 = vld [vmem:[%s8997_s5 + $0x18c] ss:$16 sps:$4 sm:$0xff]   ;;  %v6760_v43 = vld [vmem:[%s8992_s0 + $0x210] ss:$20 sps:$4 sm:$0xff]  }
 0x1b2   :  { %2700 = vmatmul.mubr.bf16.gmra.mrb[200].mxu1 %v6756_v6  ;;  %6096 = vmatmul.mubr.bf16.gmra.mrb[200].mxu0 %v7882_v48  ;;  %v6444_v15 = vld [vmem:[%s8997_s5 + $0x1cc] ss:$16 sps:$4 sm:$0xff]   ;;  %v6447_v52 = vld [vmem:[%s8997_s5 + $0x1e4] ss:$16 sps:$4 sm:$0xff]   ;;  %v6445_v6 = vld [vmem:[%s8997_s5 + $0x1e0] ss:$16 sps:$4 sm:$0xff]  }
 0x1b3   :  { %2707 = vmatprep.mubr.bf16.mxu1 %v6757_v24  ;;  %6099 = vmatprep.mubr.bf16.mxu0 %v9024_v25  ;;  %v8201_v13 = vadd.f32 %v5678_v28, %v5578_v26  ;;  %v6438_v28 = vld [vmem:[%s8997_s5 + $0x1ac] ss:$16 sps:$4 sm:$0xff]   ;;  %v6448_v24 = vld [vmem:[%s8997_s5 + $0x1e8] ss:$16 sps:$4 sm:$0xff]  }
 0x1b4   :  { %3596 = vmatpush1.bf16.msra.mxu0 %v6418_v47  ;;  %3516 = vmatpush1.bf16.msra.mxu1 %v6421_v49  ;;  %v6450_v26 = vld [vmem:[%s8997_s5 + $0x1ec] ss:$16 sps:$4 sm:$0xff]  }
 0x1b5   :  { %v5579_v48 = vpop.f32.mrb[96].mxu1  ;;  %v5685_v62 = vpop.f32.mrb[96].mxu0  ;;  %3597 = vmatprep.subr.bf16.mxu0 %v6426_v12  ;;  %3517 = vmatprep.subr.bf16.mxu1 %v6429_v10 }
 0x1b6   :  { %v5580_v7 = vpop.f32.mrb[97].mxu1  ;;  %v5686_v58 = vpop.f32.mrb[97].mxu0 }
 0x1b7   :  { %v5581_v30 = vadd.f32 %v5580_v7, %v5579_v48  ;;  %v5582_v27 = vpop.f32.mrb[98].mxu1  ;;  %v5687_v17 = vadd.f32 %v5686_v58, %v5685_v62  ;;  %v5688_v42 = vpop.f32.mrb[98].mxu0 }
 0x1b8   :  { %v5583_v35 = vpop.f32.mrb[99].mxu1  ;;  %v5689_v5 = vpop.f32.mrb[99].mxu0  ;;  %3598 = vmatpush1.bf16.msra.mxu0 %v6424_v34  ;;  %3518 = vmatpush1.bf16.msra.mxu1 %v6427_v9 }
 0x1b9   :  { %v5690_v2 = vadd.f32 %v5689_v5, %v5688_v42  ;;  %v8221_v50 = vadd.f32 %v5681_v36, %v5581_v30  ;;  %3599 = vmatprep.subr.bf16.mxu0 %v6432_v54  ;;  %3519 = vmatprep.subr.bf16.mxu1 %v6435_v19  ;;  %v6439_v36 = vld [vmem:[%s8997_s5 + $0x1c0] ss:$16 sps:$4 sm:$0xff]  }
 0x1ba   :  { %2708 = vmatmul.mubr.bf16.gmra.mrb[204].mxu1 %v6758_v22  ;;  %6100 = vmatmul.mubr.bf16.gmra.mrb[204].mxu0 %v7906_v16  ;;  %v6433_v16 = vld [vmem:[%s8997_s5 + $0x1a0] ss:$16 sps:$4 sm:$0xff]  }
 0x1bb   :  { %2715 = vmatprep.mubr.bf16.mxu1 %v6759_v56 }
 0x1bc   :  { %3600 = vmatpush1.bf16.msra.mxu0 %v6430_v1  ;;  %3520 = vmatpush1.bf16.msra.mxu1 %v6433_v16 }
 0x1bd   :  { %v5585_v40 = vpop.f32.mrb[100].mxu1  ;;  %v5691_v32 = vpop.f32.mrb[100].mxu0  ;;  %3601 = vmatprep.subr.bf16.mxu0 %v6438_v28  ;;  %3521 = vmatprep.subr.bf16.mxu1 %v6441_v31 }
 0x1be   :  { %v5586_v29 = vpop.f32.mrb[101].mxu1  ;;  %v5692_v4 = vpop.f32.mrb[101].mxu0 }
 0x1bf   :  { %v5587_v33 = vadd.f32 %v5586_v29, %v5585_v40  ;;  %v5588_v11 = vpop.f32.mrb[102].mxu1  ;;  %v5693_v21 = vadd.f32 %v5692_v4, %v5691_v32  ;;  %v5694_v3 = vpop.f32.mrb[102].mxu0 }
 0x1c0   :  { %v5589_v23 = vpop.f32.mrb[103].mxu1  ;;  %v5695_v0 = vpop.f32.mrb[103].mxu0  ;;  %3602 = vmatpush1.bf16.msra.mxu0 %v6436_v45  ;;  %3522 = vmatpush1.bf16.msra.mxu1 %v6439_v36 }
 0x1c1   :  { %v5590_v60 = vadd.f32 %v5589_v23, %v5588_v11  ;;  %v5696_v46 = vadd.f32 %v5695_v0, %v5694_v3  ;;  %v8251_v55 = vadd.f32 %v5687_v17, %v5587_v33  ;;  %3603 = vmatprep.subr.bf16.mxu0 %v6444_v15  ;;  %3523 = vmatprep.subr.bf16.mxu1 %v6447_v52 }
 0x1c2   :  { %2716 = vmatmul.mubr.bf16.gmra.mrb[208].mxu1 %v6760_v43 }
 0x1c3   :  { %v8265_v39 = vadd.f32 %v5690_v2, %v5590_v60 }
 0x1c4   :  { %3604 = vmatpush1.bf16.msra.mxu0 %v6442_v59  ;;  %3524 = vmatpush1.bf16.msra.mxu1 %v6445_v6 }
 0x1c5   :  { %v5591_v14 = vpop.f32.mrb[104].mxu1  ;;  %v5697_v47 = vpop.f32.mrb[104].mxu0  ;;  %3605 = vmatprep.subr.bf16.mxu0 %v6450_v26 }
 0x1c6   :  { %v5592_v25 = vpop.f32.mrb[105].mxu1  ;;  %v5698_v57 = vpop.f32.mrb[105].mxu0 }
 0x1c7   :  { %v5593_v12 = vadd.f32 %v5592_v25, %v5591_v14  ;;  %v5594_v48 = vpop.f32.mrb[106].mxu1  ;;  %v5699_v62 = vadd.f32 %v5698_v57, %v5697_v47  ;;  %v5700_v49 = vpop.f32.mrb[106].mxu0 }
 0x1c8   :  { %v5595_v34 = vpop.f32.mrb[107].mxu1  ;;  %v5701_v7 = vpop.f32.mrb[107].mxu0  ;;  %3606 = vmatpush1.bf16.msra.mxu0 %v6448_v24 }
 0x1c9   :  { %v5596_v58 = vadd.f32 %v5595_v34, %v5594_v48  ;;  %v5702_v30 = vadd.f32 %v5701_v7, %v5700_v49  ;;  %v8279_v27 = vadd.f32 %v5693_v21, %v5593_v12 }
 0x1cb   :  { %v8281_v17 = vadd.f32 %v5696_v46, %v5596_v58 }
 0x1cd   :  { %v5597_v42 = vpop.f32.mrb[108].mxu1  ;;  %v5703_v35 = vpop.f32.mrb[108].mxu0 }
 0x1ce   :  { %v5598_v5 = vpop.f32.mrb[109].mxu1  ;;  %v5704_v10 = vpop.f32.mrb[109].mxu0 }
 0x1cf   :  { %v5599_v54 = vadd.f32 %v5598_v5, %v5597_v42  ;;  %v5600_v2 = vpop.f32.mrb[110].mxu1  ;;  %v5706_v9 = vpop.f32.mrb[110].mxu0 }
 0x1d0   :  { %v5601_v1 = vpop.f32.mrb[111].mxu1  ;;  %v5707_v22 = vpop.f32.mrb[111].mxu0 }
 0x1d1   :  { %v5602_v19 = vadd.f32 %v5601_v1, %v5600_v2  ;;  %v5708_v28 = vadd.f32 %v5707_v22, %v5706_v9  ;;  %v8283_v56 = vadd.f32 %v5699_v62, %v5599_v54 }
 0x1d3   :  { %v8285_v40 = vadd.f32 %v5702_v30, %v5602_v19 }
 0x1d5   :  { %v5603_v32 = vpop.f32.mrb[112].mxu1  ;;  %v5709_v16 = vpop.f32.mrb[112].mxu0 }
 0x1d6   :  { %v5604_v45 = vpop.f32.mrb[113].mxu1  ;;  %v5710_v29 = vpop.f32.mrb[113].mxu0 }
 0x1d7   :  { %v5606_v4 = vpop.f32.mrb[114].mxu1  ;;  %v5711_v33 = vadd.f32 %v5710_v29, %v5709_v16  ;;  %v5712_v11 = vpop.f32.mrb[114].mxu0 }
 0x1d8   :  { %v5607_v21 = vpop.f32.mrb[115].mxu1  ;;  %v5713_v3 = vpop.f32.mrb[115].mxu0 }
 0x1d9   :  { %v5608_v23 = vadd.f32 %v5607_v21, %v5606_v4  ;;  %v5714_v0 = vadd.f32 %v5713_v3, %v5712_v11 }
 0x1db   :  { %v8287_v31 = vadd.f32 %v5708_v28, %v5608_v23 }
 0x1dd   :  { %v5609_v60 = vpop.f32.mrb[116].mxu1  ;;  %v5715_v46 = vpop.f32.mrb[116].mxu0 }
 0x1de   :  { %v5610_v36 = vpop.f32.mrb[117].mxu1  ;;  %v5716_v59 = vpop.f32.mrb[117].mxu0 }
 0x1df   :  { %v5611_v15 = vadd.f32 %v5610_v36, %v5609_v60  ;;  %v5612_v43 = vpop.f32.mrb[118].mxu1  ;;  %v5717_v52 = vadd.f32 %v5716_v59, %v5715_v46  ;;  %v5718_v26 = vpop.f32.mrb[118].mxu0 }
 0x1e0   :  { %v5613_v14 = vpop.f32.mrb[119].mxu1  ;;  %v5719_v47 = vpop.f32.mrb[119].mxu0 }
 0x1e1   :  { %v5614_v6 = vadd.f32 %v5613_v14, %v5612_v43  ;;  %v5720_v24 = vadd.f32 %v5719_v47, %v5718_v26  ;;  %v8289_v25 = vadd.f32 %v5711_v33, %v5611_v15 }
 0x1e3   :  { %v8291_v57 = vadd.f32 %v5714_v0, %v5614_v6 }
 0x1e5   :  { %v5615_v12 = vpop.f32.mrb[120].mxu1  ;;  %v5721_v48 = vpop.f32.mrb[120].mxu0 }
 0x1e6   :  { %v5616_v62 = vpop.f32.mrb[121].mxu1  ;;  %v5722_v49 = vpop.f32.mrb[121].mxu0 }
 0x1e7   :  { %v5617_v34 = vadd.f32 %v5616_v62, %v5615_v12  ;;  %v5618_v7 = vpop.f32.mrb[122].mxu1  ;;  %v5723_v58 = vadd.f32 %v5722_v49, %v5721_v48  ;;  %v5724_v30 = vpop.f32.mrb[122].mxu0 }
 0x1e8   :  { %v5619_v42 = vpop.f32.mrb[123].mxu1  ;;  %v5725_v35 = vpop.f32.mrb[123].mxu0 }
 0x1e9   :  { %v5620_v5 = vadd.f32 %v5619_v42, %v5618_v7  ;;  %v8293_v10 = vadd.f32 %v5717_v52, %v5617_v34 }
 0x1eb   :  { %v8295_v54 = vadd.f32 %v5720_v24, %v5620_v5 }
 0x1ed   :  { %v5621_v2 = vpop.f32.mrb[124].mxu1  ;;  %v5765_v9 = vpop.f32.mrb[124].mxu0 }
 0x1ee   :  { %v5622_v1 = vpop.f32.mrb[125].mxu1  ;;  %v5766_v22 = vpop.f32.mrb[125].mxu0 }
 0x1ef   :  { %v5623_v19 = vadd.f32 %v5622_v1, %v5621_v2  ;;  %v5624_v28 = vpop.f32.mrb[126].mxu1  ;;  %v8297_v32 = vadd.f32 %v5766_v22, %v5765_v9  ;;  %v5768_v16 = vpop.f32.mrb[126].mxu0 }
 0x1f0   :  { %v5625_v45 = vpop.f32.mrb[127].mxu1  ;;  %v5769_v29 = vpop.f32.mrb[127].mxu0 }
 0x1f1   :  { %v8299_v4 = vadd.f32 %v5769_v29, %v5768_v16  ;;  %v8301_v33 = vadd.f32 %v5723_v58, %v5623_v19 }
 0x1f5   :  { %v6033_v11 = vpop.f32.mrb[128].mxu1  ;;  %v5771_v21 = vpop.f32.mrb[128].mxu0 }
 0x1f6   :  { %v1970_v3 = vadd.f32 %v6033_v11, %v8039_v20  ;;  %v1961_v23 = vpop.f32.mrb[129].mxu1  ;;  %v5772_v0 = vpop.f32.mrb[129].mxu0 }
 0x1f7   :  { %v1962_v60 = vadd.f32 %v1961_v23, %v8003_v37  ;;  %v6034_v46 = vpop.f32.mrb[130].mxu1  ;;  %v8305_v36 = vadd.f32 %v5772_v0, %v5771_v21  ;;  %v5774_v59 = vpop.f32.mrb[130].mxu0 }
 0x1f8   :  { %v1973_v15 = vadd.f32 %v6034_v46, %v8055_v51  ;;  %v1964_v43 = vpop.f32.mrb[131].mxu1  ;;  %v5775_v52 = vpop.f32.mrb[131].mxu0 }
 0x1f9   :  { %v1965_v26 = vadd.f32 %v1964_v43, %v8019_v38  ;;  %v8309_v14 = vadd.f32 %v5775_v52, %v5774_v59 }
 0x1fa   :  { %v2072_v47 = vmax.f32 %v1970_v3, %v1973_v15 }
 0x1fd   :  { %v6037_v6 = vpop.f32.mrb[132].mxu1  ;;  %v5777_v24 = vpop.f32.mrb[132].mxu0 }
 0x1fe   :  { %v1977_v20 = vpop.f32.mrb[133].mxu1  ;;  %v5778_v12 = vpop.f32.mrb[133].mxu0 }
 0x1ff   :  { %v1978_v48 = vadd.f32 %v1977_v20, %v8075_v8  ;;  %v6038_v37 = vpop.f32.mrb[134].mxu1  ;;  %v8312_v62 = vadd.f32 %v5778_v12, %v5777_v24  ;;  %v5780_v49 = vpop.f32.mrb[134].mxu0 }
 0x200   :  { %v1988_v34 = vadd.f32 %v6038_v37, %v8129_v63  ;;  %v1980_v51 = vpop.f32.mrb[135].mxu1  ;;  %v5781_v7 = vpop.f32.mrb[135].mxu0 }
 0x201   :  { %v2068_v58 = vmax.f32 %v1962_v60, %v1978_v48  ;;  %v1981_v38 = vadd.f32 %v1980_v51, %v8095_v61 }
 0x203   :  { %v2069_v30 = vsel %vm1248_vm0, %v1981_v38, -inf }
 0x204   :  { %v2070_v42 = vmax.f32 %v1965_v26, %v2069_v30 }
 0x205   :  { %v6041_v35 = vpop.f32.mrb[136].mxu1  ;;  %v5783_v5 = vpop.f32.mrb[136].mxu0 }
 0x206   :  { %v2071_v2 = vmax.f32 %v2068_v58, %v2070_v42  ;;  %v2001_v9 = vadd.f32 %v6041_v35, %v8185_v44  ;;  %v1992_v8 = vpop.f32.mrb[137].mxu1  ;;  %v5784_v1 = vpop.f32.mrb[137].mxu0 }
 0x207   :  { %v1993_v22 = vadd.f32 %v1992_v8, %v8149_v53  ;;  %v6042_v19 = vpop.f32.mrb[138].mxu1  ;;  %v5786_v28 = vpop.f32.mrb[138].mxu0 }
 0x208   :  { %v2073_v63 = vmax.f32 %v2071_v2, %v2072_v47  ;;  %v2004_v16 = vadd.f32 %v6042_v19, %v8201_v13  ;;  %v1995_v45 = vpop.f32.mrb[139].mxu1  ;;  %v5787_v29 = vpop.f32.mrb[139].mxu0 }
 0x209   :  { %v1996_v61 = vadd.f32 %v1995_v45, %v8165_v41  ;;  %v8321_v11 = vadd.f32 %v5787_v29, %v5786_v28 }
 0x20a   :  { %v2080_v21 = vmax.f32 %v1988_v34, %v2004_v16  ;;  %v2074_v44 = vrot.slane %v2073_v63, 4 }
 0x20b   :  { %v2084_v3 = vmax.f32 %v1996_v61, %v2001_v9 }
 0x20c   :  { %v2075_v24 = vmax.f32 %v2073_v63, %v2074_v44 }
 0x20d   :  { %v6045_v23 = vpop.f32.mrb[140].mxu1  ;;  %v5789_v0 = vpop.f32.mrb[140].mxu0 }
 0x20e   :  { %v2016_v60 = vadd.f32 %v6045_v23, %v8251_v55  ;;  %v2008_v46 = vpop.f32.mrb[141].mxu1  ;;  %v5790_v53 = vpop.f32.mrb[141].mxu0  ;;  %v6453_v55 = vld [vmem:[%s8997_s5 + $0x204] ss:$16 sps:$4 sm:$0xff]  }
 0x20f   :  { %v2009_v59 = vadd.f32 %v2008_v46, %v8221_v50  ;;  %v6046_v15 = vpop.f32.mrb[142].mxu1  ;;  %v8325_v43 = vadd.f32 %v5790_v53, %v5789_v0  ;;  %v5792_v13 = vpop.f32.mrb[142].mxu0  ;;  %v6456_v50 = vld [vmem:[%s8997_s5 + $0x20c] ss:$16 sps:$4 sm:$0xff]   ;;  %3534 = vmatprep.subr.bf16.mxu1 %v6453_v55 }
 0x210   :  { %v2019_v52 = vadd.f32 %v6046_v15, %v8265_v39  ;;  %v2011_v41 = vpop.f32.mrb[143].mxu1  ;;  %v5793_v26 = vpop.f32.mrb[143].mxu0  ;;  %v2076_v39 = vrot.slane %v2075_v24, 2  ;;  %3616 = vmatprep.subr.bf16.mxu0 %v6456_v50 }
 0x211   :  { %v2081_v47 = vsel %vm1248_vm0, %v2009_v59, -inf  ;;  %v8329_v6 = vadd.f32 %v5793_v26, %v5792_v13 }
 0x212   :  { %v2082_v20 = vmax.f32 %v1993_v22, %v2081_v47 }
 0x214   :  { %v2083_v12 = vmax.f32 %v2080_v21, %v2082_v20 }
 0x215   :  { %v6049_v48 = vpop.f32.mrb[144].mxu1  ;;  %v5795_v37 = vpop.f32.mrb[144].mxu0 }
 0x216   :  { %v2085_v49 = vmax.f32 %v2083_v12, %v2084_v3  ;;  %v2032_v34 = vadd.f32 %v6049_v48, %v8283_v56  ;;  %v2023_v51 = vpop.f32.mrb[145].mxu1  ;;  %v5796_v7 = vpop.f32.mrb[145].mxu0  ;;  %v2077_v56 = vmax.f32 %v2075_v24, %v2076_v39 }
 0x217   :  { %v2024_v58 = vadd.f32 %v2023_v51, %v8279_v27  ;;  %v6050_v38 = vpop.f32.mrb[146].mxu1  ;;  %v8339_v30 = vadd.f32 %v5796_v7, %v5795_v37  ;;  %v5798_v42 = vpop.f32.mrb[146].mxu0 }
 0x218   :  { %v2086_v35 = vrot.slane %v2085_v49, 4  ;;  %v2092_v5 = vmax.f32 %v2016_v60, %v2032_v34  ;;  %v2035_v2 = vadd.f32 %v6050_v38, %v8285_v40  ;;  %v2026_v9 = vpop.f32.mrb[147].mxu1  ;;  %v5799_v8 = vpop.f32.mrb[147].mxu0  ;;  %v2078_v21 = vrot.slane %v2077_v56, 1 }
 0x219   :  { %v2027_v1 = vadd.f32 %v2026_v9, %v8281_v17  ;;  %v8343_v22 = vadd.f32 %v5799_v8, %v5798_v42 }
 0x21a   :  { %v2087_v19 = vmax.f32 %v2085_v49, %v2086_v35  ;;  %v2093_v28 = vsel %vm1248_vm0, %v2035_v2, -inf  ;;  %v2079_v41 = vmax.f32 %v2077_v56, %v2078_v21 }
 0x21b   :  { %v2094_v63 = vmax.f32 %v2019_v52, %v2093_v28  ;;  %v2096_v27 = vmax.f32 %v2024_v58, %v2027_v1 }
 0x21c   :  { %v2088_v16 = vrot.slane %v2087_v19, 2 }
 0x21d   :  { %v2095_v45 = vmax.f32 %v2092_v5, %v2094_v63  ;;  %v6053_v29 = vpop.f32.mrb[148].mxu1  ;;  %v5801_v61 = vpop.f32.mrb[148].mxu0 }
 0x21e   :  { %v2089_v3 = vmax.f32 %v2087_v19, %v2088_v16  ;;  %v2047_v40 = vadd.f32 %v6053_v29, %v8289_v25  ;;  %v2039_v23 = vpop.f32.mrb[149].mxu1  ;;  %v5802_v0 = vpop.f32.mrb[149].mxu0 }
 0x21f   :  { %v2097_v44 = vmax.f32 %v2095_v45, %v2096_v27  ;;  %v6054_v17 = vpop.f32.mrb[150].mxu1  ;;  %v5804_v60 = vpop.f32.mrb[150].mxu0 }
 0x220   :  { %v2090_v46 = vrot.slane %v2089_v3, 1  ;;  %v2050_v53 = vadd.f32 %v6054_v17, %v8291_v57  ;;  %v2041_v59 = vpop.f32.mrb[151].mxu1  ;;  %v5805_v15 = vpop.f32.mrb[151].mxu0 }
 0x221   :  { %v2098_v13 = vrot.slane %v2097_v44, 4  ;;  %v2042_v52 = vadd.f32 %v2041_v59, %v8287_v31  ;;  %v1304_v31 = vlaneseq }
 0x222   :  { %v2091_v26 = vmax.f32 %v2089_v3, %v2090_v46 }
 0x223   :  { %v2099_v47 = vmax.f32 %v2097_v44, %v2098_v13  ;;  %v8358_v8 = vshrl.u32 %v1304_v31, 7 }
 0x224   :  { %v2116_v24 = vsel %vm1248_vm0, %v2079_v41, %v2091_v26 }
 0x225   :  { %v2100_v20 = vrot.slane %v2099_v47, 2  ;;  %v6057_v25 = vpop.f32.mrb[152].mxu1  ;;  %v5807_v12 = vpop.f32.mrb[152].mxu0  ;;  %v8382_v26 = vsub.s32 1, %v8358_v8 }
 0x226   :  { %v2063_v55 = vadd.f32 %v6057_v25, %v8301_v33  ;;  %v2054_v50 = vpop.f32.mrb[153].mxu1  ;;  %v5808_v48 = vpop.f32.mrb[153].mxu0 }
 0x227   :  { %v2101_v37 = vmax.f32 %v2099_v47, %v2100_v20  ;;  %v2055_v57 = vadd.f32 %v2054_v50, %v8293_v10  ;;  %v6058_v39 = vpop.f32.mrb[154].mxu1  ;;  %v8352_v49 = vadd.f32 %v5808_v48, %v5807_v12  ;;  %v5810_v34 = vpop.f32.mrb[154].mxu0 }
 0x228   :  { %v2105_v51 = vsel %vm1248_vm0, %v2063_v55, -inf  ;;  %v2057_v7 = vpop.f32.mrb[155].mxu1  ;;  %v5811_v58 = vpop.f32.mrb[155].mxu0 }
 0x229   :  { %v2102_v38 = vrot.slane %v2101_v37, 1  ;;  %v2106_v42 = vmax.f32 %v2047_v40, %v2105_v51  ;;  %v2108_v35 = vmax.f32 %v2050_v53, %v2055_v57  ;;  %v2058_v5 = vadd.f32 %v2057_v7, %v8295_v54  ;;  %v8369_v40 = vld [vmem:[%s8994_s2] sm:$0x7] }
 0x22a   :  { %v8356_v33 = vadd.f32 %v5811_v58, %v5810_v34  ;;  %v8364_v54 = vsub.s32 0, %v8358_v8  ;;  %v2122_v57 = vrot.slane %v8369_v40, %v8382_v26  ;;  %v8398_v51 = vld [vmem:[%s8995_s3] ss:$0 sm:$0xff] }
 0x22b   :  { %v2103_v2 = vmax.f32 %v2101_v37, %v2102_v38  ;;  %v2104_v9 = vmax.f32 %v2042_v52, %v2058_v5 }
 0x22c   :  { %v1307_v46 = vrot.slane %v8369_v40, %v8364_v54 }
 0x22d   :  { %v2107_v10 = vmax.f32 %v2104_v9, %v2106_v42  ;;  %v5865_v1 = vpop.f32.mrb[156].mxu1  ;;  %v5813_v56 = vpop.f32.mrb[156].mxu0  ;;  %v2117_v19 = vsel %vm1300_vm1, %v2116_v24, %v2103_v2 }
 0x22e   :  { %v5866_v28 = vpop.f32.mrb[157].mxu1  ;;  %v5814_v63 = vpop.f32.mrb[157].mxu0  ;;  %v1308_v12 = vadd.f32 %v1307_v46, %v8089_v18 }
 0x22f   :  { %v2109_v27 = vmax.f32 %v2107_v10, %v2108_v35  ;;  %v5867_v16 = vadd.f32 %v5866_v28, %v5865_v1  ;;  %v5868_v45 = vpop.f32.mrb[158].mxu1  ;;  %v8361_v29 = vadd.f32 %v5814_v63, %v5813_v56  ;;  %v5816_v61 = vpop.f32.mrb[158].mxu0  ;;  %v8405_v1 = vld [vmem:[%s8996_s4] ss:$0 sm:$0xff] }
 0x230   :  { %v5869_v21 = vpop.f32.mrb[159].mxu1  ;;  %v5817_v3 = vpop.f32.mrb[159].mxu0  ;;  %v1309_v34 = vmax.f32 %v1308_v12, 0.0  ;;  %v6460_v12 = vld [vmem:[%s8997_s5 + $0x228] ss:$16 sps:$4 sm:$0xff]  }
 0x231   :  { %v2110_v23 = vrot.slane %v2109_v27, 4  ;;  %v5870_v0 = vadd.f32 %v5869_v21, %v5868_v45  ;;  %v8371_v44 = vadd.f32 %v5817_v3, %v5816_v61  ;;  %v8374_v17 = vadd.f32 %v5867_v16, %v8297_v32 }
 0x232   :  { %v1316_v9 = vmul.f32 %v8398_v51, %v1309_v34 }
 0x233   :  { %v2111_v60 = vmax.f32 %v2109_v27, %v2110_v23  ;;  %v8379_v53 = vadd.f32 %v5870_v0, %v8299_v4  ;;  %v6451_v0 = vld [vmem:[%s8997_s5 + $0x200] ss:$16 sps:$4 sm:$0xff]  }
 0x234   :  { %v1323_v27 = vadd.f32 %v8405_v1, %v1316_v9 }
 0x235   :  { %v2112_v59 = vrot.slane %v2111_v60, 2  ;;  %v5871_v15 = vpop.f32.mrb[160].mxu1  ;;  %v5819_v13 = vpop.f32.mrb[160].mxu0 }
 0x236   :  { %v5872_v52 = vpop.f32.mrb[161].mxu1  ;;  %v5820_v41 = vpop.f32.mrb[161].mxu0 }
 0x237   :  { %v2113_v47 = vmax.f32 %v2111_v60, %v2112_v59  ;;  %v5873_v24 = vadd.f32 %v5872_v52, %v5871_v15  ;;  %v5874_v20 = vpop.f32.mrb[162].mxu1  ;;  %v8384_v32 = vadd.f32 %v5820_v41, %v5819_v13  ;;  %v5822_v25 = vpop.f32.mrb[162].mxu0  ;;  %v2914_v59 = vpack.c.bf16 %v1323_v27, %v1323_v27  ;;  %v6459_v13 = vld [vmem:[%s8997_s5 + $0x224] ss:$16 sps:$4 sm:$0xff]   ;;  %v6462_v52 = vld [vmem:[%s8997_s5 + $0x22c] ss:$16 sps:$4 sm:$0xff]  }
 0x238   :  { %v5875_v55 = vpop.f32.mrb[163].mxu1  ;;  %v5823_v50 = vpop.f32.mrb[163].mxu0  ;;  %v6457_v25 = vld [vmem:[%s8997_s5 + $0x220] ss:$16 sps:$4 sm:$0xff]   ;;  %v6472_v27 = vld [vmem:[%s8997_s5 + $0x268] ss:$16 sps:$4 sm:$0xff]  }
 0x239   :  { %v2114_v4 = vrot.slane %v2113_v47, 1  ;;  %v5876_v48 = vadd.f32 %v5875_v55, %v5874_v20  ;;  %v8388_v37 = vadd.f32 %v5873_v24, %v8305_v36  ;;  %v6465_v50 = vld [vmem:[%s8997_s5 + $0x244] ss:$16 sps:$4 sm:$0xff]  }
 0x23b   :  { %v2115_v39 = vmax.f32 %v2113_v47, %v2114_v4  ;;  %v8393_v31 = vadd.f32 %v5876_v48, %v8309_v14  ;;  %v6468_v4 = vld [vmem:[%s8997_s5 + $0x24c] ss:$16 sps:$4 sm:$0xff]   ;;  %v6785_v48 = vmov 0  }
 0x23d   :  { %v5877_v18 = vpop.f32.mrb[164].mxu1  ;;  %v5825_v7 = vpop.f32.mrb[164].mxu0  ;;  %v2118_v58 = vsel %vm1302_vm2, %v2117_v19, %v2115_v39 }
 0x23e   :  { %v5878_v38 = vpop.f32.mrb[165].mxu1  ;;  %v5826_v36 = vpop.f32.mrb[165].mxu0  ;;  %v2123_v42 = vadd.f32 %v2122_v57, %v2118_v58  ;;  %v6466_v7 = vld [vmem:[%s8997_s5 + $0x248] ss:$16 sps:$4 sm:$0xff]  }
 0x23f   :  { %v5879_v35 = vadd.f32 %v5878_v38, %v5877_v18  ;;  %v5880_v5 = vpop.f32.mrb[166].mxu1  ;;  %v5828_v2 = vpop.f32.mrb[166].mxu0 }
 0x240   :  { %v5881_v10 = vpop.f32.mrb[167].mxu1  ;;  %v5829_v14 = vpop.f32.mrb[167].mxu0  ;;  %v2124_v56 = vmax.f32 %v2123_v42, 0.0  ;;  %v6474_v5 = vld [vmem:[%s8997_s5 + $0x26c] ss:$16 sps:$4 sm:$0xff]  }
 0x241   :  { %v8407_v28 = vadd.f32 %v5829_v14, %v5828_v2  ;;  %v8410_v19 = vadd.f32 %v5879_v35, %v8312_v62  ;;  %v6454_v62 = vld [vmem:[%s8997_s5 + $0x208] ss:$16 sps:$4 sm:$0xff]   ;;  %v6471_v35 = vld [vmem:[%s8997_s5 + $0x264] ss:$16 sps:$4 sm:$0xff]  }
 0x242   :  { %v2125_v63 = vmul.f32 %v8398_v51, %v2124_v56 }
 0x244   :  { %v2126_v16 = vadd.f32 %v8405_v1, %v2125_v63  ;;  %v6469_v63 = vld [vmem:[%s8997_s5 + $0x260] ss:$16 sps:$4 sm:$0xff]  }
 0x245   :  { %v5883_v45 = vpop.f32.mrb[168].mxu1  ;;  %v5831_v61 = vpop.f32.mrb[168].mxu0 }
 0x246   :  { %v5884_v21 = vpop.f32.mrb[169].mxu1  ;;  %v5832_v3 = vpop.f32.mrb[169].mxu0  ;;  %v2915_v23 = vpack.c.bf16 %v2126_v16, %v2126_v16  ;;  %v6480_v45 = vld [vmem:[%s8997_s5 + $0x28c] ss:$16 sps:$4 sm:$0xff]  }
 0x247   :  { %v5886_v60 = vpop.f32.mrb[170].mxu1  ;;  %v8421_v46 = vadd.f32 %v5832_v3, %v5831_v61  ;;  %v5834_v15 = vpop.f32.mrb[170].mxu0 }
 0x248   :  { %v5887_v41 = vpop.f32.mrb[171].mxu1  ;;  %3525 = vmatprep.mubr.bf16.mxu1 %v2915_v23  ;;  %3607 = vmatprep.mubr.bf16.mxu0 %v2915_v23  ;;  %v5835_v47 = vpop.f32.mrb[171].mxu0 }
 0x249   :  { %v5888_v24 = vadd.f32 %v5887_v41, %v5886_v60  ;;  %3526 = vmatmul.mubr.bf16.vlgmr.msra.gmra.mrb[212].mxu1 %v2914_v59  ;;  %3608 = vmatmul.mubr.bf16.vlgmr.msra.gmra.mrb[208].mxu0 %v2914_v59  ;;  %v8429_v20 = vadd.f32 %v5835_v47, %v5834_v15  ;;  %v6483_v15 = vld [vmem:[%s8997_s5 + $0x2a4] ss:$16 sps:$4 sm:$0xff]  }
 0x24a   :  { %3535 = vmatpush1.bf16.msra.mxu1 %v6451_v0  ;;  %3617 = vmatpush1.bf16.msra.mxu0 %v6454_v62  ;;  %v6478_v0 = vld [vmem:[%s8997_s5 + $0x288] ss:$16 sps:$4 sm:$0xff]  }
 0x24b   :  { %v8438_v55 = vadd.f32 %v5888_v24, %v8321_v11  ;;  %3536 = vmatprep.subr.bf16.mxu1 %v6459_v13  ;;  %3618 = vmatprep.subr.bf16.mxu0 %v6462_v52  ;;  %v6463_v11 = vld [vmem:[%s8997_s5 + $0x240] ss:$16 sps:$4 sm:$0xff]   ;;  %v6486_v13 = vld [vmem:[%s8997_s5 + $0x2ac] ss:$16 sps:$4 sm:$0xff]  }
 0x24c   :  { %3566 = vmatprep.mubr.bf16.mxu1 %v6785_v48  ;;  %3648 = vmatprep.mubr.bf16.mxu0 %v6785_v48 }
 0x24d   :  { %v5889_v57 = vpop.f32.mrb[172].mxu1  ;;  %v5837_v39 = vpop.f32.mrb[172].mxu0 }
 0x24e   :  { %v5890_v34 = vpop.f32.mrb[173].mxu1  ;;  %v5838_v18 = vpop.f32.mrb[173].mxu0  ;;  %3537 = vmatpush1.bf16.msra.mxu1 %v6457_v25  ;;  %3619 = vmatpush1.bf16.msra.mxu0 %v6460_v12  ;;  %v6481_v25 = vld [vmem:[%s8997_s5 + $0x2a0] ss:$16 sps:$4 sm:$0xff]   ;;  %v6484_v12 = vld [vmem:[%s8997_s5 + $0x2a8] ss:$16 sps:$4 sm:$0xff]  }
 0x24f   :  { %v5891_v58 = vadd.f32 %v5890_v34, %v5889_v57  ;;  %v5892_v38 = vpop.f32.mrb[174].mxu1  ;;  %v8452_v36 = vadd.f32 %v5838_v18, %v5837_v39  ;;  %v5840_v42 = vpop.f32.mrb[174].mxu0  ;;  %3538 = vmatprep.subr.bf16.mxu1 %v6465_v50  ;;  %3620 = vmatprep.subr.bf16.mxu0 %v6468_v4  ;;  %v6492_v4 = vld [vmem:[%s8997_s5 + $0x2cc] ss:$16 sps:$4 sm:$0xff]  }
 0x250   :  { %v5893_v2 = vpop.f32.mrb[175].mxu1  ;;  %v5841_v9 = vpop.f32.mrb[175].mxu0 }
 0x251   :  { %v5894_v10 = vadd.f32 %v5893_v2, %v5892_v38  ;;  %v8460_v14 = vadd.f32 %v5841_v9, %v5840_v42  ;;  %v8463_v56 = vadd.f32 %v5891_v58, %v8325_v43  ;;  %v6477_v43 = vld [vmem:[%s8997_s5 + $0x284] ss:$16 sps:$4 sm:$0xff]   ;;  %v6498_v42 = vld [vmem:[%s8997_s5 + $0x2ec] ss:$16 sps:$4 sm:$0xff]  }
 0x252   :  { %3539 = vmatpush1.bf16.msra.mxu1 %v6463_v11  ;;  %3621 = vmatpush1.bf16.msra.mxu0 %v6466_v7  ;;  %v6490_v11 = vld [vmem:[%s8997_s5 + $0x2c8] ss:$16 sps:$4 sm:$0xff]  }
 0x253   :  { %v8472_v16 = vadd.f32 %v5894_v10, %v8329_v6  ;;  %3540 = vmatprep.subr.bf16.mxu1 %v6471_v35  ;;  %3622 = vmatprep.subr.bf16.mxu0 %v6474_v5  ;;  %v6475_v6 = vld [vmem:[%s8997_s5 + $0x280] ss:$16 sps:$4 sm:$0xff]  }
 0x255   :  { %v5895_v61 = vpop.f32.mrb[176].mxu1  ;;  %v5843_v21 = vpop.f32.mrb[176].mxu0 }
 0x256   :  { %v5896_v3 = vpop.f32.mrb[177].mxu1  ;;  %v5844_v23 = vpop.f32.mrb[177].mxu0  ;;  %3541 = vmatpush1.bf16.msra.mxu1 %v6469_v63  ;;  %3623 = vmatpush1.bf16.msra.mxu0 %v6472_v27  ;;  %v6496_v63 = vld [vmem:[%s8997_s5 + $0x2e8] ss:$16 sps:$4 sm:$0xff]  }
 0x257   :  { %v5897_v62 = vadd.f32 %v5896_v3, %v5895_v61  ;;  %v5898_v60 = vpop.f32.mrb[178].mxu1  ;;  %v5846_v59 = vpop.f32.mrb[178].mxu0  ;;  %3542 = vmatprep.subr.bf16.mxu1 %v6477_v43  ;;  %3624 = vmatprep.subr.bf16.mxu0 %v6480_v45 }
 0x258   :  { %v5899_v52 = vpop.f32.mrb[179].mxu1  ;;  %v5847_v41 = vpop.f32.mrb[179].mxu0 }
 0x259   :  { %v5900_v47 = vadd.f32 %v5899_v52, %v5898_v60  ;;  %v8493_v24 = vadd.f32 %v5897_v62, %v8339_v30  ;;  %v6489_v30 = vld [vmem:[%s8997_s5 + $0x2c4] ss:$16 sps:$4 sm:$0xff]  }
 0x25a   :  { %3543 = vmatpush1.bf16.msra.mxu1 %v6475_v6  ;;  %3625 = vmatpush1.bf16.msra.mxu0 %v6478_v0 }
 0x25b   :  { %v8502_v50 = vadd.f32 %v5900_v47, %v8343_v22  ;;  %3544 = vmatprep.subr.bf16.mxu1 %v6483_v15  ;;  %3626 = vmatprep.subr.bf16.mxu0 %v6486_v13  ;;  %v6487_v22 = vld [vmem:[%s8997_s5 + $0x2c0] ss:$16 sps:$4 sm:$0xff]  }
 0x25d   :  { %v5901_v48 = vpop.f32.mrb[180].mxu1  ;;  %v6077_v57 = vpop.f32.mrb[180].mxu0 }
 0x25e   :  { %v2765_v39 = vadd.f32 %v6077_v57, %v8388_v37  ;;  %v5902_v34 = vpop.f32.mrb[181].mxu1  ;;  %v2756_v18 = vpop.f32.mrb[181].mxu0  ;;  %3545 = vmatpush1.bf16.msra.mxu1 %v6481_v25  ;;  %3627 = vmatpush1.bf16.msra.mxu0 %v6484_v12  ;;  %v6495_v37 = vld [vmem:[%s8997_s5 + $0x2e4] ss:$16 sps:$4 sm:$0xff]  }
 0x25f   :  { %v2757_v7 = vadd.f32 %v2756_v18, %v8374_v17  ;;  %v5904_v58 = vpop.f32.mrb[182].mxu1  ;;  %v6078_v38 = vpop.f32.mrb[182].mxu0  ;;  %3546 = vmatprep.subr.bf16.mxu1 %v6489_v30  ;;  %3628 = vmatprep.subr.bf16.mxu0 %v6492_v4  ;;  %v6493_v17 = vld [vmem:[%s8997_s5 + $0x2e0] ss:$16 sps:$4 sm:$0xff]  }
 0x260   :  { %v2768_v35 = vadd.f32 %v6078_v38, %v8393_v31  ;;  %v5905_v5 = vpop.f32.mrb[183].mxu1  ;;  %v2759_v2 = vpop.f32.mrb[183].mxu0  ;;  %v6501_v31 = vld [vmem:[%s9000_s8 + $0x4] ss:$16 sps:$4 sm:$0xff]  }
 0x261   :  { %v2760_v9 = vadd.f32 %v2759_v2, %v8379_v53  ;;  %v6504_v53 = vld [vmem:[%s9000_s8 + $0xc] ss:$16 sps:$4 sm:$0xff]  }
 0x262   :  { %v2862_v10 = vmax.f32 %v2765_v39, %v2768_v35  ;;  %3547 = vmatpush1.bf16.msra.mxu1 %v6487_v22  ;;  %3629 = vmatpush1.bf16.msra.mxu0 %v6490_v11 }
 0x263   :  { %3548 = vmatprep.subr.bf16.mxu1 %v6495_v37  ;;  %3630 = vmatprep.subr.bf16.mxu0 %v6498_v42 }
 0x265   :  { %v5907_v27 = vpop.f32.mrb[184].mxu1  ;;  %v6081_v43 = vpop.f32.mrb[184].mxu0 }
 0x266   :  { %v5908_v45 = vpop.f32.mrb[185].mxu1  ;;  %v2772_v61 = vpop.f32.mrb[185].mxu0  ;;  %3549 = vmatpush1.bf16.msra.mxu1 %v6493_v17  ;;  %3631 = vmatpush1.bf16.msra.mxu0 %v6496_v63 }
 0x267   :  { %v5909_v21 = vadd.f32 %v5908_v45, %v5907_v27  ;;  %v2773_v3 = vadd.f32 %v2772_v61, %v8410_v19  ;;  %v5910_v23 = vpop.f32.mrb[186].mxu1  ;;  %v6082_v6 = vpop.f32.mrb[186].mxu0  ;;  %4485 = vmatprep.subr.bf16.mxu1 %v6501_v31  ;;  %4567 = vmatprep.subr.bf16.mxu0 %v6504_v53 }
 0x268   :  { %v2782_v0 = vadd.f32 %v6082_v6, %v8438_v55  ;;  %v5911_v62 = vpop.f32.mrb[187].mxu1  ;;  %v2775_v60 = vpop.f32.mrb[187].mxu0 }
 0x269   :  { %v2859_v59 = vsel %vm1248_vm0, %v2773_v3, -inf  ;;  %v5912_v15 = vadd.f32 %v5911_v62, %v5910_v23  ;;  %v2672_v13 = vadd.f32 %v5909_v21, %v8352_v49 }
 0x26a   :  { %v2860_v52 = vmax.f32 %v2757_v7, %v2859_v59 }
 0x26b   :  { %v2675_v41 = vadd.f32 %v5912_v15, %v8356_v33 }
 0x26c   :  { %v2861_v47 = vmax.f32 %v2860_v52, %v2760_v9 }
 0x26d   :  { %v5913_v25 = vpop.f32.mrb[188].mxu1  ;;  %v6085_v12 = vpop.f32.mrb[188].mxu0 }
 0x26e   :  { %v2863_v19 = vmax.f32 %v2861_v47, %v2862_v10  ;;  %v2795_v30 = vadd.f32 %v6085_v12, %v8493_v24  ;;  %v5914_v4 = vpop.f32.mrb[189].mxu1  ;;  %v2786_v48 = vpop.f32.mrb[189].mxu0 }
 0x26f   :  { %v5915_v57 = vadd.f32 %v5914_v4, %v5913_v25  ;;  %v2787_v55 = vadd.f32 %v2786_v48, %v8463_v56  ;;  %v5916_v39 = vpop.f32.mrb[190].mxu1  ;;  %v6086_v34 = vpop.f32.mrb[190].mxu0 }
 0x270   :  { %v2864_v18 = vrot.slane %v2863_v19, 4  ;;  %v2798_v22 = vadd.f32 %v6086_v34, %v8502_v50  ;;  %v5917_v49 = vpop.f32.mrb[191].mxu1  ;;  %v2789_v11 = vpop.f32.mrb[191].mxu0 }
 0x271   :  { %v5918_v7 = vadd.f32 %v5917_v49, %v5916_v39  ;;  %v2790_v33 = vadd.f32 %v2789_v11, %v8472_v16  ;;  %v2680_v58 = vadd.f32 %v5915_v57, %v8361_v29 }
 0x272   :  { %v2865_v38 = vmax.f32 %v2863_v19, %v2864_v18  ;;  %v2870_v24 = vsel %vm1248_vm0, %v2798_v22, -inf }
 0x273   :  { %v2871_v37 = vmax.f32 %v2782_v0, %v2870_v24  ;;  %v2873_v42 = vmax.f32 %v2790_v33, %v2795_v30  ;;  %v2683_v35 = vadd.f32 %v5918_v7, %v8371_v44 }
 0x274   :  { %v2866_v9 = vrot.slane %v2865_v38, 2 }
 0x275   :  { %v2872_v56 = vmax.f32 %v2871_v37, %v2787_v55  ;;  %v5919_v5 = vpop.f32.mrb[192].mxu1  ;;  %v6089_v2 = vpop.f32.mrb[192].mxu0 }
 0x276   :  { %v2809_v10 = vadd.f32 %v6089_v2, %v2672_v13  ;;  %v5920_v50 = vpop.f32.mrb[193].mxu1  ;;  %v2802_v17 = vpop.f32.mrb[193].mxu0  ;;  %v2867_v21 = vmax.f32 %v2865_v38, %v2866_v9 }
 0x277   :  { %v2874_v63 = vmax.f32 %v2872_v56, %v2873_v42  ;;  %v5921_v31 = vadd.f32 %v5920_v50, %v5919_v5  ;;  %v5922_v53 = vpop.f32.mrb[194].mxu1  ;;  %v6090_v16 = vpop.f32.mrb[194].mxu0 }
 0x278   :  { %v2812_v27 = vadd.f32 %v6090_v16, %v2675_v41  ;;  %v5923_v29 = vpop.f32.mrb[195].mxu1  ;;  %v2804_v43 = vpop.f32.mrb[195].mxu0  ;;  %v2868_v0 = vrot.slane %v2867_v21, 1 }
 0x279   :  { %v2875_v45 = vrot.slane %v2874_v63, 4  ;;  %v2688_v61 = vadd.f32 %v5921_v31, %v8384_v32 }
 0x27a   :  { %v2869_v48 = vmax.f32 %v2867_v21, %v2868_v0 }
 0x27b   :  { %v2876_v3 = vmax.f32 %v2874_v63, %v2875_v45 }
 0x27d   :  { %v2877_v44 = vrot.slane %v2876_v3, 2  ;;  %v5925_v23 = vpop.f32.mrb[196].mxu1  ;;  %v6093_v6 = vpop.f32.mrb[196].mxu0 }
 0x27e   :  { %v2825_v62 = vadd.f32 %v6093_v6, %v2688_v61  ;;  %v5926_v60 = vpop.f32.mrb[197].mxu1  ;;  %v2816_v59 = vpop.f32.mrb[197].mxu0 }
 0x27f   :  { %v2878_v15 = vmax.f32 %v2876_v3, %v2877_v44  ;;  %v2817_v13 = vadd.f32 %v2816_v59, %v2680_v58  ;;  %v5928_v52 = vpop.f32.mrb[198].mxu1  ;;  %v6094_v47 = vpop.f32.mrb[198].mxu0 }
 0x280   :  { %v2881_v41 = vsel %vm1248_vm0, %v2825_v62, -inf  ;;  %v5929_v25 = vpop.f32.mrb[199].mxu1  ;;  %v2819_v12 = vpop.f32.mrb[199].mxu0 }
 0x281   :  { %v2879_v19 = vrot.slane %v2878_v15, 1  ;;  %v2882_v30 = vmax.f32 %v2809_v10, %v2881_v41  ;;  %v5930_v32 = vadd.f32 %v5929_v25, %v5928_v52  ;;  %v2820_v4 = vadd.f32 %v2819_v12, %v2683_v35 }
 0x283   :  { %v2880_v57 = vmax.f32 %v2878_v15, %v2879_v19  ;;  %v2883_v55 = vmax.f32 %v2882_v30, %v2812_v27  ;;  %v2884_v39 = vmax.f32 %v2817_v13, %v2820_v4  ;;  %v2697_v34 = vadd.f32 %v5930_v32, %v8407_v28 }
 0x285   :  { %v2903_v18 = vsel %vm1248_vm0, %v2869_v48, %v2880_v57  ;;  %v2885_v22 = vmax.f32 %v2883_v55, %v2884_v39  ;;  %v5931_v49 = vpop.f32.mrb[200].mxu1  ;;  %v6097_v11 = vpop.f32.mrb[200].mxu0 }
 0x286   :  { %v5932_v7 = vpop.f32.mrb[201].mxu1  ;;  %v2831_v33 = vpop.f32.mrb[201].mxu0 }
 0x287   :  { %v2886_v58 = vrot.slane %v2885_v22, 4  ;;  %v5933_v38 = vadd.f32 %v5932_v7, %v5931_v49  ;;  %v5934_v24 = vpop.f32.mrb[202].mxu1  ;;  %v6098_v37 = vpop.f32.mrb[202].mxu0  ;;  %v6499_v49 = vld [vmem:[%s9000_s8] ss:$16 sps:$4 sm:$0xff]  }
 0x288   :  { %v5935_v42 = vpop.f32.mrb[203].mxu1  ;;  %v2833_v56 = vpop.f32.mrb[203].mxu0  ;;  %v6510_v33 = vld [vmem:[%s9000_s8 + $0x2c] ss:$16 sps:$4 sm:$0xff]  }
 0x289   :  { %v2887_v35 = vmax.f32 %v2885_v22, %v2886_v58  ;;  %v2702_v5 = vadd.f32 %v5933_v38, %v8421_v46  ;;  %v5936_v2 = vadd.f32 %v5935_v42, %v5934_v24  ;;  %v2834_v9 = vadd.f32 %v2833_v56, %v2697_v34  ;;  %v6513_v58 = vld [vmem:[%s9000_s8 + $0x44] ss:$16 sps:$4 sm:$0xff]   ;;  %v6516_v38 = vld [vmem:[%s9000_s8 + $0x4c] ss:$16 sps:$4 sm:$0xff]   ;;  %v6511_v24 = vld [vmem:[%s9000_s8 + $0x40] ss:$16 sps:$4 sm:$0xff]  }
 0x28a   :  { %v6519_v42 = vld [vmem:[%s9000_s8 + $0x64] ss:$16 sps:$4 sm:$0xff]   ;;  %v6522_v56 = vld [vmem:[%s9000_s8 + $0x6c] ss:$16 sps:$4 sm:$0xff]  }
 0x28b   :  { %v2888_v10 = vrot.slane %v2887_v35, 2  ;;  %v2839_v28 = vadd.f32 %v6097_v11, %v2702_v5  ;;  %v2705_v50 = vadd.f32 %v5936_v2, %v8429_v20  ;;  %v6502_v11 = vld [vmem:[%s9000_s8 + $0x8] ss:$16 sps:$4 sm:$0xff]   ;;  %v6525_v2 = vld [vmem:[%s9000_s8 + $0x84] ss:$16 sps:$4 sm:$0xff]  }
 0x28c   :  { %v6520_v5 = vld [vmem:[%s9000_s8 + $0x68] ss:$16 sps:$4 sm:$0xff]  }
 0x28d   :  { %v2889_v17 = vmax.f32 %v2887_v35, %v2888_v10  ;;  %v5937_v63 = vpop.f32.mrb[204].mxu1  ;;  %v6101_v31 = vpop.f32.mrb[204].mxu0  ;;  %v2842_v53 = vadd.f32 %v6098_v37, %v2705_v50  ;;  %v6514_v37 = vld [vmem:[%s9000_s8 + $0x48] ss:$16 sps:$4 sm:$0xff]   ;;  %v6517_v35 = vld [vmem:[%s9000_s8 + $0x60] ss:$16 sps:$4 sm:$0xff]  }
 0x28e   :  { %v5938_v16 = vpop.f32.mrb[205].mxu1  ;;  %v2846_v27 = vpop.f32.mrb[205].mxu0  ;;  %v6523_v10 = vld [vmem:[%s9000_s8 + $0x80] ss:$16 sps:$4 sm:$0xff]   ;;  %v6531_v50 = vld [vmem:[%s9000_s8 + $0xa4] ss:$16 sps:$4 sm:$0xff]  }
 0x28f   :  { %v2890_v29 = vrot.slane %v2889_v17, 1  ;;  %v5939_v43 = vadd.f32 %v5938_v16, %v5937_v63  ;;  %v5940_v45 = vpop.f32.mrb[206].mxu1  ;;  %v6102_v61 = vpop.f32.mrb[206].mxu0  ;;  %v6529_v63 = vld [vmem:[%s9000_s8 + $0xa0] ss:$16 sps:$4 sm:$0xff]  }
 0x290   :  { %v5941_v21 = vpop.f32.mrb[207].mxu1  ;;  %v2849_v3 = vpop.f32.mrb[207].mxu0  ;;  %v6532_v31 = vld [vmem:[%s9000_s8 + $0xa8] ss:$16 sps:$4 sm:$0xff]   ;;  %v6540_v16 = vld [vmem:[%s9000_s8 + $0xcc] ss:$16 sps:$4 sm:$0xff]  }
 0x291   :  { %v2891_v44 = vmax.f32 %v2889_v17, %v2890_v29  ;;  %v5942_v46 = vadd.f32 %v5941_v21, %v5940_v45  ;;  %v2710_v23 = vadd.f32 %v5939_v43, %v8452_v36  ;;  %v8561_v36 = vsub.s32 2, %v8358_v8  ;;  %v6534_v17 = vld [vmem:[%s9000_s8 + $0xac] ss:$16 sps:$4 sm:$0xff]   ;;  %v6538_v29 = vld [vmem:[%s9000_s8 + $0xc8] ss:$16 sps:$4 sm:$0xff]  }
 0x292   :  { %v6543_v43 = vld [vmem:[%s9000_s8 + $0xe4] ss:$16 sps:$4 sm:$0xff]   ;;  %v6546_v45 = vld [vmem:[%s9000_s8 + $0xec] ss:$16 sps:$4 sm:$0xff]   ;;  %v6541_v61 = vld [vmem:[%s9000_s8 + $0xe0] ss:$16 sps:$4 sm:$0xff]  }
 0x293   :  { %v2904_v6 = vsel %vm1300_vm1, %v2903_v18, %v2891_v44  ;;  %v2847_v0 = vadd.f32 %v2846_v27, %v2710_v23  ;;  %v2713_v20 = vadd.f32 %v5942_v46, %v8460_v14  ;;  %v2909_v14 = vrot.slane %v8369_v40, %v8561_v36  ;;  %v6507_v40 = vld [vmem:[%s9000_s8 + $0x24] ss:$16 sps:$4 sm:$0xff]   ;;  %v6535_v27 = vld [vmem:[%s9000_s8 + $0xc0] ss:$16 sps:$4 sm:$0xff]   ;;  %v6544_v21 = vld [vmem:[%s9000_s8 + $0xe8] ss:$16 sps:$4 sm:$0xff]  }
 0x294   :  { %v6552_v44 = vld [vmem:[%s9000_s8 + $0x10c] ss:$16 sps:$4 sm:$0xff]   ;;  %v6547_v46 = vld [vmem:[%s9000_s8 + $0x100] ss:$16 sps:$4 sm:$0xff]   ;;  %v6550_v23 = vld [vmem:[%s9000_s8 + $0x108] ss:$16 sps:$4 sm:$0xff]  }
 0x295   :  { %v2895_v62 = vmax.f32 %v2842_v53, %v2847_v0  ;;  %v2850_v60 = vadd.f32 %v2849_v3, %v2713_v20  ;;  %v5943_v59 = vpop.f32.mrb[208].mxu1  ;;  %v6537_v53 = vld [vmem:[%s9000_s8 + $0xc4] ss:$16 sps:$4 sm:$0xff]   ;;  %v6558_v0 = vld [vmem:[%s9000_s8 + $0x12c] ss:$16 sps:$4 sm:$0xff]  }
 0x296   :  { %v5944_v15 = vpop.f32.mrb[209].mxu1  ;;  %v6549_v3 = vld [vmem:[%s9000_s8 + $0x104] ss:$16 sps:$4 sm:$0xff]   ;;  %v6553_v20 = vld [vmem:[%s9000_s8 + $0x120] ss:$16 sps:$4 sm:$0xff]  }
 0x297   :  { %v2892_v13 = vsel %vm1248_vm0, %v2850_v60, -inf  ;;  %v5946_v52 = vpop.f32.mrb[210].mxu1  ;;  %v6561_v60 = vld [vmem:[%s9000_s8 + $0x144] ss:$16 sps:$4 sm:$0xff]   ;;  %v6564_v59 = vld [vmem:[%s9000_s8 + $0x14c] ss:$16 sps:$4 sm:$0xff]  }
 0x298   :  { %v2893_v47 = vmax.f32 %v2834_v9, %v2892_v13  ;;  %v5947_v41 = vpop.f32.mrb[211].mxu1  ;;  %v6528_v9 = vld [vmem:[%s9000_s8 + $0x8c] ss:$16 sps:$4 sm:$0xff]   ;;  %v6559_v15 = vld [vmem:[%s9000_s8 + $0x140] ss:$16 sps:$4 sm:$0xff]  }
 0x299   :  { %v6562_v13 = vld [vmem:[%s9000_s8 + $0x148] ss:$16 sps:$4 sm:$0xff]   ;;  %v6567_v52 = vld [vmem:[%s9000_s8 + $0x164] ss:$16 sps:$4 sm:$0xff]   ;;  %v6565_v41 = vld [vmem:[%s9000_s8 + $0x160] ss:$16 sps:$4 sm:$0xff]  }
 0x29a   :  { %v2894_v25 = vmax.f32 %v2893_v47, %v2839_v28  ;;  %v6526_v28 = vld [vmem:[%s9000_s8 + $0x88] ss:$16 sps:$4 sm:$0xff]   ;;  %v6570_v47 = vld [vmem:[%s9000_s8 + $0x16c] ss:$16 sps:$4 sm:$0xff]  }
 0x29c   :  { %v2896_v12 = vmax.f32 %v2894_v25, %v2895_v62  ;;  %v6556_v62 = vld [vmem:[%s9000_s8 + $0x128] ss:$16 sps:$4 sm:$0xff]  }
 0x29d   :  { %v6568_v25 = vld [vmem:[%s9000_s8 + $0x168] ss:$16 sps:$4 sm:$0xff]  }
 0x29e   :  { %v2897_v19 = vrot.slane %v2896_v12, 4 }
 0x2a0   :  { %v2898_v30 = vmax.f32 %v2896_v12, %v2897_v19  ;;  %v6573_v12 = vld [vmem:[%s9000_s8 + $0x184] ss:$16 sps:$4 sm:$0xff]   ;;  %v6576_v19 = vld [vmem:[%s9000_s8 + $0x18c] ss:$16 sps:$4 sm:$0xff]  }
 0x2a2   :  { %v2899_v32 = vrot.slane %v2898_v30, 2 }
 0x2a4   :  { %v2900_v4 = vmax.f32 %v2898_v30, %v2899_v32  ;;  %v6571_v30 = vld [vmem:[%s9000_s8 + $0x180] ss:$16 sps:$4 sm:$0xff]   ;;  %v6574_v32 = vld [vmem:[%s9000_s8 + $0x188] ss:$16 sps:$4 sm:$0xff]  }
 0x2a6   :  { %v2901_v48 = vrot.slane %v2900_v4, 1 }
 0x2a8   :  { %v2902_v57 = vmax.f32 %v2900_v4, %v2901_v48  ;;  %v6579_v4 = vld [vmem:[%s9000_s8 + $0x1a4] ss:$16 sps:$4 sm:$0xff]   ;;  %v6582_v48 = vld [vmem:[%s9000_s8 + $0x1ac] ss:$16 sps:$4 sm:$0xff]  }
 0x2aa   :  { %v2905_v55 = vsel %vm1302_vm2, %v2904_v6, %v2902_v57  ;;  %v6555_v6 = vld [vmem:[%s9000_s8 + $0x124] ss:$16 sps:$4 sm:$0xff]   ;;  %v6580_v57 = vld [vmem:[%s9000_s8 + $0x1a8] ss:$16 sps:$4 sm:$0xff]  }
 0x2ab   :  { %v2910_v39 = vadd.f32 %v2909_v14, %v2905_v55  ;;  %v6577_v14 = vld [vmem:[%s9000_s8 + $0x1a0] ss:$16 sps:$4 sm:$0xff]   ;;  %v6585_v55 = vld [vmem:[%s9000_s8 + $0x1c4] ss:$16 sps:$4 sm:$0xff]  }
 0x2ad   :  { %v2911_v34 = vmax.f32 %v2910_v39, 0.0  ;;  %v6588_v39 = vld [vmem:[%s9000_s8 + $0x1cc] ss:$16 sps:$4 sm:$0xff]  }
 0x2af   :  { %v2912_v18 = vmul.f32 %v8398_v51, %v2911_v34  ;;  %v6505_v51 = vld [vmem:[%s9000_s8 + $0x20] ss:$16 sps:$4 sm:$0xff]  }
 0x2b0   :  { %v6583_v34 = vld [vmem:[%s9000_s8 + $0x1c0] ss:$16 sps:$4 sm:$0xff]  }
 0x2b1   :  { %v2913_v22 = vadd.f32 %v8405_v1, %v2912_v18  ;;  %v6508_v1 = vld [vmem:[%s9000_s8 + $0x28] ss:$16 sps:$4 sm:$0xff]  }
 0x2b2   :  { %v6586_v18 = vld [vmem:[%s9000_s8 + $0x1c8] ss:$16 sps:$4 sm:$0xff]  }
 0x2b3   :  { %v2916_v7 = vpack.c.bf16 %v2913_v22, %v2913_v22  ;;  %v6591_v22 = vld [vmem:[%s9000_s8 + $0x1e4] ss:$16 sps:$4 sm:$0xff]  }
 0x2b5   :  { %3567 = vmatmul.mubr.bf16.vlgmr.msra.gmra.mrb[212].mxu1 %v2916_v7  ;;  %3649 = vmatmul.mubr.bf16.vlgmr.msra.gmra.mrb[208].mxu0 %v2916_v7  ;;  %v6592_v7 = vld [vmem:[%s9000_s8 + $0x1e8] ss:$16 sps:$4 sm:$0xff]  }
 0x2b6   :  { %4486 = vmatpush1.bf16.msra.mxu1 %v6499_v49  ;;  %4568 = vmatpush1.bf16.msra.mxu0 %v6502_v11  ;;  %v6594_v49 = vld [vmem:[%s9000_s8 + $0x1ec] ss:$16 sps:$4 sm:$0xff]   ;;  %v6589_v11 = vld [vmem:[%s9000_s8 + $0x1e0] ss:$16 sps:$4 sm:$0xff]  }
 0x2b7   :  { %4487 = vmatprep.subr.bf16.mxu1 %v6507_v40  ;;  %4569 = vmatprep.subr.bf16.mxu0 %v6510_v33  ;;  %v6597_v40 = vld [vmem:[%s9000_s8 + $0x204] ss:$16 sps:$4 sm:$0xff]   ;;  %v6600_v33 = vld [vmem:[%s9000_s8 + $0x20c] ss:$16 sps:$4 sm:$0xff]  }
 0x2ba   :  { %4488 = vmatpush1.bf16.msra.mxu1 %v6505_v51  ;;  %4570 = vmatpush1.bf16.msra.mxu0 %v6508_v1  ;;  %v3657_v51 = vld [vmem:[%s8998_s6] sm:$0xf]  ;;  %v8764_v1 = vsub.s32 3, %v8358_v8 }
 0x2bb   :  { %4489 = vmatprep.subr.bf16.mxu1 %v6513_v58  ;;  %4571 = vmatprep.subr.bf16.mxu0 %v6516_v38  ;;  %v3683_v58 = vld [vmem:[%s8999_s7] sm:$0xf]  ;;  %v3662_v38 = vrot.slane %v3657_v51, %v8364_v54 }
 0x2bc   :  { %v3692_v8 = vrot.slane %v3683_v58, %v8382_v26 }
 0x2be   :  { %4490 = vmatpush1.bf16.msra.mxu1 %v6511_v24  ;;  %4572 = vmatpush1.bf16.msra.mxu0 %v6514_v37  ;;  %v3670_v24 = vrot.slane %v3657_v51, %v8561_v36  ;;  %v3666_v37 = vrot.slane %v3657_v51, %v8382_v26 }
 0x2bf   :  { %4491 = vmatprep.subr.bf16.mxu1 %v6519_v42  ;;  %4573 = vmatprep.subr.bf16.mxu0 %v6522_v56  ;;  %v3674_v42 = vrot.slane %v3657_v51, %v8764_v1  ;;  %v3688_v56 = vrot.slane %v3683_v58, %v8364_v54  ;;  %v6637_v51 = vld [vmem:[%s9000_s8 + $0x2e0] ss:$16 sps:$4 sm:$0xff]  }
 0x2c2   :  { %4492 = vmatpush1.bf16.msra.mxu1 %v6517_v35  ;;  %4574 = vmatpush1.bf16.msra.mxu0 %v6520_v5  ;;  %v3696_v35 = vrot.slane %v3683_v58, %v8561_v36 }
 0x2c3   :  { %4493 = vmatprep.subr.bf16.mxu1 %v6525_v2  ;;  %4575 = vmatprep.subr.bf16.mxu0 %v6528_v9  ;;  %v3700_v9 = vrot.slane %v3683_v58, %v8764_v1  ;;  %v6640_v58 = vld [vmem:[%s9000_s8 + $0x2e8] ss:$16 sps:$4 sm:$0xff]  }
 0x2c6   :  { %4494 = vmatpush1.bf16.msra.mxu1 %v6523_v10  ;;  %4576 = vmatpush1.bf16.msra.mxu0 %v6526_v28 }
 0x2c7   :  { %4495 = vmatprep.subr.bf16.mxu1 %v6531_v50  ;;  %4577 = vmatprep.subr.bf16.mxu0 %v6534_v17 }
 0x2ca   :  { %4496 = vmatpush1.bf16.msra.mxu1 %v6529_v63  ;;  %4578 = vmatpush1.bf16.msra.mxu0 %v6532_v31 }
 0x2cb   :  { %4497 = vmatprep.subr.bf16.mxu1 %v6537_v53  ;;  %4579 = vmatprep.subr.bf16.mxu0 %v6540_v16 }
 0x2ce   :  { %4498 = vmatpush1.bf16.msra.mxu1 %v6535_v27  ;;  %4580 = vmatpush1.bf16.msra.mxu0 %v6538_v29 }
 0x2cf   :  { %4499 = vmatprep.subr.bf16.mxu1 %v6543_v43  ;;  %4581 = vmatprep.subr.bf16.mxu0 %v6546_v45 }
 0x2d2   :  { %4500 = vmatpush1.bf16.msra.mxu1 %v6541_v61  ;;  %4582 = vmatpush1.bf16.msra.mxu0 %v6544_v21 }
 0x2d3   :  { %4501 = vmatprep.subr.bf16.mxu1 %v6549_v3  ;;  %4583 = vmatprep.subr.bf16.mxu0 %v6552_v44 }
 0x2d6   :  { %4502 = vmatpush1.bf16.msra.mxu1 %v6547_v46  ;;  %4584 = vmatpush1.bf16.msra.mxu0 %v6550_v23 }
 0x2d7   :  { %4503 = vmatprep.subr.bf16.mxu1 %v6555_v6  ;;  %4585 = vmatprep.subr.bf16.mxu0 %v6558_v0  ;;  %v6595_v6 = vld [vmem:[%s9000_s8 + $0x200] ss:$16 sps:$4 sm:$0xff]   ;;  %v6598_v0 = vld [vmem:[%s9000_s8 + $0x208] ss:$16 sps:$4 sm:$0xff]  }
 0x2da   :  { %4504 = vmatpush1.bf16.msra.mxu1 %v6553_v20  ;;  %4586 = vmatpush1.bf16.msra.mxu0 %v6556_v62  ;;  %v6603_v62 = vld [vmem:[%s9000_s8 + $0x224] ss:$16 sps:$4 sm:$0xff]  }
 0x2db   :  { %4505 = vmatprep.subr.bf16.mxu1 %v6561_v60  ;;  %4587 = vmatprep.subr.bf16.mxu0 %v6564_v59  ;;  %v6606_v60 = vld [vmem:[%s9000_s8 + $0x22c] ss:$16 sps:$4 sm:$0xff]  }
 0x2de   :  { %4506 = vmatpush1.bf16.msra.mxu1 %v6559_v15  ;;  %4588 = vmatpush1.bf16.msra.mxu0 %v6562_v13  ;;  %v6601_v15 = vld [vmem:[%s9000_s8 + $0x220] ss:$16 sps:$4 sm:$0xff]   ;;  %v6604_v13 = vld [vmem:[%s9000_s8 + $0x228] ss:$16 sps:$4 sm:$0xff]  }
 0x2df   :  { %4507 = vmatprep.subr.bf16.mxu1 %v6567_v52  ;;  %4589 = vmatprep.subr.bf16.mxu0 %v6570_v47  ;;  %v6609_v52 = vld [vmem:[%s9000_s8 + $0x244] ss:$16 sps:$4 sm:$0xff]   ;;  %v6612_v47 = vld [vmem:[%s9000_s8 + $0x24c] ss:$16 sps:$4 sm:$0xff]  }
 0x2e2   :  { %4508 = vmatpush1.bf16.msra.mxu1 %v6565_v41  ;;  %4590 = vmatpush1.bf16.msra.mxu0 %v6568_v25  ;;  %v6607_v41 = vld [vmem:[%s9000_s8 + $0x240] ss:$16 sps:$4 sm:$0xff]   ;;  %v6610_v25 = vld [vmem:[%s9000_s8 + $0x248] ss:$16 sps:$4 sm:$0xff]  }
 0x2e3   :  { %4509 = vmatprep.subr.bf16.mxu1 %v6573_v12  ;;  %4591 = vmatprep.subr.bf16.mxu0 %v6576_v19  ;;  %v6615_v12 = vld [vmem:[%s9000_s8 + $0x264] ss:$16 sps:$4 sm:$0xff]   ;;  %v6618_v19 = vld [vmem:[%s9000_s8 + $0x26c] ss:$16 sps:$4 sm:$0xff]  }
 0x2e6   :  { %4510 = vmatpush1.bf16.msra.mxu1 %v6571_v30  ;;  %4592 = vmatpush1.bf16.msra.mxu0 %v6574_v32  ;;  %v6613_v30 = vld [vmem:[%s9000_s8 + $0x260] ss:$16 sps:$4 sm:$0xff]   ;;  %v6616_v32 = vld [vmem:[%s9000_s8 + $0x268] ss:$16 sps:$4 sm:$0xff]  }
 0x2e7   :  { %4511 = vmatprep.subr.bf16.mxu1 %v6579_v4  ;;  %4593 = vmatprep.subr.bf16.mxu0 %v6582_v48  ;;  %v6621_v4 = vld [vmem:[%s9000_s8 + $0x284] ss:$16 sps:$4 sm:$0xff]   ;;  %v6624_v48 = vld [vmem:[%s9000_s8 + $0x28c] ss:$16 sps:$4 sm:$0xff]  }
 0x2ea   :  { %4512 = vmatpush1.bf16.msra.mxu1 %v6577_v14  ;;  %4594 = vmatpush1.bf16.msra.mxu0 %v6580_v57  ;;  %v6619_v14 = vld [vmem:[%s9000_s8 + $0x280] ss:$16 sps:$4 sm:$0xff]   ;;  %v6622_v57 = vld [vmem:[%s9000_s8 + $0x288] ss:$16 sps:$4 sm:$0xff]  }
 0x2eb   :  { %4513 = vmatprep.subr.bf16.mxu1 %v6585_v55  ;;  %4595 = vmatprep.subr.bf16.mxu0 %v6588_v39  ;;  %v6627_v55 = vld [vmem:[%s9000_s8 + $0x2a4] ss:$16 sps:$4 sm:$0xff]   ;;  %v6630_v39 = vld [vmem:[%s9000_s8 + $0x2ac] ss:$16 sps:$4 sm:$0xff]  }
 0x2ee   :  { %4514 = vmatpush1.bf16.msra.mxu1 %v6583_v34  ;;  %4596 = vmatpush1.bf16.msra.mxu0 %v6586_v18  ;;  %v6625_v34 = vld [vmem:[%s9000_s8 + $0x2a0] ss:$16 sps:$4 sm:$0xff]   ;;  %v6628_v18 = vld [vmem:[%s9000_s8 + $0x2a8] ss:$16 sps:$4 sm:$0xff]  }
 0x2ef   :  { %4515 = vmatprep.subr.bf16.mxu1 %v6591_v22  ;;  %4597 = vmatprep.subr.bf16.mxu0 %v6594_v49  ;;  %v6633_v22 = vld [vmem:[%s9000_s8 + $0x2c4] ss:$16 sps:$4 sm:$0xff]   ;;  %v6636_v49 = vld [vmem:[%s9000_s8 + $0x2cc] ss:$16 sps:$4 sm:$0xff]  }
 0x2f2   :  { %4516 = vmatpush1.bf16.msra.mxu1 %v6589_v11  ;;  %4598 = vmatpush1.bf16.msra.mxu0 %v6592_v7  ;;  %v6631_v11 = vld [vmem:[%s9000_s8 + $0x2c0] ss:$16 sps:$4 sm:$0xff]   ;;  %v6634_v7 = vld [vmem:[%s9000_s8 + $0x2c8] ss:$16 sps:$4 sm:$0xff]  }
 0x2f3   :  { %4526 = vmatprep.subr.bf16.mxu1 %v6597_v40  ;;  %4608 = vmatprep.subr.bf16.mxu0 %v6600_v33  ;;  %v6639_v40 = vld [vmem:[%s9000_s8 + $0x2e4] ss:$16 sps:$4 sm:$0xff]   ;;  %v6642_v33 = vld [vmem:[%s9000_s8 + $0x2ec] ss:$16 sps:$4 sm:$0xff]  }
 0x388   :  { %v3568_v5 = vpop.f32.mrb[212].mxu1  ;;  %v3650_v2 = vpop.f32.mrb[208].mxu0 }
 0x389   :  { %v3679_v10 = vmul.f32 %v3662_v38, %v3568_v5  ;;  %v3681_v28 = vmul.f32 %v3670_v24, %v3650_v2  ;;  %v3570_v50 = vpop.f32.mrb[213].mxu1  ;;  %v3652_v17 = vpop.f32.mrb[209].mxu0  ;;  %v6645_v38 = vld [vmem:[%s9000_s8 + $0x304] ss:$16 sps:$4 sm:$0xff]   ;;  %v6648_v24 = vld [vmem:[%s9000_s8 + $0x30c] ss:$16 sps:$4 sm:$0xff]  }
 0x38a   :  { %v3680_v63 = vmul.f32 %v3666_v37, %v3570_v50  ;;  %v3682_v31 = vmul.f32 %v3674_v42, %v3652_v17  ;;  %v3572_v53 = vpop.f32.mrb[214].mxu1  ;;  %v3654_v16 = vpop.f32.mrb[210].mxu0  ;;  %v6643_v37 = vld [vmem:[%s9000_s8 + $0x300] ss:$16 sps:$4 sm:$0xff]   ;;  %v6646_v42 = vld [vmem:[%s9000_s8 + $0x308] ss:$16 sps:$4 sm:$0xff]  }
 0x38b   :  { %v3705_v27 = vadd.f32 %v3688_v56, %v3679_v10  ;;  %v8777_v29 = vadd.f32 %v3696_v35, %v3681_v28  ;;  %v3573_v43 = vpop.f32.mrb[215].mxu1  ;;  %v3655_v45 = vpop.f32.mrb[211].mxu0  ;;  %v6651_v56 = vld [vmem:[%s9000_s8 + $0x324] ss:$16 sps:$4 sm:$0xff]   ;;  %v6654_v35 = vld [vmem:[%s9000_s8 + $0x32c] ss:$16 sps:$4 sm:$0xff]  }
 0x38c   :  { %v3706_v61 = vadd.f32 %v3692_v8, %v3680_v63  ;;  %v3708_v21 = vadd.f32 %v3700_v9, %v3682_v31  ;;  %v6649_v5 = vld [vmem:[%s9000_s8 + $0x320] ss:$16 sps:$4 sm:$0xff]   ;;  %v6652_v2 = vld [vmem:[%s9000_s8 + $0x328] ss:$16 sps:$4 sm:$0xff]   ;;  %v6657_v8 = vld [vmem:[%s9000_s8 + $0x344] ss:$16 sps:$4 sm:$0xff]  }
 0x38d   :  { %v3709_v3 = vmax.f32 %v3705_v27, 0.0  ;;  %v6660_v9 = vld [vmem:[%s9000_s8 + $0x34c] ss:$16 sps:$4 sm:$0xff]   ;;  %v6655_v10 = vld [vmem:[%s9000_s8 + $0x340] ss:$16 sps:$4 sm:$0xff]  }
 0x38e   :  { %v3710_v44 = vmax.f32 %v3706_v61, 0.0  ;;  %v3712_v46 = vmax.f32 %v3708_v21, 0.0  ;;  %v6658_v28 = vld [vmem:[%s9000_s8 + $0x348] ss:$16 sps:$4 sm:$0xff]   ;;  %v6663_v50 = vld [vmem:[%s9000_s8 + $0x364] ss:$16 sps:$4 sm:$0xff]  }
 0x38f   :  { %v3713_v20 = vpack.c.bf16 %v3709_v3, %v3709_v3  ;;  %v6666_v17 = vld [vmem:[%s9000_s8 + $0x36c] ss:$16 sps:$4 sm:$0xff]   ;;  %v6661_v63 = vld [vmem:[%s9000_s8 + $0x360] ss:$16 sps:$4 sm:$0xff]   ;;  %v6664_v31 = vld [vmem:[%s9000_s8 + $0x368] ss:$16 sps:$4 sm:$0xff]  }
 0x390   :  { %v3714_v23 = vpack.c.bf16 %v3710_v44, %v3710_v44  ;;  %v3716_v59 = vpack.c.bf16 %v3712_v46, %v3712_v46  ;;  %v6669_v53 = vld [vmem:[%s9000_s8 + $0x384] ss:$16 sps:$4 sm:$0xff]   ;;  %v6672_v16 = vld [vmem:[%s9000_s8 + $0x38c] ss:$16 sps:$4 sm:$0xff]   ;;  %v6667_v27 = vld [vmem:[%s9000_s8 + $0x380] ss:$16 sps:$4 sm:$0xff]  }
 0x391   :  { %v6670_v43 = vld [vmem:[%s9000_s8 + $0x388] ss:$16 sps:$4 sm:$0xff]   ;;  %v6675_v45 = vld [vmem:[%s9000_s8 + $0x3a4] ss:$16 sps:$4 sm:$0xff]   ;;  %v6678_v61 = vld [vmem:[%s9000_s8 + $0x3ac] ss:$16 sps:$4 sm:$0xff]  }
 0x392   :  { %4517 = vmatprep.mubr.bf16.mxu1 %v3714_v23  ;;  %4599 = vmatprep.mubr.bf16.mxu0 %v3714_v23  ;;  %v6673_v21 = vld [vmem:[%s9000_s8 + $0x3a0] ss:$16 sps:$4 sm:$0xff]   ;;  %v6676_v3 = vld [vmem:[%s9000_s8 + $0x3a8] ss:$16 sps:$4 sm:$0xff]   ;;  %v6681_v44 = vld [vmem:[%s9000_s8 + $0x3c4] ss:$16 sps:$4 sm:$0xff]  }
 0x393   :  { %4518 = vmatmul.mubr.bf16.vlgmr.msra.gmra.mrb[216].mxu1 %v3713_v20  ;;  %4600 = vmatmul.mubr.bf16.vlgmr.msra.gmra.mrb[212].mxu0 %v3713_v20  ;;  %v6684_v46 = vld [vmem:[%s9000_s8 + $0x3cc] ss:$16 sps:$4 sm:$0xff]   ;;  %v6679_v23 = vld [vmem:[%s9000_s8 + $0x3c0] ss:$16 sps:$4 sm:$0xff]  }
 0x394   :  { %4527 = vmatpush1.bf16.msra.mxu1 %v6595_v6  ;;  %4609 = vmatpush1.bf16.msra.mxu0 %v6598_v0  ;;  %v6682_v6 = vld [vmem:[%s9000_s8 + $0x3c8] ss:$16 sps:$4 sm:$0xff]   ;;  %v6687_v0 = vld [vmem:[%s9000_s8 + $0x3e4] ss:$16 sps:$4 sm:$0xff]   ;;  %v6690_v20 = vld [vmem:[%s9000_s8 + $0x3ec] ss:$16 sps:$4 sm:$0xff]  }
 0x395   :  { %4558 = vmatprep.mubr.bf16.mxu1 %v3716_v59  ;;  %4640 = vmatprep.mubr.bf16.mxu0 %v3716_v59  ;;  %v3711_v59 = vmax.f32 %v8777_v29, 0.0 }
 0x396   :  { %4528 = vmatprep.subr.bf16.mxu1 %v6603_v62  ;;  %4610 = vmatprep.subr.bf16.mxu0 %v6606_v60  ;;  %v6685_v62 = vld [vmem:[%s9000_s8 + $0x3e0] ss:$16 sps:$4 sm:$0xff]   ;;  %v6688_v60 = vld [vmem:[%s9000_s8 + $0x3e8] ss:$16 sps:$4 sm:$0xff]   ;;  %s6786_s8 = smov [#allocation2]  }
 0x398   :  { %4529 = vmatpush1.bf16.msra.mxu1 %v6601_v15  ;;  %4611 = vmatpush1.bf16.msra.mxu0 %v6604_v13  ;;  %v3715_v15 = vpack.c.bf16 %v3711_v59, %v3711_v59  ;;  %v4649_v13 = vld [vmem:[%s9001_s9] sm:$0xf]  ;;  %s4721_s9 = sshll.u32 %s6786_s8, 4  ;;  %s4722_s9 = int_to_ptr.vmem [resolvable:$true] %s4721_s9 }
 0x399   :  { %4530 = vmatprep.subr.bf16.mxu1 %v6609_v52  ;;  %4612 = vmatprep.subr.bf16.mxu0 %v6612_v47  ;;  %v4675_v52 = vld [vmem:[%s9002_s10] sm:$0xf]  ;;  %v4654_v47 = vrot.slane %v4649_v13, %v8364_v54  ;;  %v4658_v29 = vrot.slane %v4649_v13, %v8382_v26  ;;  %s6761_s10 = scalar_lea.vmem %s4722_s9, 256  ;;  %p6766_p1 = scmp.lt.s32.totalorder %s4722_s9, %s4722_s9 }
 0x39a   :  { %p6762_p0 = scmp.ne.s32.totalorder %s4722_s9, %s6761_s10  ;;  %p6767_p2 = scmp.lt.s32.totalorder %s6761_s10, %s6761_s10 }
 0x39c   :  { %4531 = vmatpush1.bf16.msra.mxu1 %v6607_v41  ;;  %4613 = vmatpush1.bf16.msra.mxu0 %v6610_v25  ;;  %v4662_v41 = vrot.slane %v4649_v13, %v8561_v36  ;;  %v4666_v25 = vrot.slane %v4649_v13, %v8764_v1  ;;  %p6768_p3 = por %p6767_p2, %p6766_p1 }
 0x39d   :  { %4532 = vmatprep.subr.bf16.mxu1 %v6615_v12  ;;  %4614 = vmatprep.subr.bf16.mxu0 %v6618_v19  ;;  %v4680_v12 = vrot.slane %v4675_v52, %v8364_v54  ;;  %v4688_v19 = vrot.slane %v4675_v52, %v8561_v36 }
 0x39e   :  { %p6769_p4 = pnand %p6768_p3, %p6762_p0 }
 0x3a0   :  { %4533 = vmatpush1.bf16.msra.mxu1 %v6613_v30  ;;  %4615 = vmatpush1.bf16.msra.mxu0 %v6616_v32 }
 0x3a1   :  { %4534 = vmatprep.subr.bf16.mxu1 %v6621_v4  ;;  %4616 = vmatprep.subr.bf16.mxu0 %v6624_v48  ;;  %v4684_v4 = vrot.slane %v4675_v52, %v8382_v26  ;;  %v4692_v48 = vrot.slane %v4675_v52, %v8764_v1 }
 0x3a4   :  { %4535 = vmatpush1.bf16.msra.mxu1 %v6619_v14  ;;  %4617 = vmatpush1.bf16.msra.mxu0 %v6622_v57 }
 0x3a5   :  { %4536 = vmatprep.subr.bf16.mxu1 %v6627_v55  ;;  %4618 = vmatprep.subr.bf16.mxu0 %v6630_v39 }
 0x3a8   :  { %4537 = vmatpush1.bf16.msra.mxu1 %v6625_v34  ;;  %4619 = vmatpush1.bf16.msra.mxu0 %v6628_v18 }
 0x3a9   :  { %4538 = vmatprep.subr.bf16.mxu1 %v6633_v22  ;;  %4620 = vmatprep.subr.bf16.mxu0 %v6636_v49 }
 0x3ac   :  { %4539 = vmatpush1.bf16.msra.mxu1 %v6631_v11  ;;  %4621 = vmatpush1.bf16.msra.mxu0 %v6634_v7 }
 0x3ad   :  { %4540 = vmatprep.subr.bf16.mxu1 %v6639_v40  ;;  %4622 = vmatprep.subr.bf16.mxu0 %v6642_v33 }
 0x3b0   :  { %4541 = vmatpush1.bf16.msra.mxu1 %v6637_v51  ;;  %4623 = vmatpush1.bf16.msra.mxu0 %v6640_v58 }
 0x3b1   :  { %4542 = vmatprep.subr.bf16.mxu1 %v6645_v38  ;;  %4624 = vmatprep.subr.bf16.mxu0 %v6648_v24 }
 0x3b4   :  { %4543 = vmatpush1.bf16.msra.mxu1 %v6643_v37  ;;  %4625 = vmatpush1.bf16.msra.mxu0 %v6646_v42 }
 0x3b5   :  { %4544 = vmatprep.subr.bf16.mxu1 %v6651_v56  ;;  %4626 = vmatprep.subr.bf16.mxu0 %v6654_v35 }
 0x3b8   :  { %4545 = vmatpush1.bf16.msra.mxu1 %v6649_v5  ;;  %4627 = vmatpush1.bf16.msra.mxu0 %v6652_v2 }
 0x3b9   :  { %4546 = vmatprep.subr.bf16.mxu1 %v6657_v8  ;;  %4628 = vmatprep.subr.bf16.mxu0 %v6660_v9 }
 0x3bc   :  { %4547 = vmatpush1.bf16.msra.mxu1 %v6655_v10  ;;  %4629 = vmatpush1.bf16.msra.mxu0 %v6658_v28 }
 0x3bd   :  { %4548 = vmatprep.subr.bf16.mxu1 %v6663_v50  ;;  %4630 = vmatprep.subr.bf16.mxu0 %v6666_v17 }
 0x3c0   :  { %4549 = vmatpush1.bf16.msra.mxu1 %v6661_v63  ;;  %4631 = vmatpush1.bf16.msra.mxu0 %v6664_v31 }
 0x3c1   :  { %4550 = vmatprep.subr.bf16.mxu1 %v6669_v53  ;;  %4632 = vmatprep.subr.bf16.mxu0 %v6672_v16 }
 0x3c4   :  { %4551 = vmatpush1.bf16.msra.mxu1 %v6667_v27  ;;  %4633 = vmatpush1.bf16.msra.mxu0 %v6670_v43 }
 0x3c5   :  { %4552 = vmatprep.subr.bf16.mxu1 %v6675_v45  ;;  %4634 = vmatprep.subr.bf16.mxu0 %v6678_v61 }
 0x3c8   :  { %4553 = vmatpush1.bf16.msra.mxu1 %v6673_v21  ;;  %4635 = vmatpush1.bf16.msra.mxu0 %v6676_v3 }
 0x3c9   :  { %4554 = vmatprep.subr.bf16.mxu1 %v6681_v44  ;;  %4636 = vmatprep.subr.bf16.mxu0 %v6684_v46 }
 0x3cc   :  { %4555 = vmatpush1.bf16.msra.mxu1 %v6679_v23  ;;  %4637 = vmatpush1.bf16.msra.mxu0 %v6682_v6 }
 0x3cd   :  { %4556 = vmatprep.subr.bf16.mxu1 %v6687_v0  ;;  %4638 = vmatprep.subr.bf16.mxu0 %v6690_v20 }
 0x3d0   :  { %4557 = vmatpush1.bf16.msra.mxu1 %v6685_v62  ;;  %4639 = vmatpush1.bf16.msra.mxu0 %v6688_v60 }
 0x3d3   :  { %4559 = vmatmul.mubr.bf16.vlgmr.msra.gmra.mrb[216].mxu1 %v3715_v15  ;;  %4641 = vmatmul.mubr.bf16.vlgmr.msra.gmra.mrb[212].mxu0 %v3715_v15 }
 0x4a6   :  { %v4560_v30 = vpop.f32.mrb[216].mxu1  ;;  %v4642_v32 = vpop.f32.mrb[212].mxu0 }
 0x4a7   :  { %v4671_v14 = vmul.f32 %v4654_v47, %v4560_v30  ;;  %v4673_v57 = vmul.f32 %v4662_v41, %v4642_v32  ;;  %v4562_v55 = vpop.f32.mrb[217].mxu1  ;;  %v4644_v39 = vpop.f32.mrb[213].mxu0 }
 0x4a8   :  { %v4672_v34 = vmul.f32 %v4658_v29, %v4562_v55  ;;  %v4674_v18 = vmul.f32 %v4666_v25, %v4644_v39  ;;  %v4564_v22 = vpop.f32.mrb[218].mxu1  ;;  %v4646_v49 = vpop.f32.mrb[214].mxu0 }
 0x4a9   :  { %v4697_v11 = vadd.f32 %v4680_v12, %v4671_v14  ;;  %v4699_v7 = vadd.f32 %v4688_v19, %v4673_v57  ;;  %v4565_v40 = vpop.f32.mrb[219].mxu1  ;;  %v4647_v54 = vpop.f32.mrb[215].mxu0 }
 0x4aa   :  { %v4698_v33 = vadd.f32 %v4684_v4, %v4672_v34  ;;  %v4700_v36 = vadd.f32 %v4692_v48, %v4674_v18 }
 0x4ab   :  { %v4701_v51 = vmax.f32 %v4697_v11, 0.0  ;;  %v4703_v58 = vmax.f32 %v4699_v7, 0.0 }
 0x4ac   :  { %v4702_v26 = vmax.f32 %v4698_v33, 0.0  ;;  %v4704_v1 = vmax.f32 %v4700_v36, 0.0 }
 0x4ae   :  { %v4709_v38 = vcombine.low %v4701_v51, %v4702_v26  ;;  %v4710_v24 = vcombine.low %v4703_v58, %v4704_v1 }
 0x4b0   :  { %4713 = vst [vmem:[#allocation2] sm:$0xff] %v4709_v38  ;;  %4714 = vst [vmem:[#allocation2 + $0x8] sm:$0xff] %v4710_v24 }
 0x4b1   :  { %6772 = shalt.err (!%p6769_p4)
}
 0x4b2   :  { %s6773_s30 = scalar_lea.hbm %s9003_s11, 256 }
 0x4b3   :  { %p6774_p5 = scmp.ne.s32.totalorder %s9003_s11, %s6773_s30  ;;  %p6777_p6 = scmp.lt.u32.totalorder %s6773_s30, %s9003_s11 }
 0x4b5   :  { %p6779_p7 = pnand %p6777_p6, %p6774_p5 }
 0x4b7   :  { %6782 = shalt.err (!%p6779_p7)
}
 0x4b8   :  { %4724 = dma.vmem_to_hbm [thread:$0]  %s4722_s9, 256, %s9003_s11, [#allocation3]  }
 0x4b9   :  { %6783 = dma.done.wait [#allocation3], 256  }
 0x4ba   :  { %6784 = vsyncadd [#allocation3], 4294967040 }
 0x4bb   :  { %4728 = vsyncpa [#allocation3], 1 }

</bundles_post_ra>
